<compile_context>
chip_gen: v5e
topology: v5e:2x2
jax: 0.10.0
libtpu: 0.0.40
codegen_flags: <defaults>
</compile_context>

<pallas_src>
import math

import jax
import jax.numpy as jnp
from jax import lax
from jax.experimental import pallas as pl
from jax.experimental.pallas import tpu as pltpu

LANE = 128
PHASES = ((0, 0), (0, 1), (1, 0), (1, 1))   # (row, col) pooling phases of the 2x2 max


def _round_up(x, m):
    return (x + m - 1) // m * m


def _pick_tile_m(M, *, max_tile, min_steps=2):
    """Row tile for the M = B*out_h*out_w GEMM dim.

    Prefer a tile that divides M exactly (no padded rows), is a multiple of 8
    (sublane rule) and leaves >= min_steps grid steps (v7x megacore sharding).
    Falls back to a padded tile otherwise.
    """
    best = None
    for t in range(8, min(max_tile, M) + 1, 8):
        if M % t == 0 and M // t >= min_steps:
            best = t
    if best is not None:
        return best
    return max(8, min(max_tile, _round_up(max(M // min_steps, 8), 8)))


# ----------------------------------------------------------------------------
# Pallas kernels
# ----------------------------------------------------------------------------

def conv1_pool_kernel(p_ref, w_ref, b_ref, o_ref):
    """conv1 (3x3 as packed patch-GEMM) + 2x2 maxpool + bias + ReLU.

    p_ref: [tile_m, Ktot] bf16 — all 4 pooling phases' patches packed along lanes.
    w_ref: [4, Ktot, 128] bf16 — phase p's real (9*Cin x Cout) block at row offset p*9*Cin.
    b_ref: [1, 128]       f32  (zero padded).
    o_ref: [tile_m, 128]  bf16 pooled + ReLU'd output (padded lanes are 0).
    """
    p = p_ref[...]
    y = jnp.dot(p, w_ref[0], preferred_element_type=jnp.float32)
    for ph in range(1, 4):
        y = jnp.maximum(y, jnp.dot(p, w_ref[ph], preferred_element_type=jnp.float32))
    # bias once after the max (max(a+b, c+b) == max(a,c)+b), then ReLU.
    o_ref[...] = jnp.maximum(y + b_ref[...], 0.0).astype(o_ref.dtype)


def conv2_pool_kernel(p00_ref, p01_ref, p10_ref, p11_ref, w_ref, b_ref, o_ref):
    """conv2 (3x3 patch-GEMM per pooling phase) + 2x2 maxpool + bias + ReLU."""
    w = w_ref[...]

    def gemm(p_ref):
        return jnp.dot(p_ref[...], w, preferred_element_type=jnp.float32)

    y = jnp.maximum(jnp.maximum(gemm(p00_ref), gemm(p01_ref)),
                    jnp.maximum(gemm(p10_ref), gemm(p11_ref)))
    o_ref[...] = jnp.maximum(y + b_ref[...], 0.0).astype(o_ref.dtype)


def fc_kernel(x_ref, w_ref, b_ref, o_ref):
    """out = x @ W^T + b with W kept in its native [out_dim, K] (lane-dense K) layout."""
    x = x_ref[...].astype(jnp.float32)
    y = lax.dot_general(x, w_ref[...],
                        dimension_numbers=(((1,), (1,)), ((), ())),
                        preferred_element_type=jnp.float32)
    o_ref[...] = (y + b_ref[...]).astype(o_ref.dtype)


# ----------------------------------------------------------------------------
# Wrapper-side im2col (pure layout transforms)
# ----------------------------------------------------------------------------

def _phase_slabs(xp, a, b, out_h, out_w):
    """3x3 im2col slabs for conv outputs at positions (2i+a, 2j+b).

    xp: [B, H+2, W+2, C] zero-padded NHWC. Returns 9 slabs [B, oh, ow, C] in
    (kh, kw) order, matching the (kh, kw, cin) weight row flattening.
    """
    slabs = []
    for dy in range(3):
        for dx in range(3):
            slabs.append(xp[:, a + dy: a + dy + 2 * out_h: 2,
                             b + dx: b + dx + 2 * out_w: 2, :])
    return slabs


# ----------------------------------------------------------------------------
# Stage wrappers
# ----------------------------------------------------------------------------

def conv1_pool(x_nhwc, w_stack, b_row, *, out_h, out_w, max_tile=2048):
    """x_nhwc: [B,H,W,Cin] -> pooled/ReLU output [B,out_h,out_w,128] bf16."""
    B = x_nhwc.shape[0]
    k_tot_pad, co_pad = w_stack.shape[1], w_stack.shape[2]

    xp = jnp.pad(x_nhwc.astype(jnp.bfloat16), ((0, 0), (1, 1), (1, 1), (0, 0)))

    # Pack all 4 pooling phases into ONE patch matrix along the lane (K) dim.
    slabs = []
    for a, b in PHASES:
        slabs.extend(_phase_slabs(xp, a, b, out_h, out_w))
    p = jnp.concatenate(slabs, axis=-1)                     # [B, oh, ow, 4*9*Cin]
    p = p.reshape(B * out_h * out_w, p.shape[-1])

    M, K = p.shape
    tile_m = _pick_tile_m(M, max_tile=max_tile)
    M_pad = _round_up(M, tile_m)
    p = jnp.pad(p, ((0, M_pad - M), (0, k_tot_pad - K)))

    out = pl.pallas_call(
        conv1_pool_kernel,
        out_shape=jax.ShapeDtypeStruct((M_pad, co_pad), jnp.bfloat16),
        grid_spec=pltpu.PrefetchScalarGridSpec(
            num_scalar_prefetch=0,
            grid=(M_pad // tile_m,),
            in_specs=[pl.BlockSpec((tile_m, k_tot_pad), lambda i: (i, 0)),
                      pl.BlockSpec(w_stack.shape, lambda i: (0, 0, 0)),
                      pl.BlockSpec(b_row.shape, lambda i: (0, 0))],
            out_specs=pl.BlockSpec((tile_m, co_pad), lambda i: (i, 0)),
        ),
        compiler_params=pltpu.CompilerParams(
            dimension_semantics=("parallel",)),
    )(p, w_stack, b_row)

    return out[:M].reshape(B, out_h, out_w, co_pad)


def conv2_pool(x_nhwc, w2d, b_row, *, out_h, out_w, max_tile=1024):
    """x_nhwc: [B,H,W,Cin] (bf16) -> pooled/ReLU output [B,out_h,out_w,128] bf16."""
    B, _, _, cin = x_nhwc.shape
    K = 9 * cin
    k_pad, co_pad = w2d.shape

    xp = jnp.pad(x_nhwc.astype(jnp.bfloat16), ((0, 0), (1, 1), (1, 1), (0, 0)))

    M = B * out_h * out_w
    tile_m = _pick_tile_m(M, max_tile=max_tile)
    M_pad = _round_up(M, tile_m)

    def prep(a, b):
        p = jnp.concatenate(_phase_slabs(xp, a, b, out_h, out_w), axis=-1)
        p = p.reshape(M, K)
        return jnp.pad(p, ((0, M_pad - M), (0, k_pad - K)))

    phase_patches = [prep(a, b) for a, b in PHASES]

    patch_spec = pl.BlockSpec((tile_m, k_pad), lambda i: (i, 0))

    out = pl.pallas_call(
        conv2_pool_kernel,
        out_shape=jax.ShapeDtypeStruct((M_pad, co_pad), jnp.bfloat16),
        grid_spec=pltpu.PrefetchScalarGridSpec(
            num_scalar_prefetch=0,
            grid=(M_pad // tile_m,),
            in_specs=[patch_spec, patch_spec, patch_spec, patch_spec,
                      pl.BlockSpec(w2d.shape, lambda i: (0, 0)),
                      pl.BlockSpec(b_row.shape, lambda i: (0, 0))],
            out_specs=pl.BlockSpec((tile_m, co_pad), lambda i: (i, 0)),
        ),
        compiler_params=pltpu.CompilerParams(
            dimension_semantics=("parallel",)),
    )(*phase_patches, w2d, b_row)

    return out[:M].reshape(B, out_h, out_w, co_pad)


def linear_native(x, w_nat, b_row):
    """x: [B,K] (bf16), w_nat: [out_dim,K] f32 (native torch layout), b_row: [1,out_dim].

    The real weight is < 1 MiB, so the whole layer is a single un-tiled VMEM block
    (no grid, no accumulator) — one large DMA near the HBM roofline.
    """
    B = x.shape[0]
    out_dim = w_nat.shape[0]
    return pl.pallas_call(
        fc_kernel,
        out_shape=jax.ShapeDtypeStruct((B, out_dim), jnp.float32),
    )(x, w_nat, b_row)


# ----------------------------------------------------------------------------
# Full forward
# ----------------------------------------------------------------------------

def tiny_convnet_forward(x_nchw, params):
    """Pallas forward matching TinyConvNet.forward (params in PyTorch layouts)."""
    (w1, b1), (w2, b2), (wf, bf) = params
    B, _, H, W = x_nchw.shape
    c1_out = w1.shape[0]                   # 16
    c2_out = w2.shape[0]                   # 32
    assert c1_out <= LANE and c2_out <= LANE, "conv out-channels must fit 128 lanes"

    x_nhwc = jnp.transpose(x_nchw, (0, 2, 3, 1))

    def conv_w_base(w_t):
        # torch [Cout, Cin, 3, 3] -> [9*Cin, 128] rows in (kh, kw, cin) order.
        cout, cin = w_t.shape[0], w_t.shape[1]
        w = jnp.transpose(w_t, (2, 3, 1, 0)).reshape(9 * cin, cout)
        return jnp.pad(w, ((0, 0), (0, LANE - cout)))

    def bias_row(b_t):
        return jnp.pad(b_t, (0, LANE - b_t.shape[0])).reshape(1, LANE).astype(jnp.float32)

    # conv1: four stacked phase weights; phase p's real block at row offset p*9*Cin.
    base1 = conv_w_base(w1)                                 # [27, 128]
    k1 = base1.shape[0]
    k1_tot = _round_up(4 * k1, LANE)                        # 128
    w1_stack = jnp.stack(
        [jnp.pad(base1, ((p * k1, k1_tot - (p + 1) * k1), (0, 0))) for p in range(4)]
    ).astype(jnp.bfloat16)                                  # [4, 128, 128]
    b1_row = bias_row(b1)

    # conv2: one weight, contraction dim zero-padded to a lane multiple.
    base2 = conv_w_base(w2)                                 # [144, 128]
    k2_pad = _round_up(base2.shape[0], LANE)                # 256
    w2_2d = jnp.pad(base2, ((0, k2_pad - base2.shape[0]), (0, 0))).astype(jnp.bfloat16)
    b2_row = bias_row(b2)

    oh1, ow1 = H // 2, W // 2                               # 60, 60
    oh2, ow2 = H // 4, W // 4                               # 30, 30

    # conv1 + maxpool + ReLU (fused)
    y1 = conv1_pool(x_nhwc, w1_stack, b1_row, out_h=oh1, out_w=ow1, max_tile=2048)
    y1 = y1[..., :c1_out]                                   # [B, 60, 60, 16] bf16

    # conv2 + maxpool + ReLU (fused)
    y2 = conv2_pool(y1, w2_2d, b2_row, out_h=oh2, out_w=ow2, max_tile=1024)
    y2 = y2[..., :c2_out]                                   # [B, 30, 30, 32] bf16

    # flatten in PyTorch (N, C, H, W) order, then fc (weight in native layout).
    flat = jnp.transpose(y2, (0, 3, 1, 2)).reshape(B, -1)   # [B, 32*30*30] bf16
    bf_row = bf.reshape(1, -1).astype(jnp.float32)
    return linear_native(flat, wf.astype(jnp.float32), bf_row)


# ----------------------------------------------------------------------------
# Pure-JAX reference with PyTorch semantics + init
# ----------------------------------------------------------------------------

def torch_ref_forward(x_nchw, params):
    (w1, b1), (w2, b2), (wf, bf) = params

    def conv3x3(x, w, b):
        y = lax.conv_general_dilated(
            x, w, window_strides=(1, 1), padding=((1, 1), (1, 1)),
            dimension_numbers=('NCHW', 'OIHW', 'NCHW'))
        return y + b.reshape(1, -1, 1, 1)

    def maxpool2(x):
        n, c, h, w = x.shape
        return x.reshape(n, c, h // 2, 2, w // 2, 2).max(axis=(3, 5))

    y = maxpool2(jnp.maximum(conv3x3(x_nchw, w1, b1), 0.0))
    y = maxpool2(jnp.maximum(conv3x3(y, w2, b2), 0.0))
    y = y.reshape(y.shape[0], -1)
    return y @ wf.T + bf


def init_params(key, encoded_space_dim):
    """PyTorch-default-like uniform init, deterministic."""
    def uinit(k, shape, fan_in):
        bound = 1.0 / math.sqrt(fan_in)
        return jax.random.uniform(k, shape, jnp.float32, -bound, bound)

    k = jax.random.split(key, 6)
    w1 = uinit(k[0], (16, 3, 3, 3), 3 * 9)
    b1 = uinit(k[1], (16,), 3 * 9)
    w2 = uinit(k[2], (32, 16, 3, 3), 16 * 9)
    b2 = uinit(k[3], (32,), 16 * 9)
    wf = uinit(k[4], (encoded_space_dim, 32 * 30 * 30), 32 * 30 * 30)
    bf = uinit(k[5], (encoded_space_dim,), 32 * 30 * 30)
    return [(w1, b1), (w2, b2), (wf, bf)]


if __name__ == "__main__":
    key = jax.random.PRNGKey(0)
    kx, kp = jax.random.split(key)

    # fc = Linear(32*30*30, enc) hard-codes two 2x halvings of a 120x120 input.
    batch, height, enc = 2, 120, 8
    x = jax.random.normal(kx, (batch, 3, height, height), jnp.float32)
    params = init_params(kp, enc)

    y = tiny_convnet_forward(x, params)
    y = jax.block_until_ready(y)

    y_ref = torch_ref_forward(x, params)
    assert y.shape == (batch, enc)
    max_diff = float(jnp.max(jnp.abs(y - y_ref)))
    # Conv GEMMs use bf16 inputs/activations with f32 accumulation -> loosened tolerance.
    assert jnp.allclose(y, y_ref, atol=3e-2, rtol=3e-2), f"mismatch, max|diff|={max_diff}"

    print("KERNEL_OK")
</pallas_src>

<mosaic_0001>
module attributes {stable_mosaic.version = 11 : i64} {
  func.func @conv1_pool_kernel(%arg0: i32, %arg1: memref<1800x128xbf16, #tpu.memory_space<vmem>>, %arg2: memref<4x128x128xbf16, #tpu.memory_space<vmem>>, %arg3: memref<1x128xf32, #tpu.memory_space<vmem>>, %arg4: memref<1800x128xbf16, #tpu.memory_space<vmem>>) attributes {dimension_semantics = [#tpu.dimension_semantics<parallel>], iteration_bounds = array<i64: 4>, scalar_prefetch = 0 : i64, scratch_operands = 0 : i64, tpu.core_type = #tpu.core_type<tc>, window_params = [{transform_indices = @transform_0, window_bounds = array<i64: 1800, 128>}, {pipeline_mode = #tpu.pipeline_mode<synchronous>, transform_indices = @transform_1, window_bounds = array<i64: 4, 128, 128>}, {pipeline_mode = #tpu.pipeline_mode<synchronous>, transform_indices = @transform_2, window_bounds = array<i64: 1, 128>}, {transform_indices = @transform_3, window_bounds = array<i64: 1800, 128>}]} {
    %c0 = arith.constant 0 : index
    %c0_0 = arith.constant 0 : index
    %0 = vector.load %arg1[%c0, %c0_0] : memref<1800x128xbf16, #tpu.memory_space<vmem>>, vector<1800x128xbf16>
    %c0_1 = arith.constant 0 : index
    %c0_2 = arith.constant 0 : index
    %c0_3 = arith.constant 0 : index
    %1 = vector.load %arg2[%c0_1, %c0_2, %c0_3] : memref<4x128x128xbf16, #tpu.memory_space<vmem>>, vector<1x128x128xbf16>
    %2 = vector.shape_cast %1 : vector<1x128x128xbf16> to vector<128x128xbf16>
    %cst = arith.constant dense<0.000000e+00> : vector<1800x128xf32>
    %3 = tpu.matmul %0, %2, %cst {dimension_numbers = #tpu.dot_dimension_numbers<[1], [0], [0], [1], [0, 0, 1, 1], [], []>} : vector<1800x128xbf16>, vector<128x128xbf16>, vector<1800x128xf32> -> vector<1800x128xf32>
    %c1 = arith.constant 1 : index
    %c0_4 = arith.constant 0 : index
    %c0_5 = arith.constant 0 : index
    %4 = vector.load %arg2[%c1, %c0_4, %c0_5] : memref<4x128x128xbf16, #tpu.memory_space<vmem>>, vector<1x128x128xbf16>
    %5 = vector.shape_cast %4 : vector<1x128x128xbf16> to vector<128x128xbf16>
    %cst_6 = arith.constant dense<0.000000e+00> : vector<1800x128xf32>
    %6 = tpu.matmul %0, %5, %cst_6 {dimension_numbers = #tpu.dot_dimension_numbers<[1], [0], [0], [1], [0, 0, 1, 1], [], []>} : vector<1800x128xbf16>, vector<128x128xbf16>, vector<1800x128xf32> -> vector<1800x128xf32>
    %7 = arith.maximumf %3, %6 : vector<1800x128xf32>
    %c2 = arith.constant 2 : index
    %c0_7 = arith.constant 0 : index
    %c0_8 = arith.constant 0 : index
    %8 = vector.load %arg2[%c2, %c0_7, %c0_8] : memref<4x128x128xbf16, #tpu.memory_space<vmem>>, vector<1x128x128xbf16>
    %9 = vector.shape_cast %8 : vector<1x128x128xbf16> to vector<128x128xbf16>
    %cst_9 = arith.constant dense<0.000000e+00> : vector<1800x128xf32>
    %10 = tpu.matmul %0, %9, %cst_9 {dimension_numbers = #tpu.dot_dimension_numbers<[1], [0], [0], [1], [0, 0, 1, 1], [], []>} : vector<1800x128xbf16>, vector<128x128xbf16>, vector<1800x128xf32> -> vector<1800x128xf32>
    %11 = arith.maximumf %7, %10 : vector<1800x128xf32>
    %c3 = arith.constant 3 : index
    %c0_10 = arith.constant 0 : index
    %c0_11 = arith.constant 0 : index
    %12 = vector.load %arg2[%c3, %c0_10, %c0_11] : memref<4x128x128xbf16, #tpu.memory_space<vmem>>, vector<1x128x128xbf16>
    %13 = vector.shape_cast %12 : vector<1x128x128xbf16> to vector<128x128xbf16>
    %cst_12 = arith.constant dense<0.000000e+00> : vector<1800x128xf32>
    %14 = tpu.matmul %0, %13, %cst_12 {dimension_numbers = #tpu.dot_dimension_numbers<[1], [0], [0], [1], [0, 0, 1, 1], [], []>} : vector<1800x128xbf16>, vector<128x128xbf16>, vector<1800x128xf32> -> vector<1800x128xf32>
    %15 = arith.maximumf %11, %14 : vector<1800x128xf32>
    %c0_13 = arith.constant 0 : index
    %c0_14 = arith.constant 0 : index
    %16 = vector.load %arg3[%c0_13, %c0_14] : memref<1x128xf32, #tpu.memory_space<vmem>>, vector<1x128xf32>
    %17 = vector.broadcast %16 : vector<1x128xf32> to vector<1800x128xf32>
    %18 = arith.addf %15, %17 : vector<1800x128xf32>
    %cst_15 = arith.constant 0.000000e+00 : f32
    %19 = vector.broadcast %cst_15 : f32 to vector<1800x128xf32>
    %20 = arith.maximumf %18, %19 : vector<1800x128xf32>
    %21 = arith.truncf %20 : vector<1800x128xf32> to vector<1800x128xbf16>
    %c0_16 = arith.constant 0 : index
    %c0_17 = arith.constant 0 : index
    %22 = vector.load %arg4[%c0_16, %c0_17] : memref<1800x128xbf16, #tpu.memory_space<vmem>>, vector<1800x128xbf16>
    tpu.vector_store %arg4[%c0_16, %c0_17], %21 {strides = array<i32>} : memref<1800x128xbf16, #tpu.memory_space<vmem>>, vector<1800x128xbf16>,
    return
  }
  func.func @transform_0(%arg0: i32) -> (i32, i32) {
    %c0_i32 = arith.constant 0 : i32
    %c0_i32_0 = arith.constant 0 : i32
    return %arg0, %c0_i32 : i32, i32
  }
  func.func @transform_1(%arg0: i32) -> (i32, i32, i32) {
    %c0_i32 = arith.constant 0 : i32
    %c0_i32_0 = arith.constant 0 : i32
    %c0_i32_1 = arith.constant 0 : i32
    %c0_i32_2 = arith.constant 0 : i32
    return %c0_i32, %c0_i32_0, %c0_i32_1 : i32, i32, i32
  }
  func.func @transform_2(%arg0: i32) -> (i32, i32) {
    %c0_i32 = arith.constant 0 : i32
    %c0_i32_0 = arith.constant 0 : i32
    %c0_i32_1 = arith.constant 0 : i32
    return %c0_i32, %c0_i32_0 : i32, i32
  }
  func.func @transform_3(%arg0: i32) -> (i32, i32) {
    %c0_i32 = arith.constant 0 : i32
    %c0_i32_0 = arith.constant 0 : i32
    return %arg0, %c0_i32 : i32, i32
  }
}

</mosaic_0001>

<bundles_post_ra>
// kernel: tpu_custom_call.1
= control target key start
LH: loop header
LB: loop body
LE: loop exit
PB: predicated region body
PF: predicated region fallthrough
CT: control target
= control target key end

     0   :  { %8 = vsyncpa [#allocation3], 0  ;;  %s7652_s0 = inlined_call_operand.hbm [shape: bf16[7200,128], index: 0, kind: input, shape index: {}]   ;;  %s7653_s1 = inlined_call_operand.hbm [shape: bf16[4,128,128], index: 1, kind: input, shape index: {}]   ;;  %s7654_s2 = inlined_call_operand.hbm [shape: f32[1,128], index: 2, kind: input, shape index: {}]   ;;  %s7655_s3 = inlined_call_operand.hbm [shape: bf16[7200,128], index: 3, kind: output, shape index: {}]  }
   0x1   :  { %10 = vsyncpa [#allocation3 + $0x1], 0 }
   0x2   :  { %11 = vsyncpa [#allocation6], 0 }
   0x3   :  { %12 = vsyncpa [#allocation4], 0 }
   0x4   :  { %14 = vsyncpa [#allocation4 + $0x1], 0  ;;  %s7035_s12 = smov 0   ;;  %s7037_s13 = smov 0  }
   0x5   :  { %s7039_s14 = smov 0   ;;  %s7041_s15 = smov 0  }
   0x6 LB: > { %s7056_s16 = sadd.s32 4294967295, %s7007_s15   ;;  %s5363_s17 = sadd.s32 4294967294, %s7007_s15   ;;  %s7007_s15 = sphi %s7041_s15, %s7666_s15   ;;  %s7003_s14 = sphi %s7039_s14, %s7665_s14   ;;  %s6999_s13 = sphi %s7037_s13, %s7664_s13   ;;  %s6995_s12 = sphi %s7035_s12, %s7663_s12  }
   0x7   : > { %p40_p0 = scmp.ne.s32.totalorder %s6999_s13, %s6995_s12  ;;  %p41_p1 = scmp.eq.s32.totalorder %s7056_s16, 0 }
   0x8   : > { %p106_p2 = scmp.eq.s32.totalorder %s7056_s16, 3  ;;  %p112_p3 = scmp.eq.s32.totalorder %s5363_s17, 3 }
   0x9   : > { %p7065_p4 = por %p41_p1, %p40_p0  ;;  %p5364_p5 = scmp.ge.s32.totalorder %s7007_s15, 1 }
   0xa   : > { %p7070_p6 = por %p112_p3, %p40_p0  ;;  %p119_p7 = scmp.lt.s32.totalorder %s7007_s15, 5 }
   0xb   : > { %s130_s22 = sshll.u32 %s7653_s1, 4  ;;  %s7009_s24 = smov [#allocation5]   ;;  %s131_s22 = int_to_ptr.hbm [resolvable:$true] %s130_s22 }
   0xc   : > { %p7078_p8 = pnand %p5364_p5, %p119_p7  ;;  %s132_s25 = sshll.u32 %s7009_s24, 4  ;;  %s133_s25 = int_to_ptr.vmem [resolvable:$true] %s132_s25 }
   0xd   : > { %s145_s28 = sshll.u32 %s7654_s2, 4  ;;  %s7656_s29 = smov 64   ;;  %s146_s28 = int_to_ptr.hbm [resolvable:$true] %s145_s28 }
   0xe   : > { %p6782_p9 = pneg %p7078_p8  ;;  %s7011_s30 = smov 4  }
   0xf   : > { %s7012_s4 = smov [#allocation7]   ;;  %s7093_s6 = sadd.s32 1, %s7007_s15  }
  0x10   : > { %p6783_p10 = pnand %p6782_p9, %p41_p1  ;;  %s147_s5 = sshll.u32 %s7012_s4, 4  ;;  %s148_s5 = int_to_ptr.vmem [resolvable:$true] %s147_s5 }
  0x11   : > { %s27_s7 = sadd.s32 1, %s7003_s14  ;;  %s24_s8 = ssub.s32 %s7007_s15, %s7093_s6 }
  0x12   : > { %6785 = dma.hbm_to_vmem [thread:$0]  (!%p6783_p10), %s131_s22, 4096, %s133_s25, [#allocation6], %s7656_s29, %s7656_s29, %s7011_s30  }
  0x13   : > { %6788 = dma.hbm_to_vmem [thread:$0]  (!%p6783_p10), %s146_s28, 16, %s148_s5, [#allocation6]  }
  0x14   : > { %p34_p11 = scmp.ne.s32.totalorder %s7003_s14, %s6999_s13  ;;  %p25_p12 = scmp.eq.s32.totalorder %s24_s8, 0 }
  0x15   : > { %p35_p13 = scmp.eq.s32.totalorder %s7007_s15, 0  ;;  %p6799_p3 = scmp.lt.s32.totalorder %s7007_s15, 4 }
  0x16   : > { %p7103_p0 = por %p106_p2, %p34_p11  ;;  %s158_s11 = sand.u32 1, %s7003_s14  }
  0x17   : > { %s7109_s10 = scalar_select %p25_p12, %s7003_s14, %s27_s7  }
  0x18   : > { %p36_p5 = por %p35_p13, %p34_p11  ;;  %s6768_s17 = smul.u32 900, %s158_s11 }
  0x19   : > { %s5951_s20 = smul.u32 900, %s7007_s15  ;;  %s159_s4 = scalar_lea.sflag [#allocation3], %s158_s11 }
  0x1a   : > { %p7113_p7 = pnand %p6799_p3, %p36_p5  ;;  %s162_s26 = scalar_lea.vmem [#allocation2], %s6768_s17 }
  0x1b   : > { %s167_s25 = scalar_lea.hbm %s7652_s0, %s5951_s20  ;;  %s170_s27 = sshll.u32 %s162_s26, 4  ;;  %s171_s27 = int_to_ptr.vmem [resolvable:$true] %s170_s27 }
  0x1c   : > { %s168_s28 = sshll.u32 %s167_s25, 4  ;;  %p6911_p9 = pneg %p7113_p7  ;;  %s169_s28 = int_to_ptr.hbm [resolvable:$true] %s168_s28 }
  0x1d   : > { %s6907_s5 = sshra.s32 %s169_s28, 4  ;;  %s6914_s22 = scalar_lea.hbm %s7652_s0, 3600  ;;  %s6908_s5 = int_to_ptr.hbm [resolvable:$true] %s6907_s5 }
  0x1e   : > { %s6909_s7 = scalar_lea.hbm %s6908_s5, 900  ;;  %p6915_p12 = scmp.lt.s32.totalorder %s6908_s5, %s7652_s0 }
  0x1f   : > { %p6910_p2 = scmp.ne.s32.totalorder %s6908_s5, %s6909_s7  ;;  %p6916_p13 = scmp.lt.s32.totalorder %s6914_s22, %s6909_s7 }
  0x21   : > { %p6912_p10 = pnand %p6911_p9, %p6910_p2  ;;  %p6917_p3 = por %p6916_p13, %p6915_p12 }
  0x23   : > { %p6913_p11 = pneg %p6912_p10 }
  0x25   : > { %p6918_p5 = pnand %p6917_p3, %p6913_p11 }
  0x27   : > { %6921 = shalt.err (!%p6918_p5)
}
  0x28   : > { %s7662_s11 = smov 64   ;;  %182 = sbr.rel (%p7078_p8) target bundleno = 2021 (0x7e5), region = 32 }
  0x29   : > { %6792 = dma.hbm_to_vmem [thread:$0]  (!%p7113_p7), %s169_s28, 14400, %s171_s27, %s159_s4, %s7662_s11, %s7662_s11, %s7011_s30  }
  0x2a   : > { %s7136_s29 = sand.u32 (!%p7078_p8), 1, %s6999_s13  }
  0x2b   : > { %s6769_s17 = smul.u32 (!%p7078_p8), 900, %s7136_s29  ;;  %s185_s25 = scalar_lea.sflag (!%p7078_p8), [#allocation3], %s7136_s29 }
  0x2d   : > { %s7142_s26 = scalar_lea.vmem [#allocation2], %s6769_s17 }
  0x2e   : > { %6982 = dma.done.wait (%p7065_p4), %s185_s25, 14400  }
  0x2f   : > { %6984 = vsyncadd (%p7065_p4), %s185_s25, 4294952896 }
  0x30   : > { %6986 = dma.done.wait (%p41_p1), [#allocation6], 4112  }
  0x31   : > { %6988 = vsyncadd (%p41_p1), [#allocation6], 4294963184  ;;  %v6071_v0 = vld [vmem:[#allocation5 + $0x38] sm:$0xff]  ;;  %v6070_v4 = vld [vmem:[#allocation5 + $0x30] sm:$0xff]  ;;  %s7168_s18 = scalar_lea.vmem [#allocation8], %s6769_s17  ;;  %s6096_s23 = smul.u32 900, %s7056_s16 }
  0x32   : > { %v6079_v1 = vld [vmem:[#allocation5 + $0x78] sm:$0xff]  ;;  %1189 = vmatpush.bf16.msra.mxu0 %v6071_v0  ;;  %v6078_v5 = vld [vmem:[#allocation5 + $0x70] sm:$0xff]  ;;  %v6069_v8 = vld [vmem:[#allocation5 + $0x28] sm:$0xff]  ;;  %s5268_s16 = sshll.u32 %s7168_s18, 4  ;;  %s5256_s4 = scalar_lea.sflag [#allocation4], %s7136_s29  ;;  %s5269_s16 = int_to_ptr.vmem [resolvable:$true] %s5268_s16 }
  0x33   : > { %v6087_v2 = vld [vmem:[#allocation5 + $0xb8] sm:$0xff]  ;;  %1827 = vmatpush.bf16.msra.mxu1 %v6079_v1  ;;  %v6086_v6 = vld [vmem:[#allocation5 + $0xb0] sm:$0xff]  ;;  %v6077_v9 = vld [vmem:[#allocation5 + $0x68] sm:$0xff]  ;;  %s5267_s27 = scalar_lea.hbm %s7655_s3, %s6096_s23  ;;  %s6957_s24 = scalar_lea.hbm %s7655_s3, 3600 }
  0x34   : > { %v6095_v3 = vld [vmem:[#allocation5 + $0xf8] sm:$0xff]  ;;  %2690 = vmatpush.bf16.msra.mxu2 %v6087_v2  ;;  %v6094_v7 = vld [vmem:[#allocation5 + $0xf0] sm:$0xff]  ;;  %v6085_v10 = vld [vmem:[#allocation5 + $0xa8] sm:$0xff]  ;;  %s5270_s28 = sshll.u32 %s5267_s27, 4  ;;  %s5271_s28 = int_to_ptr.hbm [resolvable:$true] %s5270_s28 }
  0x35   : > { %3553 = vmatpush.bf16.msra.mxu3 %v6095_v3  ;;  %v6093_v11 = vld [vmem:[#allocation5 + $0xe8] sm:$0xff]  ;;  %v6068_v12 = vld [vmem:[#allocation5 + $0x20] sm:$0xff]  ;;  %v6067_v16 = vld [vmem:[#allocation5 + $0x18] sm:$0xff]  ;;  %s6951_s5 = sshra.s32 %s5271_s28, 4  ;;  %s6952_s5 = int_to_ptr.hbm [resolvable:$true] %s6951_s5 }
  0x36   : > { %1190 = vmatpush.bf16.msra.mxu0 %v6070_v4  ;;  %v6076_v13 = vld [vmem:[#allocation5 + $0x60] sm:$0xff]  ;;  %v6075_v17 = vld [vmem:[#allocation5 + $0x58] sm:$0xff]  ;;  %v6066_v20 = vld [vmem:[#allocation5 + $0x10] sm:$0xff]  ;;  %s6953_s7 = scalar_lea.hbm %s6952_s5, 900  ;;  %p6958_p7 = scmp.lt.s32.totalorder %s6952_s5, %s7655_s3 }
  0x37   : > { %1828 = vmatpush.bf16.msra.mxu1 %v6078_v5  ;;  %v6084_v14 = vld [vmem:[#allocation5 + $0xa0] sm:$0xff]  ;;  %v6083_v18 = vld [vmem:[#allocation5 + $0x98] sm:$0xff]  ;;  %v6074_v21 = vld [vmem:[#allocation5 + $0x50] sm:$0xff]  ;;  %p6954_p1 = scmp.ne.s32.totalorder %s6952_s5, %s6953_s7  ;;  %p6959_p2 = scmp.lt.s32.totalorder %s6957_s24, %s6953_s7 }
  0x38   : > { %2691 = vmatpush.bf16.msra.mxu2 %v6086_v6  ;;  %v6092_v15 = vld [vmem:[#allocation5 + $0xe0] sm:$0xff]  ;;  %v6091_v19 = vld [vmem:[#allocation5 + $0xd8] sm:$0xff]  ;;  %v6082_v22 = vld [vmem:[#allocation5 + $0x90] sm:$0xff] }
  0x39   : > { %3554 = vmatpush.bf16.msra.mxu3 %v6094_v7  ;;  %v6090_v23 = vld [vmem:[#allocation5 + $0xd0] sm:$0xff]  ;;  %v6065_v24 = vld [vmem:[#allocation5 + $0x8] sm:$0xff]  ;;  %v6064_v28 = vld [vmem:[#allocation5] sm:$0xff]  ;;  %p6955_p4 = pnand %p6954_p1, %p7103_p0  ;;  %p6960_p9 = por %p6959_p2, %p6958_p7 }
  0x3a   : > { %1191 = vmatpush.bf16.msra.mxu0 %v6069_v8  ;;  %v6073_v25 = vld [vmem:[#allocation5 + $0x48] sm:$0xff]  ;;  %v6072_v29 = vld [vmem:[#allocation5 + $0x40] sm:$0xff]  ;;  %v5955_v35 = vld [vmem:[%s7142_s26 + $0x18] sm:$0xff] }
  0x3b   : > { %1829 = vmatpush.bf16.msra.mxu1 %v6077_v9  ;;  %v6081_v26 = vld [vmem:[#allocation5 + $0x88] sm:$0xff]  ;;  %v6080_v30 = vld [vmem:[#allocation5 + $0x80] sm:$0xff]  ;;  %v5959_v39 = vld [vmem:[%s7142_s26 + $0x38] sm:$0xff]  ;;  %p6956_p8 = pneg %p6955_p4 }
  0x3c   : > { %2692 = vmatpush.bf16.msra.mxu2 %v6085_v10  ;;  %v6089_v27 = vld [vmem:[#allocation5 + $0xc8] sm:$0xff]  ;;  %v6088_v31 = vld [vmem:[#allocation5 + $0xc0] sm:$0xff] }
  0x3d   : > { %3555 = vmatpush.bf16.msra.mxu3 %v6093_v11  ;;  %v5952_v32 = vld [vmem:[%s7142_s26] sm:$0xff]  ;;  %v5953_v33 = vld [vmem:[%s7142_s26 + $0x8] sm:$0xff]  ;;  %v5954_v34 = vld [vmem:[%s7142_s26 + $0x10] sm:$0xff]  ;;  %p6961_p10 = pnand %p6960_p9, %p6956_p8 }
  0x3e   : > { %1192 = vmatpush.bf16.msra.mxu0 %v6068_v12  ;;  %v5956_v36 = vld [vmem:[%s7142_s26 + $0x20] sm:$0xff]  ;;  %v5957_v37 = vld [vmem:[%s7142_s26 + $0x28] sm:$0xff]  ;;  %v5958_v38 = vld [vmem:[%s7142_s26 + $0x30] sm:$0xff] }
  0x3f   : > { %1830 = vmatpush.bf16.msra.mxu1 %v6076_v13  ;;  %v5960_v40 = vld [vmem:[%s7142_s26 + $0x40] sm:$0xff]  ;;  %v5961_v54 = vld [vmem:[%s7142_s26 + $0x48] sm:$0xff]  ;;  %v5962_v10 = vld [vmem:[%s7142_s26 + $0x50] sm:$0xff] }
  0x40   : > { %2693 = vmatpush.bf16.msra.mxu2 %v6084_v14  ;;  %v7161_v50 = vld [vmem:[#allocation7] ss:$0 sm:$0xff] }
  0x41   : > { %3556 = vmatpush.bf16.msra.mxu3 %v6092_v15 }
  0x42   : > { %1193 = vmatpush.bf16.msra.mxu0 %v6067_v16 }
  0x43   : > { %1831 = vmatpush.bf16.msra.mxu1 %v6075_v17 }
  0x44   : > { %2694 = vmatpush.bf16.msra.mxu2 %v6083_v18 }
  0x45   : > { %3557 = vmatpush.bf16.msra.mxu3 %v6091_v19 }
  0x46   : > { %1194 = vmatpush.bf16.msra.mxu0 %v6066_v20 }
  0x47   : > { %1832 = vmatpush.bf16.msra.mxu1 %v6074_v21 }
  0x48   : > { %2695 = vmatpush.bf16.msra.mxu2 %v6082_v22 }
  0x49   : > { %3558 = vmatpush.bf16.msra.mxu3 %v6090_v23 }
  0x4a   : > { %1195 = vmatpush.bf16.msra.mxu0 %v6065_v24 }
  0x4b   : > { %1833 = vmatpush.bf16.msra.mxu1 %v6073_v25 }
  0x4c   : > { %2696 = vmatpush.bf16.msra.mxu2 %v6081_v26 }
  0x4d   : > { %3559 = vmatpush.bf16.msra.mxu3 %v6089_v27 }
  0x4e   : > { %1196 = vmatpush.bf16.msra.mxu0 %v6064_v28 }
  0x4f   : > { %1834 = vmatpush.bf16.msra.mxu1 %v6072_v29 }
  0x50   : > { %2697 = vmatpush.bf16.msra.mxu2 %v6080_v30  ;;  %v5963_v30 = vld [vmem:[%s7142_s26 + $0x58] sm:$0xff] }
  0x51   : > { %3560 = vmatpush.bf16.msra.mxu3 %v6088_v31  ;;  %1197 = vmatmul.bf16.vlgmr.msra.gmra.mxu0 %v5952_v32 }
  0x52   : > { %1835 = vmatmul.bf16.vlgmr.msra.gmra.mxu1 %v5952_v32 }
  0x53   : > { %2698 = vmatmul.bf16.vlgmr.msra.gmra.mxu2 %v5952_v32 }
  0x54   : > { %3561 = vmatmul.bf16.vlgmr.msra.gmra.mxu3 %v5952_v32 }
  0x61   : > { %1202 = vmatmul.bf16.gmra.mxu0 %v5953_v33 }
  0x62   : > { %1840 = vmatmul.bf16.gmra.mxu1 %v5953_v33 }
  0x63   : > { %2703 = vmatmul.bf16.gmra.mxu2 %v5953_v33 }
  0x64   : > { %3566 = vmatmul.bf16.gmra.mxu3 %v5953_v33 }
  0x71   : > { %1207 = vmatmul.bf16.gmra.mxu0 %v5954_v34 }
  0x72   : > { %1845 = vmatmul.bf16.gmra.mxu1 %v5954_v34 }
  0x73   : > { %2708 = vmatmul.bf16.gmra.mxu2 %v5954_v34 }
  0x74   : > { %3571 = vmatmul.bf16.gmra.mxu3 %v5954_v34 }
  0x81   : > { %1212 = vmatmul.bf16.gmra.mxu0 %v5955_v35 }
  0x82   : > { %1850 = vmatmul.bf16.gmra.mxu1 %v5955_v35 }
  0x83   : > { %2713 = vmatmul.bf16.gmra.mxu2 %v5955_v35 }
  0x84   : > { %3576 = vmatmul.bf16.gmra.mxu3 %v5955_v35 }
  0x91   : > { %1217 = vmatmul.bf16.gmra.mxu0 %v5956_v36 }
  0x92   : > { %1855 = vmatmul.bf16.gmra.mxu1 %v5956_v36 }
  0x93   : > { %2718 = vmatmul.bf16.gmra.mxu2 %v5956_v36 }
  0x94   : > { %3581 = vmatmul.bf16.gmra.mxu3 %v5956_v36 }
  0xa1   : > { %1222 = vmatmul.bf16.gmra.mxu0 %v5957_v37 }
  0xa2   : > { %1860 = vmatmul.bf16.gmra.mxu1 %v5957_v37 }
  0xa3   : > { %2723 = vmatmul.bf16.gmra.mxu2 %v5957_v37 }
  0xa4   : > { %3586 = vmatmul.bf16.gmra.mxu3 %v5957_v37 }
  0xb1   : > { %1227 = vmatmul.bf16.gmra.mxu0 %v5958_v38 }
  0xb2   : > { %1865 = vmatmul.bf16.gmra.mxu1 %v5958_v38 }
  0xb3   : > { %2728 = vmatmul.bf16.gmra.mxu2 %v5958_v38 }
  0xb4   : > { %3591 = vmatmul.bf16.gmra.mxu3 %v5958_v38 }
  0xc1   : > { %1232 = vmatmul.bf16.gmra.mxu0 %v5959_v39 }
  0xc2   : > { %1870 = vmatmul.bf16.gmra.mxu1 %v5959_v39 }
  0xc3   : > { %2733 = vmatmul.bf16.gmra.mxu2 %v5959_v39 }
  0xc4   : > { %3596 = vmatmul.bf16.gmra.mxu3 %v5959_v39 }
  0xce   : > { %v1198_v41 = vpop.f32.mrf.mxu0 }
  0xcf   : > { %v1836_v42 = vpop.f32.mrf.mxu1 }
  0xd0   : > { %v2400_v43 = vmax.f32 %v1198_v41, %v1836_v42 }
  0xd1   : > { %1237 = vmatmul.bf16.gmra.mxu0 %v5960_v40 }
  0xd2   : > { %1875 = vmatmul.bf16.gmra.mxu1 %v5960_v40 }
  0xd3   : > { %2738 = vmatmul.bf16.gmra.mxu2 %v5960_v40 }
  0xd4   : > { %3601 = vmatmul.bf16.gmra.mxu3 %v5960_v40 }
  0xd6   : > { %v2699_v44 = vpop.f32.mrf.mxu2  ;;  %v1200_v46 = vpop.f32.mrf.mxu0 }
  0xd7   : > { %v3562_v45 = vpop.f32.mrf.mxu3  ;;  %v1838_v47 = vpop.f32.mrf.mxu1  ;;  %v3263_v48 = vmax.f32 %v2400_v43, %v2699_v44 }
  0xd8   : > { %v2401_v51 = vmax.f32 %v1200_v46, %v1838_v47 }
  0xd9   : > { %v4126_v49 = vmax.f32 %v3263_v48, %v3562_v45 }
  0xdb   : > { %v4355_v58 = vadd.f32 %v7161_v50, %v4126_v49 }
  0xdd   : > { %v4580_v61 = vmax.f32 %v4355_v58, 0.0 }
  0xde   : > { %v2701_v52 = vpop.f32.mrf.mxu2  ;;  %v1203_v56 = vpop.f32.mrf.mxu0 }
  0xdf   : > { %v3564_v53 = vpop.f32.mrf.mxu3  ;;  %v3264_v55 = vmax.f32 %v2401_v51, %v2701_v52  ;;  %v1841_v57 = vpop.f32.mrf.mxu1  ;;  %v5964_v51 = vld [vmem:[%s7142_s26 + $0x60] sm:$0xff] }
  0xe0   : > { %v2402_v63 = vmax.f32 %v1203_v56, %v1841_v57 }
  0xe1   : > { %v4127_v59 = vmax.f32 %v3264_v55, %v3564_v53  ;;  %1242 = vmatmul.bf16.gmra.mxu0 %v5961_v54 }
  0xe2   : > { %1880 = vmatmul.bf16.gmra.mxu1 %v5961_v54 }
  0xe3   : > { %v4356_v60 = vadd.f32 %v7161_v50, %v4127_v59  ;;  %2743 = vmatmul.bf16.gmra.mxu2 %v5961_v54 }
  0xe4   : > { %3606 = vmatmul.bf16.gmra.mxu3 %v5961_v54 }
  0xe5   : > { %v4581_v62 = vmax.f32 %v4356_v60, 0.0 }
  0xe6   : > { %v2704_v0 = vpop.f32.mrf.mxu2  ;;  %v1205_v3 = vpop.f32.mrf.mxu0 }
  0xe7   : > { %v3567_v1 = vpop.f32.mrf.mxu3  ;;  %v6100_v2 = vpack.c.bf16 %v4581_v62, %v4580_v61  ;;  %v1843_v4 = vpop.f32.mrf.mxu1  ;;  %v3265_v5 = vmax.f32 %v2402_v63, %v2704_v0 }
  0xe8   : > { %v2403_v7 = vmax.f32 %v1205_v3, %v1843_v4 }
  0xe9   : > { %6101 = vst [vmem:[%s7168_s18] sm:$0xff] %v6100_v2   ;;  %v4128_v6 = vmax.f32 %v3265_v5, %v3567_v1 }
  0xeb   : > { %v4357_v14 = vadd.f32 %v7161_v50, %v4128_v6 }
  0xed   : > { %v4582_v17 = vmax.f32 %v4357_v14, 0.0 }
  0xee   : > { %v2706_v8 = vpop.f32.mrf.mxu2  ;;  %v1208_v12 = vpop.f32.mrf.mxu0 }
  0xef   : > { %v3569_v9 = vpop.f32.mrf.mxu3  ;;  %v3266_v11 = vmax.f32 %v2403_v7, %v2706_v8  ;;  %v1846_v13 = vpop.f32.mrf.mxu1  ;;  %v5965_v7 = vld [vmem:[%s7142_s26 + $0x68] sm:$0xff] }
  0xf0   : > { %v2404_v19 = vmax.f32 %v1208_v12, %v1846_v13 }
  0xf1   : > { %v4129_v15 = vmax.f32 %v3266_v11, %v3569_v9  ;;  %1247 = vmatmul.bf16.gmra.mxu0 %v5962_v10 }
  0xf2   : > { %1885 = vmatmul.bf16.gmra.mxu1 %v5962_v10 }
  0xf3   : > { %v4358_v16 = vadd.f32 %v7161_v50, %v4129_v15  ;;  %2748 = vmatmul.bf16.gmra.mxu2 %v5962_v10 }
  0xf4   : > { %3611 = vmatmul.bf16.gmra.mxu3 %v5962_v10 }
  0xf5   : > { %v4583_v18 = vmax.f32 %v4358_v16, 0.0 }
  0xf6   : > { %v2709_v20 = vpop.f32.mrf.mxu2  ;;  %v1210_v23 = vpop.f32.mrf.mxu0 }
  0xf7   : > { %v3572_v21 = vpop.f32.mrf.mxu3  ;;  %v6105_v22 = vpack.c.bf16 %v4583_v18, %v4582_v17  ;;  %v1848_v24 = vpop.f32.mrf.mxu1  ;;  %v3267_v25 = vmax.f32 %v2404_v19, %v2709_v20 }
  0xf8   : > { %v2405_v27 = vmax.f32 %v1210_v23, %v1848_v24 }
  0xf9   : > { %6657 = vst [vmem:[%s7168_s18 + $0x8] sm:$0xff] %v6105_v22   ;;  %v4130_v26 = vmax.f32 %v3267_v25, %v3572_v21 }
  0xfb   : > { %v4359_v34 = vadd.f32 %v7161_v50, %v4130_v26 }
  0xfd   : > { %v4584_v37 = vmax.f32 %v4359_v34, 0.0 }
  0xfe   : > { %v2711_v28 = vpop.f32.mrf.mxu2  ;;  %v1213_v32 = vpop.f32.mrf.mxu0 }
  0xff   : > { %v3574_v29 = vpop.f32.mrf.mxu3  ;;  %v3268_v31 = vmax.f32 %v2405_v27, %v2711_v28  ;;  %v1851_v33 = vpop.f32.mrf.mxu1  ;;  %v5966_v27 = vld [vmem:[%s7142_s26 + $0x70] sm:$0xff] }
 0x100   : > { %v2406_v39 = vmax.f32 %v1213_v32, %v1851_v33 }
 0x101   : > { %v4131_v35 = vmax.f32 %v3268_v31, %v3574_v29  ;;  %1252 = vmatmul.bf16.gmra.mxu0 %v5963_v30 }
 0x102   : > { %1890 = vmatmul.bf16.gmra.mxu1 %v5963_v30 }
 0x103   : > { %v4360_v36 = vadd.f32 %v7161_v50, %v4131_v35  ;;  %2753 = vmatmul.bf16.gmra.mxu2 %v5963_v30 }
 0x104   : > { %3616 = vmatmul.bf16.gmra.mxu3 %v5963_v30 }
 0x105   : > { %v4585_v38 = vmax.f32 %v4360_v36, 0.0 }
 0x106   : > { %v2714_v40 = vpop.f32.mrf.mxu2  ;;  %v1215_v43 = vpop.f32.mrf.mxu0 }
 0x107   : > { %v3577_v41 = vpop.f32.mrf.mxu3  ;;  %v6110_v42 = vpack.c.bf16 %v4585_v38, %v4584_v37  ;;  %v1853_v44 = vpop.f32.mrf.mxu1  ;;  %v3269_v45 = vmax.f32 %v2406_v39, %v2714_v40 }
 0x108   : > { %v2407_v47 = vmax.f32 %v1215_v43, %v1853_v44 }
 0x109   : > { %6658 = vst [vmem:[%s7168_s18 + $0x10] sm:$0xff] %v6110_v42   ;;  %v4132_v46 = vmax.f32 %v3269_v45, %v3577_v41 }
 0x10b   : > { %v4361_v55 = vadd.f32 %v7161_v50, %v4132_v46 }
 0x10d   : > { %v4586_v58 = vmax.f32 %v4361_v55, 0.0 }
 0x10e   : > { %v2716_v48 = vpop.f32.mrf.mxu2  ;;  %v1218_v53 = vpop.f32.mrf.mxu0 }
 0x10f   : > { %v3579_v49 = vpop.f32.mrf.mxu3  ;;  %v3270_v52 = vmax.f32 %v2407_v47, %v2716_v48  ;;  %v1856_v54 = vpop.f32.mrf.mxu1  ;;  %v5967_v47 = vld [vmem:[%s7142_s26 + $0x78] sm:$0xff] }
 0x110   : > { %v2408_v60 = vmax.f32 %v1218_v53, %v1856_v54 }
 0x111   : > { %v4133_v56 = vmax.f32 %v3270_v52, %v3579_v49  ;;  %1257 = vmatmul.bf16.gmra.mxu0 %v5964_v51 }
 0x112   : > { %1895 = vmatmul.bf16.gmra.mxu1 %v5964_v51 }
 0x113   : > { %v4362_v57 = vadd.f32 %v7161_v50, %v4133_v56  ;;  %2758 = vmatmul.bf16.gmra.mxu2 %v5964_v51 }
 0x114   : > { %3621 = vmatmul.bf16.gmra.mxu3 %v5964_v51 }
 0x115   : > { %v4587_v59 = vmax.f32 %v4362_v57, 0.0 }
 0x116   : > { %v2719_v61 = vpop.f32.mrf.mxu2  ;;  %v1220_v0 = vpop.f32.mrf.mxu0 }
 0x117   : > { %v3582_v62 = vpop.f32.mrf.mxu3  ;;  %v6115_v63 = vpack.c.bf16 %v4587_v59, %v4586_v58  ;;  %v1858_v1 = vpop.f32.mrf.mxu1  ;;  %v3271_v2 = vmax.f32 %v2408_v60, %v2719_v61 }
 0x118   : > { %v2409_v4 = vmax.f32 %v1220_v0, %v1858_v1 }
 0x119   : > { %6659 = vst [vmem:[%s7168_s18 + $0x18] sm:$0xff] %v6115_v63   ;;  %v4134_v3 = vmax.f32 %v3271_v2, %v3582_v62 }
 0x11b   : > { %v4363_v11 = vadd.f32 %v7161_v50, %v4134_v3 }
 0x11d   : > { %v4588_v14 = vmax.f32 %v4363_v11, 0.0 }
 0x11e   : > { %v2721_v5 = vpop.f32.mrf.mxu2  ;;  %v1223_v9 = vpop.f32.mrf.mxu0 }
 0x11f   : > { %v3584_v6 = vpop.f32.mrf.mxu3  ;;  %v3272_v8 = vmax.f32 %v2409_v4, %v2721_v5  ;;  %v1861_v10 = vpop.f32.mrf.mxu1  ;;  %v5968_v4 = vld [vmem:[%s7142_s26 + $0x80] sm:$0xff] }
 0x120   : > { %v2410_v16 = vmax.f32 %v1223_v9, %v1861_v10 }
 0x121   : > { %v4135_v12 = vmax.f32 %v3272_v8, %v3584_v6  ;;  %1262 = vmatmul.bf16.gmra.mxu0 %v5965_v7 }
 0x122   : > { %1900 = vmatmul.bf16.gmra.mxu1 %v5965_v7 }
 0x123   : > { %v4364_v13 = vadd.f32 %v7161_v50, %v4135_v12  ;;  %2763 = vmatmul.bf16.gmra.mxu2 %v5965_v7 }
 0x124   : > { %3626 = vmatmul.bf16.gmra.mxu3 %v5965_v7 }
 0x125   : > { %v4589_v15 = vmax.f32 %v4364_v13, 0.0 }
 0x126   : > { %v2724_v17 = vpop.f32.mrf.mxu2  ;;  %v1225_v20 = vpop.f32.mrf.mxu0 }
 0x127   : > { %v3587_v18 = vpop.f32.mrf.mxu3  ;;  %v6120_v19 = vpack.c.bf16 %v4589_v15, %v4588_v14  ;;  %v1863_v21 = vpop.f32.mrf.mxu1  ;;  %v3273_v22 = vmax.f32 %v2410_v16, %v2724_v17 }
 0x128   : > { %v2411_v24 = vmax.f32 %v1225_v20, %v1863_v21 }
 0x129   : > { %6660 = vst [vmem:[%s7168_s18 + $0x20] sm:$0xff] %v6120_v19   ;;  %v4136_v23 = vmax.f32 %v3273_v22, %v3587_v18 }
 0x12b   : > { %v4365_v31 = vadd.f32 %v7161_v50, %v4136_v23 }
 0x12d   : > { %v4590_v34 = vmax.f32 %v4365_v31, 0.0 }
 0x12e   : > { %v2726_v25 = vpop.f32.mrf.mxu2  ;;  %v1228_v29 = vpop.f32.mrf.mxu0 }
 0x12f   : > { %v3589_v26 = vpop.f32.mrf.mxu3  ;;  %v3274_v28 = vmax.f32 %v2411_v24, %v2726_v25  ;;  %v1866_v30 = vpop.f32.mrf.mxu1  ;;  %v5969_v24 = vld [vmem:[%s7142_s26 + $0x88] sm:$0xff] }
 0x130   : > { %v2412_v36 = vmax.f32 %v1228_v29, %v1866_v30 }
 0x131   : > { %v4137_v32 = vmax.f32 %v3274_v28, %v3589_v26  ;;  %1267 = vmatmul.bf16.gmra.mxu0 %v5966_v27 }
 0x132   : > { %1905 = vmatmul.bf16.gmra.mxu1 %v5966_v27 }
 0x133   : > { %v4366_v33 = vadd.f32 %v7161_v50, %v4137_v32  ;;  %2768 = vmatmul.bf16.gmra.mxu2 %v5966_v27 }
 0x134   : > { %3631 = vmatmul.bf16.gmra.mxu3 %v5966_v27 }
 0x135   : > { %v4591_v35 = vmax.f32 %v4366_v33, 0.0 }
 0x136   : > { %v2729_v37 = vpop.f32.mrf.mxu2  ;;  %v1230_v40 = vpop.f32.mrf.mxu0 }
 0x137   : > { %v3592_v38 = vpop.f32.mrf.mxu3  ;;  %v6125_v39 = vpack.c.bf16 %v4591_v35, %v4590_v34  ;;  %v1868_v41 = vpop.f32.mrf.mxu1  ;;  %v3275_v42 = vmax.f32 %v2412_v36, %v2729_v37 }
 0x138   : > { %v2413_v44 = vmax.f32 %v1230_v40, %v1868_v41 }
 0x139   : > { %6661 = vst [vmem:[%s7168_s18 + $0x28] sm:$0xff] %v6125_v39   ;;  %v4138_v43 = vmax.f32 %v3275_v42, %v3592_v38 }
 0x13b   : > { %v4367_v52 = vadd.f32 %v7161_v50, %v4138_v43 }
 0x13d   : > { %v4592_v55 = vmax.f32 %v4367_v52, 0.0 }
 0x13e   : > { %v2731_v45 = vpop.f32.mrf.mxu2  ;;  %v1233_v49 = vpop.f32.mrf.mxu0 }
 0x13f   : > { %v3594_v46 = vpop.f32.mrf.mxu3  ;;  %v3276_v48 = vmax.f32 %v2413_v44, %v2731_v45  ;;  %v1871_v51 = vpop.f32.mrf.mxu1  ;;  %v5970_v44 = vld [vmem:[%s7142_s26 + $0x90] sm:$0xff] }
 0x140   : > { %v2414_v57 = vmax.f32 %v1233_v49, %v1871_v51 }
 0x141   : > { %v4139_v53 = vmax.f32 %v3276_v48, %v3594_v46  ;;  %1272 = vmatmul.bf16.gmra.mxu0 %v5967_v47 }
 0x142   : > { %1910 = vmatmul.bf16.gmra.mxu1 %v5967_v47 }
 0x143   : > { %v4368_v54 = vadd.f32 %v7161_v50, %v4139_v53  ;;  %2773 = vmatmul.bf16.gmra.mxu2 %v5967_v47 }
 0x144   : > { %3636 = vmatmul.bf16.gmra.mxu3 %v5967_v47 }
 0x145   : > { %v4593_v56 = vmax.f32 %v4368_v54, 0.0 }
 0x146   : > { %v2734_v58 = vpop.f32.mrf.mxu2  ;;  %v1235_v61 = vpop.f32.mrf.mxu0 }
 0x147   : > { %v3597_v59 = vpop.f32.mrf.mxu3  ;;  %v6130_v60 = vpack.c.bf16 %v4593_v56, %v4592_v55  ;;  %v1873_v62 = vpop.f32.mrf.mxu1  ;;  %v3277_v63 = vmax.f32 %v2414_v57, %v2734_v58 }
 0x148   : > { %v2415_v1 = vmax.f32 %v1235_v61, %v1873_v62 }
 0x149   : > { %6662 = vst [vmem:[%s7168_s18 + $0x30] sm:$0xff] %v6130_v60   ;;  %v4140_v0 = vmax.f32 %v3277_v63, %v3597_v59 }
 0x14b   : > { %v4369_v8 = vadd.f32 %v7161_v50, %v4140_v0 }
 0x14d   : > { %v4594_v11 = vmax.f32 %v4369_v8, 0.0 }
 0x14e   : > { %v2736_v2 = vpop.f32.mrf.mxu2  ;;  %v1238_v6 = vpop.f32.mrf.mxu0 }
 0x14f   : > { %v3599_v3 = vpop.f32.mrf.mxu3  ;;  %v3278_v5 = vmax.f32 %v2415_v1, %v2736_v2  ;;  %v1876_v7 = vpop.f32.mrf.mxu1  ;;  %v5971_v1 = vld [vmem:[%s7142_s26 + $0x98] sm:$0xff] }
 0x150   : > { %v2416_v13 = vmax.f32 %v1238_v6, %v1876_v7 }
 0x151   : > { %v4141_v9 = vmax.f32 %v3278_v5, %v3599_v3  ;;  %1277 = vmatmul.bf16.gmra.mxu0 %v5968_v4 }
 0x152   : > { %1915 = vmatmul.bf16.gmra.mxu1 %v5968_v4 }
 0x153   : > { %v4370_v10 = vadd.f32 %v7161_v50, %v4141_v9  ;;  %2778 = vmatmul.bf16.gmra.mxu2 %v5968_v4 }
 0x154   : > { %3641 = vmatmul.bf16.gmra.mxu3 %v5968_v4 }
 0x155   : > { %v4595_v12 = vmax.f32 %v4370_v10, 0.0 }
 0x156   : > { %v2739_v14 = vpop.f32.mrf.mxu2  ;;  %v1240_v17 = vpop.f32.mrf.mxu0 }
 0x157   : > { %v3602_v15 = vpop.f32.mrf.mxu3  ;;  %v6135_v16 = vpack.c.bf16 %v4595_v12, %v4594_v11  ;;  %v1878_v18 = vpop.f32.mrf.mxu1  ;;  %v3279_v19 = vmax.f32 %v2416_v13, %v2739_v14 }
 0x158   : > { %v2417_v21 = vmax.f32 %v1240_v17, %v1878_v18 }
 0x159   : > { %6663 = vst [vmem:[%s7168_s18 + $0x38] sm:$0xff] %v6135_v16   ;;  %v4142_v20 = vmax.f32 %v3279_v19, %v3602_v15 }
 0x15b   : > { %v4371_v28 = vadd.f32 %v7161_v50, %v4142_v20 }
 0x15d   : > { %v4596_v31 = vmax.f32 %v4371_v28, 0.0 }
 0x15e   : > { %v2741_v22 = vpop.f32.mrf.mxu2  ;;  %v1243_v26 = vpop.f32.mrf.mxu0 }
 0x15f   : > { %v3604_v23 = vpop.f32.mrf.mxu3  ;;  %v3280_v25 = vmax.f32 %v2417_v21, %v2741_v22  ;;  %v1881_v27 = vpop.f32.mrf.mxu1  ;;  %v5972_v21 = vld [vmem:[%s7142_s26 + $0xa0] sm:$0xff] }
 0x160   : > { %v2418_v33 = vmax.f32 %v1243_v26, %v1881_v27 }
 0x161   : > { %v4143_v29 = vmax.f32 %v3280_v25, %v3604_v23  ;;  %1282 = vmatmul.bf16.gmra.mxu0 %v5969_v24 }
 0x162   : > { %1920 = vmatmul.bf16.gmra.mxu1 %v5969_v24 }
 0x163   : > { %v4372_v30 = vadd.f32 %v7161_v50, %v4143_v29  ;;  %2783 = vmatmul.bf16.gmra.mxu2 %v5969_v24 }
 0x164   : > { %3646 = vmatmul.bf16.gmra.mxu3 %v5969_v24 }
 0x165   : > { %v4597_v32 = vmax.f32 %v4372_v30, 0.0 }
 0x166   : > { %v2744_v34 = vpop.f32.mrf.mxu2  ;;  %v1245_v37 = vpop.f32.mrf.mxu0 }
 0x167   : > { %v3607_v35 = vpop.f32.mrf.mxu3  ;;  %v6140_v36 = vpack.c.bf16 %v4597_v32, %v4596_v31  ;;  %v1883_v38 = vpop.f32.mrf.mxu1  ;;  %v3281_v39 = vmax.f32 %v2418_v33, %v2744_v34 }
 0x168   : > { %v2419_v41 = vmax.f32 %v1245_v37, %v1883_v38 }
 0x169   : > { %6664 = vst [vmem:[%s7168_s18 + $0x40] sm:$0xff] %v6140_v36   ;;  %v4144_v40 = vmax.f32 %v3281_v39, %v3607_v35 }
 0x16b   : > { %v4373_v48 = vadd.f32 %v7161_v50, %v4144_v40 }
 0x16d   : > { %v4598_v52 = vmax.f32 %v4373_v48, 0.0 }
 0x16e   : > { %v2746_v42 = vpop.f32.mrf.mxu2  ;;  %v1248_v46 = vpop.f32.mrf.mxu0 }
 0x16f   : > { %v3609_v43 = vpop.f32.mrf.mxu3  ;;  %v3282_v45 = vmax.f32 %v2419_v41, %v2746_v42  ;;  %v1886_v47 = vpop.f32.mrf.mxu1  ;;  %v5973_v41 = vld [vmem:[%s7142_s26 + $0xa8] sm:$0xff] }
 0x170   : > { %v2420_v54 = vmax.f32 %v1248_v46, %v1886_v47 }
 0x171   : > { %v4145_v49 = vmax.f32 %v3282_v45, %v3609_v43  ;;  %1287 = vmatmul.bf16.gmra.mxu0 %v5970_v44 }
 0x172   : > { %1925 = vmatmul.bf16.gmra.mxu1 %v5970_v44 }
 0x173   : > { %v4374_v51 = vadd.f32 %v7161_v50, %v4145_v49  ;;  %2788 = vmatmul.bf16.gmra.mxu2 %v5970_v44 }
 0x174   : > { %3651 = vmatmul.bf16.gmra.mxu3 %v5970_v44 }
 0x175   : > { %v4599_v53 = vmax.f32 %v4374_v51, 0.0 }
 0x176   : > { %v2749_v55 = vpop.f32.mrf.mxu2  ;;  %v1250_v58 = vpop.f32.mrf.mxu0 }
 0x177   : > { %v3612_v56 = vpop.f32.mrf.mxu3  ;;  %v6145_v57 = vpack.c.bf16 %v4599_v53, %v4598_v52  ;;  %v1888_v59 = vpop.f32.mrf.mxu1  ;;  %v3283_v60 = vmax.f32 %v2420_v54, %v2749_v55 }
 0x178   : > { %v2421_v62 = vmax.f32 %v1250_v58, %v1888_v59 }
 0x179   : > { %6665 = vst [vmem:[%s7168_s18 + $0x48] sm:$0xff] %v6145_v57   ;;  %v4146_v61 = vmax.f32 %v3283_v60, %v3612_v56 }
 0x17b   : > { %v4375_v5 = vadd.f32 %v7161_v50, %v4146_v61 }
 0x17d   : > { %v4600_v8 = vmax.f32 %v4375_v5, 0.0 }
 0x17e   : > { %v2751_v63 = vpop.f32.mrf.mxu2  ;;  %v1253_v3 = vpop.f32.mrf.mxu0 }
 0x17f   : > { %v3614_v0 = vpop.f32.mrf.mxu3  ;;  %v3284_v2 = vmax.f32 %v2421_v62, %v2751_v63  ;;  %v1891_v4 = vpop.f32.mrf.mxu1  ;;  %v5974_v62 = vld [vmem:[%s7142_s26 + $0xb0] sm:$0xff] }
 0x180   : > { %v2422_v10 = vmax.f32 %v1253_v3, %v1891_v4 }
 0x181   : > { %v4147_v6 = vmax.f32 %v3284_v2, %v3614_v0  ;;  %1292 = vmatmul.bf16.gmra.mxu0 %v5971_v1 }
 0x182   : > { %1930 = vmatmul.bf16.gmra.mxu1 %v5971_v1 }
 0x183   : > { %v4376_v7 = vadd.f32 %v7161_v50, %v4147_v6  ;;  %2793 = vmatmul.bf16.gmra.mxu2 %v5971_v1 }
 0x184   : > { %3656 = vmatmul.bf16.gmra.mxu3 %v5971_v1 }
 0x185   : > { %v4601_v9 = vmax.f32 %v4376_v7, 0.0 }
 0x186   : > { %v2754_v11 = vpop.f32.mrf.mxu2  ;;  %v1255_v14 = vpop.f32.mrf.mxu0 }
 0x187   : > { %v3617_v12 = vpop.f32.mrf.mxu3  ;;  %v6150_v13 = vpack.c.bf16 %v4601_v9, %v4600_v8  ;;  %v1893_v15 = vpop.f32.mrf.mxu1  ;;  %v3285_v16 = vmax.f32 %v2422_v10, %v2754_v11 }
 0x188   : > { %v2423_v18 = vmax.f32 %v1255_v14, %v1893_v15 }
 0x189   : > { %6666 = vst [vmem:[%s7168_s18 + $0x50] sm:$0xff] %v6150_v13   ;;  %v4148_v17 = vmax.f32 %v3285_v16, %v3617_v12 }
 0x18b   : > { %v4377_v25 = vadd.f32 %v7161_v50, %v4148_v17 }
 0x18d   : > { %v4602_v28 = vmax.f32 %v4377_v25, 0.0 }
 0x18e   : > { %v2756_v19 = vpop.f32.mrf.mxu2  ;;  %v1258_v23 = vpop.f32.mrf.mxu0 }
 0x18f   : > { %v3619_v20 = vpop.f32.mrf.mxu3  ;;  %v3286_v22 = vmax.f32 %v2423_v18, %v2756_v19  ;;  %v1896_v24 = vpop.f32.mrf.mxu1  ;;  %v5975_v18 = vld [vmem:[%s7142_s26 + $0xb8] sm:$0xff] }
 0x190   : > { %v2424_v30 = vmax.f32 %v1258_v23, %v1896_v24 }
 0x191   : > { %v4149_v26 = vmax.f32 %v3286_v22, %v3619_v20  ;;  %1297 = vmatmul.bf16.gmra.mxu0 %v5972_v21 }
 0x192   : > { %1935 = vmatmul.bf16.gmra.mxu1 %v5972_v21 }
 0x193   : > { %v4378_v27 = vadd.f32 %v7161_v50, %v4149_v26  ;;  %2798 = vmatmul.bf16.gmra.mxu2 %v5972_v21 }
 0x194   : > { %3661 = vmatmul.bf16.gmra.mxu3 %v5972_v21 }
 0x195   : > { %v4603_v29 = vmax.f32 %v4378_v27, 0.0 }
 0x196   : > { %v2759_v31 = vpop.f32.mrf.mxu2  ;;  %v1260_v34 = vpop.f32.mrf.mxu0 }
 0x197   : > { %v3622_v32 = vpop.f32.mrf.mxu3  ;;  %v6155_v33 = vpack.c.bf16 %v4603_v29, %v4602_v28  ;;  %v1898_v35 = vpop.f32.mrf.mxu1  ;;  %v3287_v36 = vmax.f32 %v2424_v30, %v2759_v31 }
 0x198   : > { %v2425_v38 = vmax.f32 %v1260_v34, %v1898_v35 }
 0x199   : > { %6667 = vst [vmem:[%s7168_s18 + $0x58] sm:$0xff] %v6155_v33   ;;  %v4150_v37 = vmax.f32 %v3287_v36, %v3622_v32 }
 0x19b   : > { %v4379_v45 = vadd.f32 %v7161_v50, %v4150_v37 }
 0x19d   : > { %v4604_v48 = vmax.f32 %v4379_v45, 0.0 }
 0x19e   : > { %v2761_v39 = vpop.f32.mrf.mxu2  ;;  %v1263_v43 = vpop.f32.mrf.mxu0 }
 0x19f   : > { %v3624_v40 = vpop.f32.mrf.mxu3  ;;  %v3288_v42 = vmax.f32 %v2425_v38, %v2761_v39  ;;  %v1901_v44 = vpop.f32.mrf.mxu1  ;;  %v5976_v38 = vld [vmem:[%s7142_s26 + $0xc0] sm:$0xff] }
 0x1a0   : > { %v2426_v51 = vmax.f32 %v1263_v43, %v1901_v44 }
 0x1a1   : > { %v4151_v46 = vmax.f32 %v3288_v42, %v3624_v40  ;;  %1302 = vmatmul.bf16.gmra.mxu0 %v5973_v41 }
 0x1a2   : > { %1940 = vmatmul.bf16.gmra.mxu1 %v5973_v41 }
 0x1a3   : > { %v4380_v47 = vadd.f32 %v7161_v50, %v4151_v46  ;;  %2803 = vmatmul.bf16.gmra.mxu2 %v5973_v41 }
 0x1a4   : > { %3666 = vmatmul.bf16.gmra.mxu3 %v5973_v41 }
 0x1a5   : > { %v4605_v49 = vmax.f32 %v4380_v47, 0.0 }
 0x1a6   : > { %v2764_v52 = vpop.f32.mrf.mxu2  ;;  %v1265_v55 = vpop.f32.mrf.mxu0 }
 0x1a7   : > { %v3627_v53 = vpop.f32.mrf.mxu3  ;;  %v6160_v54 = vpack.c.bf16 %v4605_v49, %v4604_v48  ;;  %v1903_v56 = vpop.f32.mrf.mxu1  ;;  %v3289_v57 = vmax.f32 %v2426_v51, %v2764_v52 }
 0x1a8   : > { %v2427_v59 = vmax.f32 %v1265_v55, %v1903_v56 }
 0x1a9   : > { %6668 = vst [vmem:[%s7168_s18 + $0x60] sm:$0xff] %v6160_v54   ;;  %v4152_v58 = vmax.f32 %v3289_v57, %v3627_v53 }
 0x1ab   : > { %v4381_v2 = vadd.f32 %v7161_v50, %v4152_v58 }
 0x1ad   : > { %v4606_v5 = vmax.f32 %v4381_v2, 0.0 }
 0x1ae   : > { %v2766_v60 = vpop.f32.mrf.mxu2  ;;  %v1268_v0 = vpop.f32.mrf.mxu0 }
 0x1af   : > { %v3629_v61 = vpop.f32.mrf.mxu3  ;;  %v3290_v63 = vmax.f32 %v2427_v59, %v2766_v60  ;;  %v1906_v1 = vpop.f32.mrf.mxu1  ;;  %v5977_v59 = vld [vmem:[%s7142_s26 + $0xc8] sm:$0xff] }
 0x1b0   : > { %v2428_v7 = vmax.f32 %v1268_v0, %v1906_v1 }
 0x1b1   : > { %v4153_v3 = vmax.f32 %v3290_v63, %v3629_v61  ;;  %1307 = vmatmul.bf16.gmra.mxu0 %v5974_v62 }
 0x1b2   : > { %1945 = vmatmul.bf16.gmra.mxu1 %v5974_v62 }
 0x1b3   : > { %v4382_v4 = vadd.f32 %v7161_v50, %v4153_v3  ;;  %2808 = vmatmul.bf16.gmra.mxu2 %v5974_v62 }
 0x1b4   : > { %3671 = vmatmul.bf16.gmra.mxu3 %v5974_v62 }
 0x1b5   : > { %v4607_v6 = vmax.f32 %v4382_v4, 0.0 }
 0x1b6   : > { %v2769_v8 = vpop.f32.mrf.mxu2  ;;  %v1270_v11 = vpop.f32.mrf.mxu0 }
 0x1b7   : > { %v3632_v9 = vpop.f32.mrf.mxu3  ;;  %v6165_v10 = vpack.c.bf16 %v4607_v6, %v4606_v5  ;;  %v1908_v12 = vpop.f32.mrf.mxu1  ;;  %v3291_v13 = vmax.f32 %v2428_v7, %v2769_v8 }
 0x1b8   : > { %v2429_v15 = vmax.f32 %v1270_v11, %v1908_v12 }
 0x1b9   : > { %6669 = vst [vmem:[%s7168_s18 + $0x68] sm:$0xff] %v6165_v10   ;;  %v4154_v14 = vmax.f32 %v3291_v13, %v3632_v9 }
 0x1bb   : > { %v4383_v22 = vadd.f32 %v7161_v50, %v4154_v14 }
 0x1bd   : > { %v4608_v25 = vmax.f32 %v4383_v22, 0.0 }
 0x1be   : > { %v2771_v16 = vpop.f32.mrf.mxu2  ;;  %v1273_v20 = vpop.f32.mrf.mxu0 }
 0x1bf   : > { %v3634_v17 = vpop.f32.mrf.mxu3  ;;  %v3292_v19 = vmax.f32 %v2429_v15, %v2771_v16  ;;  %v1911_v21 = vpop.f32.mrf.mxu1  ;;  %v5978_v15 = vld [vmem:[%s7142_s26 + $0xd0] sm:$0xff] }
 0x1c0   : > { %v2430_v27 = vmax.f32 %v1273_v20, %v1911_v21 }
 0x1c1   : > { %v4155_v23 = vmax.f32 %v3292_v19, %v3634_v17  ;;  %1312 = vmatmul.bf16.gmra.mxu0 %v5975_v18 }
 0x1c2   : > { %1950 = vmatmul.bf16.gmra.mxu1 %v5975_v18 }
 0x1c3   : > { %v4384_v24 = vadd.f32 %v7161_v50, %v4155_v23  ;;  %2813 = vmatmul.bf16.gmra.mxu2 %v5975_v18 }
 0x1c4   : > { %3676 = vmatmul.bf16.gmra.mxu3 %v5975_v18 }
 0x1c5   : > { %v4609_v26 = vmax.f32 %v4384_v24, 0.0 }
 0x1c6   : > { %v2774_v28 = vpop.f32.mrf.mxu2  ;;  %v1275_v31 = vpop.f32.mrf.mxu0 }
 0x1c7   : > { %v3637_v29 = vpop.f32.mrf.mxu3  ;;  %v6170_v30 = vpack.c.bf16 %v4609_v26, %v4608_v25  ;;  %v1913_v32 = vpop.f32.mrf.mxu1  ;;  %v3293_v33 = vmax.f32 %v2430_v27, %v2774_v28 }
 0x1c8   : > { %v2431_v35 = vmax.f32 %v1275_v31, %v1913_v32 }
 0x1c9   : > { %6670 = vst [vmem:[%s7168_s18 + $0x70] sm:$0xff] %v6170_v30   ;;  %v4156_v34 = vmax.f32 %v3293_v33, %v3637_v29 }
 0x1cb   : > { %v4385_v42 = vadd.f32 %v7161_v50, %v4156_v34 }
 0x1cd   : > { %v4610_v45 = vmax.f32 %v4385_v42, 0.0 }
 0x1ce   : > { %v2776_v36 = vpop.f32.mrf.mxu2  ;;  %v1278_v40 = vpop.f32.mrf.mxu0 }
 0x1cf   : > { %v3639_v37 = vpop.f32.mrf.mxu3  ;;  %v3294_v39 = vmax.f32 %v2431_v35, %v2776_v36  ;;  %v1916_v41 = vpop.f32.mrf.mxu1  ;;  %v5979_v35 = vld [vmem:[%s7142_s26 + $0xd8] sm:$0xff] }
 0x1d0   : > { %v2432_v47 = vmax.f32 %v1278_v40, %v1916_v41 }
 0x1d1   : > { %v4157_v43 = vmax.f32 %v3294_v39, %v3639_v37  ;;  %1317 = vmatmul.bf16.gmra.mxu0 %v5976_v38 }
 0x1d2   : > { %1955 = vmatmul.bf16.gmra.mxu1 %v5976_v38 }
 0x1d3   : > { %v4386_v44 = vadd.f32 %v7161_v50, %v4157_v43  ;;  %2818 = vmatmul.bf16.gmra.mxu2 %v5976_v38 }
 0x1d4   : > { %3681 = vmatmul.bf16.gmra.mxu3 %v5976_v38 }
 0x1d5   : > { %v4611_v46 = vmax.f32 %v4386_v44, 0.0 }
 0x1d6   : > { %v2779_v48 = vpop.f32.mrf.mxu2  ;;  %v1280_v52 = vpop.f32.mrf.mxu0 }
 0x1d7   : > { %v3642_v49 = vpop.f32.mrf.mxu3  ;;  %v6175_v51 = vpack.c.bf16 %v4611_v46, %v4610_v45  ;;  %v1918_v53 = vpop.f32.mrf.mxu1  ;;  %v3295_v54 = vmax.f32 %v2432_v47, %v2779_v48 }
 0x1d8   : > { %v2433_v56 = vmax.f32 %v1280_v52, %v1918_v53 }
 0x1d9   : > { %6671 = vst [vmem:[%s7168_s18 + $0x78] sm:$0xff] %v6175_v51   ;;  %v4158_v55 = vmax.f32 %v3295_v54, %v3642_v49 }
 0x1db   : > { %v4387_v63 = vadd.f32 %v7161_v50, %v4158_v55 }
 0x1dd   : > { %v4612_v2 = vmax.f32 %v4387_v63, 0.0 }
 0x1de   : > { %v2781_v57 = vpop.f32.mrf.mxu2  ;;  %v1283_v61 = vpop.f32.mrf.mxu0 }
 0x1df   : > { %v3644_v58 = vpop.f32.mrf.mxu3  ;;  %v3296_v60 = vmax.f32 %v2433_v56, %v2781_v57  ;;  %v1921_v62 = vpop.f32.mrf.mxu1  ;;  %v5980_v56 = vld [vmem:[%s7142_s26 + $0xe0] sm:$0xff] }
 0x1e0   : > { %v2434_v4 = vmax.f32 %v1283_v61, %v1921_v62 }
 0x1e1   : > { %v4159_v0 = vmax.f32 %v3296_v60, %v3644_v58  ;;  %1322 = vmatmul.bf16.gmra.mxu0 %v5977_v59 }
 0x1e2   : > { %1960 = vmatmul.bf16.gmra.mxu1 %v5977_v59 }
 0x1e3   : > { %v4388_v1 = vadd.f32 %v7161_v50, %v4159_v0  ;;  %2823 = vmatmul.bf16.gmra.mxu2 %v5977_v59 }
 0x1e4   : > { %3686 = vmatmul.bf16.gmra.mxu3 %v5977_v59 }
 0x1e5   : > { %v4613_v3 = vmax.f32 %v4388_v1, 0.0 }
 0x1e6   : > { %v2784_v5 = vpop.f32.mrf.mxu2  ;;  %v1285_v8 = vpop.f32.mrf.mxu0 }
 0x1e7   : > { %v3647_v6 = vpop.f32.mrf.mxu3  ;;  %v6180_v7 = vpack.c.bf16 %v4613_v3, %v4612_v2  ;;  %v1923_v9 = vpop.f32.mrf.mxu1  ;;  %v3297_v10 = vmax.f32 %v2434_v4, %v2784_v5 }
 0x1e8   : > { %v2435_v12 = vmax.f32 %v1285_v8, %v1923_v9 }
 0x1e9   : > { %6672 = vst [vmem:[%s7168_s18 + $0x80] sm:$0xff] %v6180_v7   ;;  %v4160_v11 = vmax.f32 %v3297_v10, %v3647_v6 }
 0x1eb   : > { %v4389_v19 = vadd.f32 %v7161_v50, %v4160_v11 }
 0x1ed   : > { %v4614_v22 = vmax.f32 %v4389_v19, 0.0 }
 0x1ee   : > { %v2786_v13 = vpop.f32.mrf.mxu2  ;;  %v1288_v17 = vpop.f32.mrf.mxu0 }
 0x1ef   : > { %v3649_v14 = vpop.f32.mrf.mxu3  ;;  %v3298_v16 = vmax.f32 %v2435_v12, %v2786_v13  ;;  %v1926_v18 = vpop.f32.mrf.mxu1  ;;  %v5981_v12 = vld [vmem:[%s7142_s26 + $0xe8] sm:$0xff] }
 0x1f0   : > { %v2436_v24 = vmax.f32 %v1288_v17, %v1926_v18  ;;  %v7249_v18 = vld [vmem:[#allocation7] ss:$0 sm:$0xff] }
 0x1f1   : > { %v4161_v20 = vmax.f32 %v3298_v16, %v3649_v14  ;;  %1327 = vmatmul.bf16.gmra.mxu0 %v5978_v15 }
 0x1f2   : > { %1965 = vmatmul.bf16.gmra.mxu1 %v5978_v15 }
 0x1f3   : > { %v4390_v21 = vadd.f32 %v7161_v50, %v4161_v20  ;;  %2828 = vmatmul.bf16.gmra.mxu2 %v5978_v15 }
 0x1f4   : > { %3691 = vmatmul.bf16.gmra.mxu3 %v5978_v15 }
 0x1f5   : > { %v4615_v23 = vmax.f32 %v4390_v21, 0.0 }
 0x1f6   : > { %v2789_v25 = vpop.f32.mrf.mxu2  ;;  %v1290_v28 = vpop.f32.mrf.mxu0 }
 0x1f7   : > { %v3652_v26 = vpop.f32.mrf.mxu3  ;;  %v6185_v27 = vpack.c.bf16 %v4615_v23, %v4614_v22  ;;  %v1928_v29 = vpop.f32.mrf.mxu1  ;;  %v3299_v30 = vmax.f32 %v2436_v24, %v2789_v25 }
 0x1f8   : > { %v2437_v32 = vmax.f32 %v1290_v28, %v1928_v29 }
 0x1f9   : > { %6673 = vst [vmem:[%s7168_s18 + $0x88] sm:$0xff] %v6185_v27   ;;  %v4162_v31 = vmax.f32 %v3299_v30, %v3652_v26 }
 0x1fb   : > { %v4391_v39 = vadd.f32 %v7161_v50, %v4162_v31 }
 0x1fd   : > { %v4616_v42 = vmax.f32 %v4391_v39, 0.0 }
 0x1fe   : > { %v2791_v33 = vpop.f32.mrf.mxu2  ;;  %v1293_v37 = vpop.f32.mrf.mxu0 }
 0x1ff   : > { %v3654_v34 = vpop.f32.mrf.mxu3  ;;  %v3300_v36 = vmax.f32 %v2437_v32, %v2791_v33  ;;  %v1931_v38 = vpop.f32.mrf.mxu1  ;;  %v5982_v32 = vld [vmem:[%s7142_s26 + $0xf0] sm:$0xff] }
 0x200   : > { %v2438_v44 = vmax.f32 %v1293_v37, %v1931_v38 }
 0x201   : > { %v4163_v40 = vmax.f32 %v3300_v36, %v3654_v34  ;;  %1332 = vmatmul.bf16.gmra.mxu0 %v5979_v35 }
 0x202   : > { %1970 = vmatmul.bf16.gmra.mxu1 %v5979_v35 }
 0x203   : > { %v4392_v41 = vadd.f32 %v7161_v50, %v4163_v40  ;;  %2833 = vmatmul.bf16.gmra.mxu2 %v5979_v35 }
 0x204   : > { %3696 = vmatmul.bf16.gmra.mxu3 %v5979_v35 }
 0x205   : > { %v4617_v43 = vmax.f32 %v4392_v41, 0.0 }
 0x206   : > { %v2794_v45 = vpop.f32.mrf.mxu2  ;;  %v1295_v48 = vpop.f32.mrf.mxu0 }
 0x207   : > { %v3657_v46 = vpop.f32.mrf.mxu3  ;;  %v6190_v47 = vpack.c.bf16 %v4617_v43, %v4616_v42  ;;  %v1933_v49 = vpop.f32.mrf.mxu1  ;;  %v3301_v51 = vmax.f32 %v2438_v44, %v2794_v45 }
 0x208   : > { %v2439_v53 = vmax.f32 %v1295_v48, %v1933_v49 }
 0x209   : > { %6674 = vst [vmem:[%s7168_s18 + $0x90] sm:$0xff] %v6190_v47   ;;  %v4164_v52 = vmax.f32 %v3301_v51, %v3657_v46 }
 0x20b   : > { %v4393_v60 = vadd.f32 %v7161_v50, %v4164_v52 }
 0x20d   : > { %v4618_v63 = vmax.f32 %v4393_v60, 0.0 }
 0x20e   : > { %v2796_v54 = vpop.f32.mrf.mxu2  ;;  %v1298_v58 = vpop.f32.mrf.mxu0 }
 0x20f   : > { %v3659_v55 = vpop.f32.mrf.mxu3  ;;  %v3302_v57 = vmax.f32 %v2439_v53, %v2796_v54  ;;  %v1936_v59 = vpop.f32.mrf.mxu1  ;;  %v5983_v53 = vld [vmem:[%s7142_s26 + $0xf8] sm:$0xff] }
 0x210   : > { %v2440_v1 = vmax.f32 %v1298_v58, %v1936_v59 }
 0x211   : > { %v4165_v61 = vmax.f32 %v3302_v57, %v3659_v55  ;;  %1337 = vmatmul.bf16.gmra.mxu0 %v5980_v56 }
 0x212   : > { %1975 = vmatmul.bf16.gmra.mxu1 %v5980_v56 }
 0x213   : > { %v4394_v62 = vadd.f32 %v7161_v50, %v4165_v61  ;;  %2838 = vmatmul.bf16.gmra.mxu2 %v5980_v56 }
 0x214   : > { %3701 = vmatmul.bf16.gmra.mxu3 %v5980_v56 }
 0x215   : > { %v4619_v0 = vmax.f32 %v4394_v62, 0.0 }
 0x216   : > { %v2799_v2 = vpop.f32.mrf.mxu2  ;;  %v1300_v5 = vpop.f32.mrf.mxu0 }
 0x217   : > { %v3662_v3 = vpop.f32.mrf.mxu3  ;;  %v6195_v4 = vpack.c.bf16 %v4619_v0, %v4618_v63  ;;  %v1938_v6 = vpop.f32.mrf.mxu1  ;;  %v3303_v7 = vmax.f32 %v2440_v1, %v2799_v2 }
 0x218   : > { %v2441_v9 = vmax.f32 %v1300_v5, %v1938_v6 }
 0x219   : > { %6675 = vst [vmem:[%s7168_s18 + $0x98] sm:$0xff] %v6195_v4   ;;  %v4166_v8 = vmax.f32 %v3303_v7, %v3662_v3 }
 0x21b   : > { %v4395_v16 = vadd.f32 %v7161_v50, %v4166_v8 }
 0x21d   : > { %v4620_v20 = vmax.f32 %v4395_v16, 0.0 }
 0x21e   : > { %v2801_v10 = vpop.f32.mrf.mxu2  ;;  %v1303_v14 = vpop.f32.mrf.mxu0 }
 0x21f   : > { %v3664_v11 = vpop.f32.mrf.mxu3  ;;  %v3304_v13 = vmax.f32 %v2441_v9, %v2801_v10  ;;  %v1941_v15 = vpop.f32.mrf.mxu1  ;;  %v5984_v9 = vld [vmem:[%s7142_s26 + $0x100] sm:$0xff] }
 0x220   : > { %v2442_v22 = vmax.f32 %v1303_v14, %v1941_v15 }
 0x221   : > { %v4167_v17 = vmax.f32 %v3304_v13, %v3664_v11  ;;  %1342 = vmatmul.bf16.gmra.mxu0 %v5981_v12 }
 0x222   : > { %1980 = vmatmul.bf16.gmra.mxu1 %v5981_v12 }
 0x223   : > { %v4396_v19 = vadd.f32 %v7249_v18, %v4167_v17  ;;  %2843 = vmatmul.bf16.gmra.mxu2 %v5981_v12 }
 0x224   : > { %3706 = vmatmul.bf16.gmra.mxu3 %v5981_v12 }
 0x225   : > { %v4621_v21 = vmax.f32 %v4396_v19, 0.0 }
 0x226   : > { %v2804_v23 = vpop.f32.mrf.mxu2  ;;  %v1305_v26 = vpop.f32.mrf.mxu0 }
 0x227   : > { %v3667_v24 = vpop.f32.mrf.mxu3  ;;  %v6200_v25 = vpack.c.bf16 %v4621_v21, %v4620_v20  ;;  %v1943_v27 = vpop.f32.mrf.mxu1  ;;  %v3305_v50 = vmax.f32 %v2442_v22, %v2804_v23 }
 0x228   : > { %v2443_v29 = vmax.f32 %v1305_v26, %v1943_v27 }
 0x229   : > { %6676 = vst [vmem:[%s7168_s18 + $0xa0] sm:$0xff] %v6200_v25   ;;  %v4168_v28 = vmax.f32 %v3305_v50, %v3667_v24 }
 0x22b   : > { %v4397_v36 = vadd.f32 %v7249_v18, %v4168_v28 }
 0x22d   : > { %v4622_v39 = vmax.f32 %v4397_v36, 0.0 }
 0x22e   : > { %v2806_v30 = vpop.f32.mrf.mxu2  ;;  %v1308_v34 = vpop.f32.mrf.mxu0 }
 0x22f   : > { %v3669_v31 = vpop.f32.mrf.mxu3  ;;  %v3306_v33 = vmax.f32 %v2443_v29, %v2806_v30  ;;  %v1946_v35 = vpop.f32.mrf.mxu1  ;;  %v5985_v29 = vld [vmem:[%s7142_s26 + $0x108] sm:$0xff] }
 0x230   : > { %v2444_v41 = vmax.f32 %v1308_v34, %v1946_v35 }
 0x231   : > { %v4169_v37 = vmax.f32 %v3306_v33, %v3669_v31  ;;  %1347 = vmatmul.bf16.gmra.mxu0 %v5982_v32 }
 0x232   : > { %1985 = vmatmul.bf16.gmra.mxu1 %v5982_v32 }
 0x233   : > { %v4398_v38 = vadd.f32 %v7249_v18, %v4169_v37  ;;  %2848 = vmatmul.bf16.gmra.mxu2 %v5982_v32 }
 0x234   : > { %3711 = vmatmul.bf16.gmra.mxu3 %v5982_v32 }
 0x235   : > { %v4623_v40 = vmax.f32 %v4398_v38, 0.0 }
 0x236   : > { %v2809_v42 = vpop.f32.mrf.mxu2  ;;  %v1310_v45 = vpop.f32.mrf.mxu0 }
 0x237   : > { %v3672_v43 = vpop.f32.mrf.mxu3  ;;  %v6205_v44 = vpack.c.bf16 %v4623_v40, %v4622_v39  ;;  %v1948_v46 = vpop.f32.mrf.mxu1  ;;  %v3307_v47 = vmax.f32 %v2444_v41, %v2809_v42 }
 0x238   : > { %v2445_v49 = vmax.f32 %v1310_v45, %v1948_v46 }
 0x239   : > { %6677 = vst [vmem:[%s7168_s18 + $0xa8] sm:$0xff] %v6205_v44   ;;  %v4170_v48 = vmax.f32 %v3307_v47, %v3672_v43 }
 0x23b   : > { %v4399_v57 = vadd.f32 %v7249_v18, %v4170_v48 }
 0x23d   : > { %v4624_v60 = vmax.f32 %v4399_v57, 0.0 }
 0x23e   : > { %v2811_v51 = vpop.f32.mrf.mxu2  ;;  %v1313_v55 = vpop.f32.mrf.mxu0 }
 0x23f   : > { %v3674_v52 = vpop.f32.mrf.mxu3  ;;  %v3308_v54 = vmax.f32 %v2445_v49, %v2811_v51  ;;  %v1951_v56 = vpop.f32.mrf.mxu1  ;;  %v5986_v49 = vld [vmem:[%s7142_s26 + $0x110] sm:$0xff] }
 0x240   : > { %v2446_v62 = vmax.f32 %v1313_v55, %v1951_v56 }
 0x241   : > { %v4171_v58 = vmax.f32 %v3308_v54, %v3674_v52  ;;  %1352 = vmatmul.bf16.gmra.mxu0 %v5983_v53 }
 0x242   : > { %1990 = vmatmul.bf16.gmra.mxu1 %v5983_v53 }
 0x243   : > { %v4400_v59 = vadd.f32 %v7249_v18, %v4171_v58  ;;  %2853 = vmatmul.bf16.gmra.mxu2 %v5983_v53 }
 0x244   : > { %3716 = vmatmul.bf16.gmra.mxu3 %v5983_v53 }
 0x245   : > { %v4625_v61 = vmax.f32 %v4400_v59, 0.0 }
 0x246   : > { %v2814_v63 = vpop.f32.mrf.mxu2  ;;  %v1315_v2 = vpop.f32.mrf.mxu0 }
 0x247   : > { %v3677_v0 = vpop.f32.mrf.mxu3  ;;  %v6210_v1 = vpack.c.bf16 %v4625_v61, %v4624_v60  ;;  %v1953_v3 = vpop.f32.mrf.mxu1  ;;  %v3309_v4 = vmax.f32 %v2446_v62, %v2814_v63 }
 0x248   : > { %v2447_v6 = vmax.f32 %v1315_v2, %v1953_v3 }
 0x249   : > { %6678 = vst [vmem:[%s7168_s18 + $0xb0] sm:$0xff] %v6210_v1   ;;  %v4172_v5 = vmax.f32 %v3309_v4, %v3677_v0 }
 0x24b   : > { %v4401_v13 = vadd.f32 %v7249_v18, %v4172_v5 }
 0x24d   : > { %v4626_v16 = vmax.f32 %v4401_v13, 0.0 }
 0x24e   : > { %v2816_v7 = vpop.f32.mrf.mxu2  ;;  %v1318_v11 = vpop.f32.mrf.mxu0 }
 0x24f   : > { %v3679_v8 = vpop.f32.mrf.mxu3  ;;  %v3310_v10 = vmax.f32 %v2447_v6, %v2816_v7  ;;  %v1956_v12 = vpop.f32.mrf.mxu1  ;;  %v5987_v6 = vld [vmem:[%s7142_s26 + $0x118] sm:$0xff] }
 0x250   : > { %v2448_v19 = vmax.f32 %v1318_v11, %v1956_v12 }
 0x251   : > { %v4173_v14 = vmax.f32 %v3310_v10, %v3679_v8  ;;  %1357 = vmatmul.bf16.gmra.mxu0 %v5984_v9 }
 0x252   : > { %1995 = vmatmul.bf16.gmra.mxu1 %v5984_v9 }
 0x253   : > { %v4402_v15 = vadd.f32 %v7249_v18, %v4173_v14  ;;  %2858 = vmatmul.bf16.gmra.mxu2 %v5984_v9 }
 0x254   : > { %3721 = vmatmul.bf16.gmra.mxu3 %v5984_v9 }
 0x255   : > { %v4627_v17 = vmax.f32 %v4402_v15, 0.0 }
 0x256   : > { %v2819_v20 = vpop.f32.mrf.mxu2  ;;  %v1320_v23 = vpop.f32.mrf.mxu0 }
 0x257   : > { %v3682_v21 = vpop.f32.mrf.mxu3  ;;  %v6215_v22 = vpack.c.bf16 %v4627_v17, %v4626_v16  ;;  %v1958_v24 = vpop.f32.mrf.mxu1  ;;  %v3311_v25 = vmax.f32 %v2448_v19, %v2819_v20 }
 0x258   : > { %v2449_v27 = vmax.f32 %v1320_v23, %v1958_v24 }
 0x259   : > { %6679 = vst [vmem:[%s7168_s18 + $0xb8] sm:$0xff] %v6215_v22   ;;  %v4174_v26 = vmax.f32 %v3311_v25, %v3682_v21 }
 0x25b   : > { %v4403_v33 = vadd.f32 %v7249_v18, %v4174_v26 }
 0x25d   : > { %v4628_v36 = vmax.f32 %v4403_v33, 0.0 }
 0x25e   : > { %v2821_v50 = vpop.f32.mrf.mxu2  ;;  %v1323_v31 = vpop.f32.mrf.mxu0 }
 0x25f   : > { %v3684_v28 = vpop.f32.mrf.mxu3  ;;  %v3312_v30 = vmax.f32 %v2449_v27, %v2821_v50  ;;  %v1961_v32 = vpop.f32.mrf.mxu1  ;;  %v5988_v27 = vld [vmem:[%s7142_s26 + $0x120] sm:$0xff] }
 0x260   : > { %v2450_v38 = vmax.f32 %v1323_v31, %v1961_v32 }
 0x261   : > { %v4175_v34 = vmax.f32 %v3312_v30, %v3684_v28  ;;  %1362 = vmatmul.bf16.gmra.mxu0 %v5985_v29 }
 0x262   : > { %2000 = vmatmul.bf16.gmra.mxu1 %v5985_v29 }
 0x263   : > { %v4404_v35 = vadd.f32 %v7249_v18, %v4175_v34  ;;  %2863 = vmatmul.bf16.gmra.mxu2 %v5985_v29 }
 0x264   : > { %3726 = vmatmul.bf16.gmra.mxu3 %v5985_v29 }
 0x265   : > { %v4629_v37 = vmax.f32 %v4404_v35, 0.0 }
 0x266   : > { %v2824_v39 = vpop.f32.mrf.mxu2  ;;  %v1325_v42 = vpop.f32.mrf.mxu0 }
 0x267   : > { %v3687_v40 = vpop.f32.mrf.mxu3  ;;  %v6220_v41 = vpack.c.bf16 %v4629_v37, %v4628_v36  ;;  %v1963_v43 = vpop.f32.mrf.mxu1  ;;  %v3313_v44 = vmax.f32 %v2450_v38, %v2824_v39 }
 0x268   : > { %v2451_v46 = vmax.f32 %v1325_v42, %v1963_v43 }
 0x269   : > { %6680 = vst [vmem:[%s7168_s18 + $0xc0] sm:$0xff] %v6220_v41   ;;  %v4176_v45 = vmax.f32 %v3313_v44, %v3687_v40 }
 0x26b   : > { %v4405_v54 = vadd.f32 %v7249_v18, %v4176_v45 }
 0x26d   : > { %v4630_v57 = vmax.f32 %v4405_v54, 0.0 }
 0x26e   : > { %v2826_v47 = vpop.f32.mrf.mxu2  ;;  %v1328_v52 = vpop.f32.mrf.mxu0 }
 0x26f   : > { %v3689_v48 = vpop.f32.mrf.mxu3  ;;  %v3314_v51 = vmax.f32 %v2451_v46, %v2826_v47  ;;  %v1966_v53 = vpop.f32.mrf.mxu1  ;;  %v5989_v46 = vld [vmem:[%s7142_s26 + $0x128] sm:$0xff] }
 0x270   : > { %v2452_v59 = vmax.f32 %v1328_v52, %v1966_v53 }
 0x271   : > { %v4177_v55 = vmax.f32 %v3314_v51, %v3689_v48  ;;  %1367 = vmatmul.bf16.gmra.mxu0 %v5986_v49 }
 0x272   : > { %2005 = vmatmul.bf16.gmra.mxu1 %v5986_v49 }
 0x273   : > { %v4406_v56 = vadd.f32 %v7249_v18, %v4177_v55  ;;  %2868 = vmatmul.bf16.gmra.mxu2 %v5986_v49 }
 0x274   : > { %3731 = vmatmul.bf16.gmra.mxu3 %v5986_v49 }
 0x275   : > { %v4631_v58 = vmax.f32 %v4406_v56, 0.0 }
 0x276   : > { %v2829_v60 = vpop.f32.mrf.mxu2  ;;  %v1330_v63 = vpop.f32.mrf.mxu0 }
 0x277   : > { %v3692_v61 = vpop.f32.mrf.mxu3  ;;  %v6225_v62 = vpack.c.bf16 %v4631_v58, %v4630_v57  ;;  %v1968_v0 = vpop.f32.mrf.mxu1  ;;  %v3315_v1 = vmax.f32 %v2452_v59, %v2829_v60 }
 0x278   : > { %v2453_v3 = vmax.f32 %v1330_v63, %v1968_v0 }
 0x279   : > { %6681 = vst [vmem:[%s7168_s18 + $0xc8] sm:$0xff] %v6225_v62   ;;  %v4178_v2 = vmax.f32 %v3315_v1, %v3692_v61 }
 0x27b   : > { %v4407_v10 = vadd.f32 %v7249_v18, %v4178_v2 }
 0x27d   : > { %v4632_v13 = vmax.f32 %v4407_v10, 0.0 }
 0x27e   : > { %v2831_v4 = vpop.f32.mrf.mxu2  ;;  %v1333_v8 = vpop.f32.mrf.mxu0 }
 0x27f   : > { %v3694_v5 = vpop.f32.mrf.mxu3  ;;  %v3316_v7 = vmax.f32 %v2453_v3, %v2831_v4  ;;  %v1971_v9 = vpop.f32.mrf.mxu1  ;;  %v5990_v3 = vld [vmem:[%s7142_s26 + $0x130] sm:$0xff] }
 0x280   : > { %v2454_v15 = vmax.f32 %v1333_v8, %v1971_v9 }
 0x281   : > { %v4179_v11 = vmax.f32 %v3316_v7, %v3694_v5  ;;  %1372 = vmatmul.bf16.gmra.mxu0 %v5987_v6 }
 0x282   : > { %2010 = vmatmul.bf16.gmra.mxu1 %v5987_v6 }
 0x283   : > { %v4408_v12 = vadd.f32 %v7249_v18, %v4179_v11  ;;  %2873 = vmatmul.bf16.gmra.mxu2 %v5987_v6 }
 0x284   : > { %3736 = vmatmul.bf16.gmra.mxu3 %v5987_v6 }
 0x285   : > { %v4633_v14 = vmax.f32 %v4408_v12, 0.0 }
 0x286   : > { %v2834_v16 = vpop.f32.mrf.mxu2  ;;  %v1335_v20 = vpop.f32.mrf.mxu0 }
 0x287   : > { %v3697_v17 = vpop.f32.mrf.mxu3  ;;  %v6230_v19 = vpack.c.bf16 %v4633_v14, %v4632_v13  ;;  %v1973_v21 = vpop.f32.mrf.mxu1  ;;  %v3317_v22 = vmax.f32 %v2454_v15, %v2834_v16 }
 0x288   : > { %v2455_v24 = vmax.f32 %v1335_v20, %v1973_v21 }
 0x289   : > { %6682 = vst [vmem:[%s7168_s18 + $0xd0] sm:$0xff] %v6230_v19   ;;  %v4180_v23 = vmax.f32 %v3317_v22, %v3697_v17 }
 0x28b   : > { %v4409_v30 = vadd.f32 %v7249_v18, %v4180_v23 }
 0x28d   : > { %v4634_v33 = vmax.f32 %v4409_v30, 0.0 }
 0x28e   : > { %v2836_v25 = vpop.f32.mrf.mxu2  ;;  %v1338_v28 = vpop.f32.mrf.mxu0 }
 0x28f   : > { %v3699_v26 = vpop.f32.mrf.mxu3  ;;  %v3318_v50 = vmax.f32 %v2455_v24, %v2836_v25  ;;  %v1976_v29 = vpop.f32.mrf.mxu1  ;;  %v5991_v24 = vld [vmem:[%s7142_s26 + $0x138] sm:$0xff] }
 0x290   : > { %v2456_v35 = vmax.f32 %v1338_v28, %v1976_v29 }
 0x291   : > { %v4181_v31 = vmax.f32 %v3318_v50, %v3699_v26  ;;  %1377 = vmatmul.bf16.gmra.mxu0 %v5988_v27 }
 0x292   : > { %2015 = vmatmul.bf16.gmra.mxu1 %v5988_v27 }
 0x293   : > { %v4410_v32 = vadd.f32 %v7249_v18, %v4181_v31  ;;  %2878 = vmatmul.bf16.gmra.mxu2 %v5988_v27 }
 0x294   : > { %3741 = vmatmul.bf16.gmra.mxu3 %v5988_v27 }
 0x295   : > { %v4635_v34 = vmax.f32 %v4410_v32, 0.0 }
 0x296   : > { %v2839_v36 = vpop.f32.mrf.mxu2  ;;  %v1340_v39 = vpop.f32.mrf.mxu0 }
 0x297   : > { %v3702_v37 = vpop.f32.mrf.mxu3  ;;  %v6235_v38 = vpack.c.bf16 %v4635_v34, %v4634_v33  ;;  %v1978_v40 = vpop.f32.mrf.mxu1  ;;  %v3319_v41 = vmax.f32 %v2456_v35, %v2839_v36 }
 0x298   : > { %v2457_v43 = vmax.f32 %v1340_v39, %v1978_v40 }
 0x299   : > { %6683 = vst [vmem:[%s7168_s18 + $0xd8] sm:$0xff] %v6235_v38   ;;  %v4182_v42 = vmax.f32 %v3319_v41, %v3702_v37 }
 0x29b   : > { %v4411_v51 = vadd.f32 %v7249_v18, %v4182_v42 }
 0x29d   : > { %v4636_v54 = vmax.f32 %v4411_v51, 0.0 }
 0x29e   : > { %v2841_v44 = vpop.f32.mrf.mxu2  ;;  %v1343_v48 = vpop.f32.mrf.mxu0 }
 0x29f   : > { %v3704_v45 = vpop.f32.mrf.mxu3  ;;  %v3320_v47 = vmax.f32 %v2457_v43, %v2841_v44  ;;  %v1981_v49 = vpop.f32.mrf.mxu1  ;;  %v5992_v43 = vld [vmem:[%s7142_s26 + $0x140] sm:$0xff] }
 0x2a0   : > { %v2458_v56 = vmax.f32 %v1343_v48, %v1981_v49 }
 0x2a1   : > { %v4183_v52 = vmax.f32 %v3320_v47, %v3704_v45  ;;  %1382 = vmatmul.bf16.gmra.mxu0 %v5989_v46 }
 0x2a2   : > { %2020 = vmatmul.bf16.gmra.mxu1 %v5989_v46 }
 0x2a3   : > { %v4412_v53 = vadd.f32 %v7249_v18, %v4183_v52  ;;  %2883 = vmatmul.bf16.gmra.mxu2 %v5989_v46 }
 0x2a4   : > { %3746 = vmatmul.bf16.gmra.mxu3 %v5989_v46 }
 0x2a5   : > { %v4637_v55 = vmax.f32 %v4412_v53, 0.0 }
 0x2a6   : > { %v2844_v57 = vpop.f32.mrf.mxu2  ;;  %v1345_v60 = vpop.f32.mrf.mxu0 }
 0x2a7   : > { %v3707_v58 = vpop.f32.mrf.mxu3  ;;  %v6240_v59 = vpack.c.bf16 %v4637_v55, %v4636_v54  ;;  %v1983_v61 = vpop.f32.mrf.mxu1  ;;  %v3321_v62 = vmax.f32 %v2458_v56, %v2844_v57 }
 0x2a8   : > { %v2459_v0 = vmax.f32 %v1345_v60, %v1983_v61 }
 0x2a9   : > { %6684 = vst [vmem:[%s7168_s18 + $0xe0] sm:$0xff] %v6240_v59   ;;  %v4184_v63 = vmax.f32 %v3321_v62, %v3707_v58 }
 0x2ab   : > { %v4413_v7 = vadd.f32 %v7249_v18, %v4184_v63 }
 0x2ad   : > { %v4638_v10 = vmax.f32 %v4413_v7, 0.0 }
 0x2ae   : > { %v2846_v1 = vpop.f32.mrf.mxu2  ;;  %v1348_v5 = vpop.f32.mrf.mxu0 }
 0x2af   : > { %v3709_v2 = vpop.f32.mrf.mxu3  ;;  %v3322_v4 = vmax.f32 %v2459_v0, %v2846_v1  ;;  %v1986_v6 = vpop.f32.mrf.mxu1  ;;  %v5993_v0 = vld [vmem:[%s7142_s26 + $0x148] sm:$0xff] }
 0x2b0   : > { %v2460_v12 = vmax.f32 %v1348_v5, %v1986_v6 }
 0x2b1   : > { %v4185_v8 = vmax.f32 %v3322_v4, %v3709_v2  ;;  %1387 = vmatmul.bf16.gmra.mxu0 %v5990_v3 }
 0x2b2   : > { %2025 = vmatmul.bf16.gmra.mxu1 %v5990_v3 }
 0x2b3   : > { %v4414_v9 = vadd.f32 %v7249_v18, %v4185_v8  ;;  %2888 = vmatmul.bf16.gmra.mxu2 %v5990_v3 }
 0x2b4   : > { %3751 = vmatmul.bf16.gmra.mxu3 %v5990_v3 }
 0x2b5   : > { %v4639_v11 = vmax.f32 %v4414_v9, 0.0 }
 0x2b6   : > { %v2849_v13 = vpop.f32.mrf.mxu2  ;;  %v1350_v16 = vpop.f32.mrf.mxu0 }
 0x2b7   : > { %v3712_v14 = vpop.f32.mrf.mxu3  ;;  %v6245_v15 = vpack.c.bf16 %v4639_v11, %v4638_v10  ;;  %v1988_v17 = vpop.f32.mrf.mxu1  ;;  %v3323_v19 = vmax.f32 %v2460_v12, %v2849_v13 }
 0x2b8   : > { %v2461_v21 = vmax.f32 %v1350_v16, %v1988_v17 }
 0x2b9   : > { %6685 = vst [vmem:[%s7168_s18 + $0xe8] sm:$0xff] %v6245_v15   ;;  %v4186_v20 = vmax.f32 %v3323_v19, %v3712_v14 }
 0x2bb   : > { %v4415_v50 = vadd.f32 %v7249_v18, %v4186_v20 }
 0x2bd   : > { %v4640_v30 = vmax.f32 %v4415_v50, 0.0 }
 0x2be   : > { %v2851_v22 = vpop.f32.mrf.mxu2  ;;  %v1353_v26 = vpop.f32.mrf.mxu0 }
 0x2bf   : > { %v3714_v23 = vpop.f32.mrf.mxu3  ;;  %v3324_v25 = vmax.f32 %v2461_v21, %v2851_v22  ;;  %v1991_v27 = vpop.f32.mrf.mxu1  ;;  %v5994_v21 = vld [vmem:[%s7142_s26 + $0x150] sm:$0xff] }
 0x2c0   : > { %v2462_v32 = vmax.f32 %v1353_v26, %v1991_v27 }
 0x2c1   : > { %v4187_v28 = vmax.f32 %v3324_v25, %v3714_v23  ;;  %1392 = vmatmul.bf16.gmra.mxu0 %v5991_v24 }
 0x2c2   : > { %2030 = vmatmul.bf16.gmra.mxu1 %v5991_v24 }
 0x2c3   : > { %v4416_v29 = vadd.f32 %v7249_v18, %v4187_v28  ;;  %2893 = vmatmul.bf16.gmra.mxu2 %v5991_v24 }
 0x2c4   : > { %3756 = vmatmul.bf16.gmra.mxu3 %v5991_v24 }
 0x2c5   : > { %v4641_v31 = vmax.f32 %v4416_v29, 0.0 }
 0x2c6   : > { %v2854_v33 = vpop.f32.mrf.mxu2  ;;  %v1355_v36 = vpop.f32.mrf.mxu0 }
 0x2c7   : > { %v3717_v34 = vpop.f32.mrf.mxu3  ;;  %v6250_v35 = vpack.c.bf16 %v4641_v31, %v4640_v30  ;;  %v1993_v37 = vpop.f32.mrf.mxu1  ;;  %v3325_v38 = vmax.f32 %v2462_v32, %v2854_v33 }
 0x2c8   : > { %v2463_v40 = vmax.f32 %v1355_v36, %v1993_v37 }
 0x2c9   : > { %6686 = vst [vmem:[%s7168_s18 + $0xf0] sm:$0xff] %v6250_v35   ;;  %v4188_v39 = vmax.f32 %v3325_v38, %v3717_v34 }
 0x2cb   : > { %v4417_v47 = vadd.f32 %v7249_v18, %v4188_v39 }
 0x2cd   : > { %v4642_v51 = vmax.f32 %v4417_v47, 0.0 }
 0x2ce   : > { %v2856_v41 = vpop.f32.mrf.mxu2  ;;  %v1358_v45 = vpop.f32.mrf.mxu0 }
 0x2cf   : > { %v3719_v42 = vpop.f32.mrf.mxu3  ;;  %v3326_v44 = vmax.f32 %v2463_v40, %v2856_v41  ;;  %v1996_v46 = vpop.f32.mrf.mxu1  ;;  %v5995_v40 = vld [vmem:[%s7142_s26 + $0x158] sm:$0xff] }
 0x2d0   : > { %v2464_v53 = vmax.f32 %v1358_v45, %v1996_v46 }
 0x2d1   : > { %v4189_v48 = vmax.f32 %v3326_v44, %v3719_v42  ;;  %1397 = vmatmul.bf16.gmra.mxu0 %v5992_v43 }
 0x2d2   : > { %2035 = vmatmul.bf16.gmra.mxu1 %v5992_v43 }
 0x2d3   : > { %v4418_v49 = vadd.f32 %v7249_v18, %v4189_v48  ;;  %2898 = vmatmul.bf16.gmra.mxu2 %v5992_v43 }
 0x2d4   : > { %3761 = vmatmul.bf16.gmra.mxu3 %v5992_v43 }
 0x2d5   : > { %v4643_v52 = vmax.f32 %v4418_v49, 0.0 }
 0x2d6   : > { %v2859_v54 = vpop.f32.mrf.mxu2  ;;  %v1360_v57 = vpop.f32.mrf.mxu0 }
 0x2d7   : > { %v3722_v55 = vpop.f32.mrf.mxu3  ;;  %v6255_v56 = vpack.c.bf16 %v4643_v52, %v4642_v51  ;;  %v1998_v58 = vpop.f32.mrf.mxu1  ;;  %v3327_v59 = vmax.f32 %v2464_v53, %v2859_v54 }
 0x2d8   : > { %v2465_v61 = vmax.f32 %v1360_v57, %v1998_v58 }
 0x2d9   : > { %6687 = vst [vmem:[%s7168_s18 + $0xf8] sm:$0xff] %v6255_v56   ;;  %v4190_v60 = vmax.f32 %v3327_v59, %v3722_v55 }
 0x2db   : > { %v4419_v4 = vadd.f32 %v7249_v18, %v4190_v60 }
 0x2dd   : > { %v4644_v7 = vmax.f32 %v4419_v4, 0.0 }
 0x2de   : > { %v2861_v62 = vpop.f32.mrf.mxu2  ;;  %v1363_v2 = vpop.f32.mrf.mxu0 }
 0x2df   : > { %v3724_v63 = vpop.f32.mrf.mxu3  ;;  %v3328_v1 = vmax.f32 %v2465_v61, %v2861_v62  ;;  %v2001_v3 = vpop.f32.mrf.mxu1  ;;  %v5996_v61 = vld [vmem:[%s7142_s26 + $0x160] sm:$0xff] }
 0x2e0   : > { %v2466_v9 = vmax.f32 %v1363_v2, %v2001_v3 }
 0x2e1   : > { %v4191_v5 = vmax.f32 %v3328_v1, %v3724_v63  ;;  %1402 = vmatmul.bf16.gmra.mxu0 %v5993_v0 }
 0x2e2   : > { %2040 = vmatmul.bf16.gmra.mxu1 %v5993_v0 }
 0x2e3   : > { %v4420_v6 = vadd.f32 %v7249_v18, %v4191_v5  ;;  %2903 = vmatmul.bf16.gmra.mxu2 %v5993_v0 }
 0x2e4   : > { %3766 = vmatmul.bf16.gmra.mxu3 %v5993_v0 }
 0x2e5   : > { %v4645_v8 = vmax.f32 %v4420_v6, 0.0 }
 0x2e6   : > { %v2864_v10 = vpop.f32.mrf.mxu2  ;;  %v1365_v13 = vpop.f32.mrf.mxu0 }
 0x2e7   : > { %v3727_v11 = vpop.f32.mrf.mxu3  ;;  %v6260_v12 = vpack.c.bf16 %v4645_v8, %v4644_v7  ;;  %v2003_v14 = vpop.f32.mrf.mxu1  ;;  %v3329_v15 = vmax.f32 %v2466_v9, %v2864_v10 }
 0x2e8   : > { %v2467_v17 = vmax.f32 %v1365_v13, %v2003_v14 }
 0x2e9   : > { %6688 = vst [vmem:[%s7168_s18 + $0x100] sm:$0xff] %v6260_v12   ;;  %v4192_v16 = vmax.f32 %v3329_v15, %v3727_v11 }
 0x2eb   : > { %v4421_v25 = vadd.f32 %v7249_v18, %v4192_v16 }
 0x2ed   : > { %v4646_v50 = vmax.f32 %v4421_v25, 0.0 }
 0x2ee   : > { %v2866_v19 = vpop.f32.mrf.mxu2  ;;  %v1368_v23 = vpop.f32.mrf.mxu0 }
 0x2ef   : > { %v3729_v20 = vpop.f32.mrf.mxu3  ;;  %v3330_v22 = vmax.f32 %v2467_v17, %v2866_v19  ;;  %v2006_v24 = vpop.f32.mrf.mxu1  ;;  %v5997_v17 = vld [vmem:[%s7142_s26 + $0x168] sm:$0xff] }
 0x2f0   : > { %v2468_v29 = vmax.f32 %v1368_v23, %v2006_v24 }
 0x2f1   : > { %v4193_v26 = vmax.f32 %v3330_v22, %v3729_v20  ;;  %1407 = vmatmul.bf16.gmra.mxu0 %v5994_v21 }
 0x2f2   : > { %2045 = vmatmul.bf16.gmra.mxu1 %v5994_v21 }
 0x2f3   : > { %v4422_v27 = vadd.f32 %v7249_v18, %v4193_v26  ;;  %2908 = vmatmul.bf16.gmra.mxu2 %v5994_v21 }
 0x2f4   : > { %3771 = vmatmul.bf16.gmra.mxu3 %v5994_v21 }
 0x2f5   : > { %v4647_v28 = vmax.f32 %v4422_v27, 0.0 }
 0x2f6   : > { %v2869_v30 = vpop.f32.mrf.mxu2  ;;  %v1370_v33 = vpop.f32.mrf.mxu0 }
 0x2f7   : > { %v3732_v31 = vpop.f32.mrf.mxu3  ;;  %v6265_v32 = vpack.c.bf16 %v4647_v28, %v4646_v50  ;;  %v2008_v34 = vpop.f32.mrf.mxu1  ;;  %v3331_v35 = vmax.f32 %v2468_v29, %v2869_v30 }
 0x2f8   : > { %v2469_v37 = vmax.f32 %v1370_v33, %v2008_v34 }
 0x2f9   : > { %6689 = vst [vmem:[%s7168_s18 + $0x108] sm:$0xff] %v6265_v32   ;;  %v4194_v36 = vmax.f32 %v3331_v35, %v3732_v31 }
 0x2fb   : > { %v4423_v44 = vadd.f32 %v7249_v18, %v4194_v36 }
 0x2fd   : > { %v4648_v47 = vmax.f32 %v4423_v44, 0.0 }
 0x2fe   : > { %v2871_v38 = vpop.f32.mrf.mxu2  ;;  %v1373_v42 = vpop.f32.mrf.mxu0 }
 0x2ff   : > { %v3734_v39 = vpop.f32.mrf.mxu3  ;;  %v3332_v41 = vmax.f32 %v2469_v37, %v2871_v38  ;;  %v2011_v43 = vpop.f32.mrf.mxu1  ;;  %v5998_v37 = vld [vmem:[%s7142_s26 + $0x170] sm:$0xff] }
 0x300   : > { %v2470_v49 = vmax.f32 %v1373_v42, %v2011_v43 }
 0x301   : > { %v4195_v45 = vmax.f32 %v3332_v41, %v3734_v39  ;;  %1412 = vmatmul.bf16.gmra.mxu0 %v5995_v40 }
 0x302   : > { %2050 = vmatmul.bf16.gmra.mxu1 %v5995_v40 }
 0x303   : > { %v4424_v46 = vadd.f32 %v7249_v18, %v4195_v45  ;;  %2913 = vmatmul.bf16.gmra.mxu2 %v5995_v40 }
 0x304   : > { %3776 = vmatmul.bf16.gmra.mxu3 %v5995_v40 }
 0x305   : > { %v4649_v48 = vmax.f32 %v4424_v46, 0.0 }
 0x306   : > { %v2874_v51 = vpop.f32.mrf.mxu2  ;;  %v1375_v54 = vpop.f32.mrf.mxu0 }
 0x307   : > { %v3737_v52 = vpop.f32.mrf.mxu3  ;;  %v6270_v53 = vpack.c.bf16 %v4649_v48, %v4648_v47  ;;  %v2013_v55 = vpop.f32.mrf.mxu1  ;;  %v3333_v56 = vmax.f32 %v2470_v49, %v2874_v51 }
 0x308   : > { %v2471_v58 = vmax.f32 %v1375_v54, %v2013_v55 }
 0x309   : > { %6690 = vst [vmem:[%s7168_s18 + $0x110] sm:$0xff] %v6270_v53   ;;  %v4196_v57 = vmax.f32 %v3333_v56, %v3737_v52 }
 0x30b   : > { %v4425_v1 = vadd.f32 %v7249_v18, %v4196_v57 }
 0x30d   : > { %v4650_v4 = vmax.f32 %v4425_v1, 0.0 }
 0x30e   : > { %v2876_v59 = vpop.f32.mrf.mxu2  ;;  %v1378_v63 = vpop.f32.mrf.mxu0 }
 0x30f   : > { %v3739_v60 = vpop.f32.mrf.mxu3  ;;  %v3334_v62 = vmax.f32 %v2471_v58, %v2876_v59  ;;  %v2016_v0 = vpop.f32.mrf.mxu1  ;;  %v5999_v58 = vld [vmem:[%s7142_s26 + $0x178] sm:$0xff] }
 0x310   : > { %v2472_v6 = vmax.f32 %v1378_v63, %v2016_v0 }
 0x311   : > { %v4197_v2 = vmax.f32 %v3334_v62, %v3739_v60  ;;  %1417 = vmatmul.bf16.gmra.mxu0 %v5996_v61 }
 0x312   : > { %2055 = vmatmul.bf16.gmra.mxu1 %v5996_v61 }
 0x313   : > { %v4426_v3 = vadd.f32 %v7249_v18, %v4197_v2  ;;  %2918 = vmatmul.bf16.gmra.mxu2 %v5996_v61 }
 0x314   : > { %3781 = vmatmul.bf16.gmra.mxu3 %v5996_v61 }
 0x315   : > { %v4651_v5 = vmax.f32 %v4426_v3, 0.0 }
 0x316   : > { %v2879_v7 = vpop.f32.mrf.mxu2  ;;  %v1380_v10 = vpop.f32.mrf.mxu0 }
 0x317   : > { %v3742_v8 = vpop.f32.mrf.mxu3  ;;  %v6275_v9 = vpack.c.bf16 %v4651_v5, %v4650_v4  ;;  %v2018_v11 = vpop.f32.mrf.mxu1  ;;  %v3335_v12 = vmax.f32 %v2472_v6, %v2879_v7 }
 0x318   : > { %v2473_v14 = vmax.f32 %v1380_v10, %v2018_v11 }
 0x319   : > { %6691 = vst [vmem:[%s7168_s18 + $0x118] sm:$0xff] %v6275_v9   ;;  %v4198_v13 = vmax.f32 %v3335_v12, %v3742_v8 }
 0x31b   : > { %v4427_v22 = vadd.f32 %v7249_v18, %v4198_v13 }
 0x31d   : > { %v4652_v25 = vmax.f32 %v4427_v22, 0.0 }
 0x31e   : > { %v2881_v15 = vpop.f32.mrf.mxu2  ;;  %v1383_v20 = vpop.f32.mrf.mxu0 }
 0x31f   : > { %v3744_v16 = vpop.f32.mrf.mxu3  ;;  %v3336_v19 = vmax.f32 %v2473_v14, %v2881_v15  ;;  %v2021_v21 = vpop.f32.mrf.mxu1  ;;  %v6000_v14 = vld [vmem:[%s7142_s26 + $0x180] sm:$0xff] }
 0x320   : > { %v2474_v27 = vmax.f32 %v1383_v20, %v2021_v21 }
 0x321   : > { %v4199_v23 = vmax.f32 %v3336_v19, %v3744_v16  ;;  %1422 = vmatmul.bf16.gmra.mxu0 %v5997_v17 }
 0x322   : > { %2060 = vmatmul.bf16.gmra.mxu1 %v5997_v17 }
 0x323   : > { %v4428_v24 = vadd.f32 %v7249_v18, %v4199_v23  ;;  %2923 = vmatmul.bf16.gmra.mxu2 %v5997_v17 }
 0x324   : > { %3786 = vmatmul.bf16.gmra.mxu3 %v5997_v17 }
 0x325   : > { %v4653_v26 = vmax.f32 %v4428_v24, 0.0 }
 0x326   : > { %v2884_v50 = vpop.f32.mrf.mxu2  ;;  %v1385_v30 = vpop.f32.mrf.mxu0 }
 0x327   : > { %v3747_v28 = vpop.f32.mrf.mxu3  ;;  %v6280_v29 = vpack.c.bf16 %v4653_v26, %v4652_v25  ;;  %v2023_v31 = vpop.f32.mrf.mxu1  ;;  %v3337_v32 = vmax.f32 %v2474_v27, %v2884_v50 }
 0x328   : > { %v2475_v34 = vmax.f32 %v1385_v30, %v2023_v31 }
 0x329   : > { %6692 = vst [vmem:[%s7168_s18 + $0x120] sm:$0xff] %v6280_v29   ;;  %v4200_v33 = vmax.f32 %v3337_v32, %v3747_v28 }
 0x32b   : > { %v4429_v41 = vadd.f32 %v7249_v18, %v4200_v33 }
 0x32d   : > { %v4654_v44 = vmax.f32 %v4429_v41, 0.0 }
 0x32e   : > { %v2886_v35 = vpop.f32.mrf.mxu2  ;;  %v1388_v39 = vpop.f32.mrf.mxu0 }
 0x32f   : > { %v3749_v36 = vpop.f32.mrf.mxu3  ;;  %v3338_v38 = vmax.f32 %v2475_v34, %v2886_v35  ;;  %v2026_v40 = vpop.f32.mrf.mxu1  ;;  %v6001_v34 = vld [vmem:[%s7142_s26 + $0x188] sm:$0xff] }
 0x330   : > { %v2476_v46 = vmax.f32 %v1388_v39, %v2026_v40 }
 0x331   : > { %v4201_v42 = vmax.f32 %v3338_v38, %v3749_v36  ;;  %1427 = vmatmul.bf16.gmra.mxu0 %v5998_v37 }
 0x332   : > { %2065 = vmatmul.bf16.gmra.mxu1 %v5998_v37 }
 0x333   : > { %v4430_v43 = vadd.f32 %v7249_v18, %v4201_v42  ;;  %2928 = vmatmul.bf16.gmra.mxu2 %v5998_v37 }
 0x334   : > { %3791 = vmatmul.bf16.gmra.mxu3 %v5998_v37 }
 0x335   : > { %v4655_v45 = vmax.f32 %v4430_v43, 0.0 }
 0x336   : > { %v2889_v47 = vpop.f32.mrf.mxu2  ;;  %v1390_v51 = vpop.f32.mrf.mxu0 }
 0x337   : > { %v3752_v48 = vpop.f32.mrf.mxu3  ;;  %v6285_v49 = vpack.c.bf16 %v4655_v45, %v4654_v44  ;;  %v2028_v52 = vpop.f32.mrf.mxu1  ;;  %v3339_v53 = vmax.f32 %v2476_v46, %v2889_v47 }
 0x338   : > { %v2477_v55 = vmax.f32 %v1390_v51, %v2028_v52 }
 0x339   : > { %6693 = vst [vmem:[%s7168_s18 + $0x128] sm:$0xff] %v6285_v49   ;;  %v4202_v54 = vmax.f32 %v3339_v53, %v3752_v48 }
 0x33b   : > { %v4431_v62 = vadd.f32 %v7249_v18, %v4202_v54 }
 0x33d   : > { %v4656_v1 = vmax.f32 %v4431_v62, 0.0 }
 0x33e   : > { %v2891_v56 = vpop.f32.mrf.mxu2  ;;  %v1393_v60 = vpop.f32.mrf.mxu0 }
 0x33f   : > { %v3754_v57 = vpop.f32.mrf.mxu3  ;;  %v3340_v59 = vmax.f32 %v2477_v55, %v2891_v56  ;;  %v2031_v61 = vpop.f32.mrf.mxu1  ;;  %v6002_v55 = vld [vmem:[%s7142_s26 + $0x190] sm:$0xff] }
 0x340   : > { %v2478_v3 = vmax.f32 %v1393_v60, %v2031_v61 }
 0x341   : > { %v4203_v63 = vmax.f32 %v3340_v59, %v3754_v57  ;;  %1432 = vmatmul.bf16.gmra.mxu0 %v5999_v58 }
 0x342   : > { %2070 = vmatmul.bf16.gmra.mxu1 %v5999_v58 }
 0x343   : > { %v4432_v0 = vadd.f32 %v7249_v18, %v4203_v63  ;;  %2933 = vmatmul.bf16.gmra.mxu2 %v5999_v58 }
 0x344   : > { %3796 = vmatmul.bf16.gmra.mxu3 %v5999_v58  ;;  %v7334_v58 = vld [vmem:[#allocation7] ss:$0 sm:$0xff] }
 0x345   : > { %v4657_v2 = vmax.f32 %v4432_v0, 0.0 }
 0x346   : > { %v2894_v4 = vpop.f32.mrf.mxu2  ;;  %v1395_v7 = vpop.f32.mrf.mxu0 }
 0x347   : > { %v3757_v5 = vpop.f32.mrf.mxu3  ;;  %v6290_v6 = vpack.c.bf16 %v4657_v2, %v4656_v1  ;;  %v2033_v8 = vpop.f32.mrf.mxu1  ;;  %v3341_v9 = vmax.f32 %v2478_v3, %v2894_v4 }
 0x348   : > { %v2479_v11 = vmax.f32 %v1395_v7, %v2033_v8 }
 0x349   : > { %6694 = vst [vmem:[%s7168_s18 + $0x130] sm:$0xff] %v6290_v6   ;;  %v4204_v10 = vmax.f32 %v3341_v9, %v3757_v5 }
 0x34b   : > { %v4433_v19 = vadd.f32 %v7249_v18, %v4204_v10 }
 0x34d   : > { %v4658_v22 = vmax.f32 %v4433_v19, 0.0 }
 0x34e   : > { %v2896_v12 = vpop.f32.mrf.mxu2  ;;  %v1398_v16 = vpop.f32.mrf.mxu0 }
 0x34f   : > { %v3759_v13 = vpop.f32.mrf.mxu3  ;;  %v3342_v15 = vmax.f32 %v2479_v11, %v2896_v12  ;;  %v2036_v17 = vpop.f32.mrf.mxu1  ;;  %v6003_v11 = vld [vmem:[%s7142_s26 + $0x198] sm:$0xff] }
 0x350   : > { %v2480_v24 = vmax.f32 %v1398_v16, %v2036_v17 }
 0x351   : > { %v4205_v20 = vmax.f32 %v3342_v15, %v3759_v13  ;;  %1437 = vmatmul.bf16.gmra.mxu0 %v6000_v14 }
 0x352   : > { %2075 = vmatmul.bf16.gmra.mxu1 %v6000_v14 }
 0x353   : > { %v4434_v21 = vadd.f32 %v7249_v18, %v4205_v20  ;;  %2938 = vmatmul.bf16.gmra.mxu2 %v6000_v14 }
 0x354   : > { %3801 = vmatmul.bf16.gmra.mxu3 %v6000_v14 }
 0x355   : > { %v4659_v23 = vmax.f32 %v4434_v21, 0.0 }
 0x356   : > { %v2899_v25 = vpop.f32.mrf.mxu2  ;;  %v1400_v50 = vpop.f32.mrf.mxu0 }
 0x357   : > { %v3762_v26 = vpop.f32.mrf.mxu3  ;;  %v6295_v27 = vpack.c.bf16 %v4659_v23, %v4658_v22  ;;  %v2038_v28 = vpop.f32.mrf.mxu1  ;;  %v3343_v29 = vmax.f32 %v2480_v24, %v2899_v25 }
 0x358   : > { %v2481_v31 = vmax.f32 %v1400_v50, %v2038_v28 }
 0x359   : > { %6695 = vst [vmem:[%s7168_s18 + $0x138] sm:$0xff] %v6295_v27   ;;  %v4206_v30 = vmax.f32 %v3343_v29, %v3762_v26 }
 0x35b   : > { %v4435_v38 = vadd.f32 %v7249_v18, %v4206_v30 }
 0x35d   : > { %v4660_v41 = vmax.f32 %v4435_v38, 0.0 }
 0x35e   : > { %v2901_v32 = vpop.f32.mrf.mxu2  ;;  %v1403_v36 = vpop.f32.mrf.mxu0 }
 0x35f   : > { %v3764_v33 = vpop.f32.mrf.mxu3  ;;  %v3344_v35 = vmax.f32 %v2481_v31, %v2901_v32  ;;  %v2041_v37 = vpop.f32.mrf.mxu1  ;;  %v6004_v31 = vld [vmem:[%s7142_s26 + $0x1a0] sm:$0xff] }
 0x360   : > { %v2482_v43 = vmax.f32 %v1403_v36, %v2041_v37 }
 0x361   : > { %v4207_v39 = vmax.f32 %v3344_v35, %v3764_v33  ;;  %1442 = vmatmul.bf16.gmra.mxu0 %v6001_v34 }
 0x362   : > { %2080 = vmatmul.bf16.gmra.mxu1 %v6001_v34 }
 0x363   : > { %v4436_v40 = vadd.f32 %v7249_v18, %v4207_v39  ;;  %2943 = vmatmul.bf16.gmra.mxu2 %v6001_v34 }
 0x364   : > { %3806 = vmatmul.bf16.gmra.mxu3 %v6001_v34 }
 0x365   : > { %v4661_v42 = vmax.f32 %v4436_v40, 0.0 }
 0x366   : > { %v2904_v44 = vpop.f32.mrf.mxu2  ;;  %v1405_v47 = vpop.f32.mrf.mxu0 }
 0x367   : > { %v3767_v45 = vpop.f32.mrf.mxu3  ;;  %v6300_v46 = vpack.c.bf16 %v4661_v42, %v4660_v41  ;;  %v2043_v48 = vpop.f32.mrf.mxu1  ;;  %v3345_v49 = vmax.f32 %v2482_v43, %v2904_v44 }
 0x368   : > { %v2483_v52 = vmax.f32 %v1405_v47, %v2043_v48 }
 0x369   : > { %6696 = vst [vmem:[%s7168_s18 + $0x140] sm:$0xff] %v6300_v46   ;;  %v4208_v51 = vmax.f32 %v3345_v49, %v3767_v45 }
 0x36b   : > { %v4437_v59 = vadd.f32 %v7334_v58, %v4208_v51 }
 0x36d   : > { %v4662_v62 = vmax.f32 %v4437_v59, 0.0 }
 0x36e   : > { %v2906_v53 = vpop.f32.mrf.mxu2  ;;  %v1408_v18 = vpop.f32.mrf.mxu0 }
 0x36f   : > { %v3769_v54 = vpop.f32.mrf.mxu3  ;;  %v3346_v56 = vmax.f32 %v2483_v52, %v2906_v53  ;;  %v2046_v57 = vpop.f32.mrf.mxu1  ;;  %v6005_v52 = vld [vmem:[%s7142_s26 + $0x1a8] sm:$0xff] }
 0x370   : > { %v2484_v0 = vmax.f32 %v1408_v18, %v2046_v57 }
 0x371   : > { %v4209_v60 = vmax.f32 %v3346_v56, %v3769_v54  ;;  %1447 = vmatmul.bf16.gmra.mxu0 %v6002_v55 }
 0x372   : > { %2085 = vmatmul.bf16.gmra.mxu1 %v6002_v55 }
 0x373   : > { %v4438_v61 = vadd.f32 %v7334_v58, %v4209_v60  ;;  %2948 = vmatmul.bf16.gmra.mxu2 %v6002_v55 }
 0x374   : > { %3811 = vmatmul.bf16.gmra.mxu3 %v6002_v55 }
 0x375   : > { %v4663_v63 = vmax.f32 %v4438_v61, 0.0 }
 0x376   : > { %v2909_v1 = vpop.f32.mrf.mxu2  ;;  %v1410_v4 = vpop.f32.mrf.mxu0 }
 0x377   : > { %v3772_v2 = vpop.f32.mrf.mxu3  ;;  %v6305_v3 = vpack.c.bf16 %v4663_v63, %v4662_v62  ;;  %v2048_v5 = vpop.f32.mrf.mxu1  ;;  %v3347_v6 = vmax.f32 %v2484_v0, %v2909_v1 }
 0x378   : > { %v2485_v8 = vmax.f32 %v1410_v4, %v2048_v5 }
 0x379   : > { %6697 = vst [vmem:[%s7168_s18 + $0x148] sm:$0xff] %v6305_v3   ;;  %v4210_v7 = vmax.f32 %v3347_v6, %v3772_v2 }
 0x37b   : > { %v4439_v15 = vadd.f32 %v7334_v58, %v4210_v7 }
 0x37d   : > { %v4664_v19 = vmax.f32 %v4439_v15, 0.0 }
 0x37e   : > { %v2911_v9 = vpop.f32.mrf.mxu2  ;;  %v1413_v13 = vpop.f32.mrf.mxu0 }
 0x37f   : > { %v3774_v10 = vpop.f32.mrf.mxu3  ;;  %v3348_v12 = vmax.f32 %v2485_v8, %v2911_v9  ;;  %v2051_v14 = vpop.f32.mrf.mxu1  ;;  %v6006_v8 = vld [vmem:[%s7142_s26 + $0x1b0] sm:$0xff] }
 0x380   : > { %v2486_v21 = vmax.f32 %v1413_v13, %v2051_v14 }
 0x381   : > { %v4211_v16 = vmax.f32 %v3348_v12, %v3774_v10  ;;  %1452 = vmatmul.bf16.gmra.mxu0 %v6003_v11 }
 0x382   : > { %2090 = vmatmul.bf16.gmra.mxu1 %v6003_v11 }
 0x383   : > { %v4440_v17 = vadd.f32 %v7334_v58, %v4211_v16  ;;  %2953 = vmatmul.bf16.gmra.mxu2 %v6003_v11 }
 0x384   : > { %3816 = vmatmul.bf16.gmra.mxu3 %v6003_v11 }
 0x385   : > { %v4665_v20 = vmax.f32 %v4440_v17, 0.0 }
 0x386   : > { %v2914_v22 = vpop.f32.mrf.mxu2  ;;  %v1415_v25 = vpop.f32.mrf.mxu0 }
 0x387   : > { %v3777_v23 = vpop.f32.mrf.mxu3  ;;  %v6310_v24 = vpack.c.bf16 %v4665_v20, %v4664_v19  ;;  %v2053_v26 = vpop.f32.mrf.mxu1  ;;  %v3349_v27 = vmax.f32 %v2486_v21, %v2914_v22 }
 0x388   : > { %v2487_v28 = vmax.f32 %v1415_v25, %v2053_v26 }
 0x389   : > { %6698 = vst [vmem:[%s7168_s18 + $0x150] sm:$0xff] %v6310_v24   ;;  %v4212_v50 = vmax.f32 %v3349_v27, %v3777_v23 }
 0x38b   : > { %v4441_v35 = vadd.f32 %v7334_v58, %v4212_v50 }
 0x38d   : > { %v4666_v38 = vmax.f32 %v4441_v35, 0.0 }
 0x38e   : > { %v2916_v29 = vpop.f32.mrf.mxu2  ;;  %v1418_v33 = vpop.f32.mrf.mxu0 }
 0x38f   : > { %v3779_v30 = vpop.f32.mrf.mxu3  ;;  %v3350_v32 = vmax.f32 %v2487_v28, %v2916_v29  ;;  %v2056_v34 = vpop.f32.mrf.mxu1  ;;  %v6007_v28 = vld [vmem:[%s7142_s26 + $0x1b8] sm:$0xff] }
 0x390   : > { %v2488_v40 = vmax.f32 %v1418_v33, %v2056_v34 }
 0x391   : > { %v4213_v36 = vmax.f32 %v3350_v32, %v3779_v30  ;;  %1457 = vmatmul.bf16.gmra.mxu0 %v6004_v31 }
 0x392   : > { %2095 = vmatmul.bf16.gmra.mxu1 %v6004_v31 }
 0x393   : > { %v4442_v37 = vadd.f32 %v7334_v58, %v4213_v36  ;;  %2958 = vmatmul.bf16.gmra.mxu2 %v6004_v31 }
 0x394   : > { %3821 = vmatmul.bf16.gmra.mxu3 %v6004_v31 }
 0x395   : > { %v4667_v39 = vmax.f32 %v4442_v37, 0.0 }
 0x396   : > { %v2919_v41 = vpop.f32.mrf.mxu2  ;;  %v1420_v44 = vpop.f32.mrf.mxu0 }
 0x397   : > { %v3782_v42 = vpop.f32.mrf.mxu3  ;;  %v6315_v43 = vpack.c.bf16 %v4667_v39, %v4666_v38  ;;  %v2058_v45 = vpop.f32.mrf.mxu1  ;;  %v3351_v46 = vmax.f32 %v2488_v40, %v2919_v41 }
 0x398   : > { %v2489_v48 = vmax.f32 %v1420_v44, %v2058_v45 }
 0x399   : > { %6699 = vst [vmem:[%s7168_s18 + $0x158] sm:$0xff] %v6315_v43   ;;  %v4214_v47 = vmax.f32 %v3351_v46, %v3782_v42 }
 0x39b   : > { %v4443_v56 = vadd.f32 %v7334_v58, %v4214_v47 }
 0x39d   : > { %v4668_v59 = vmax.f32 %v4443_v56, 0.0 }
 0x39e   : > { %v2921_v49 = vpop.f32.mrf.mxu2  ;;  %v1423_v54 = vpop.f32.mrf.mxu0 }
 0x39f   : > { %v3784_v51 = vpop.f32.mrf.mxu3  ;;  %v3352_v53 = vmax.f32 %v2489_v48, %v2921_v49  ;;  %v2061_v55 = vpop.f32.mrf.mxu1  ;;  %v6008_v48 = vld [vmem:[%s7142_s26 + $0x1c0] sm:$0xff] }
 0x3a0   : > { %v2490_v61 = vmax.f32 %v1423_v54, %v2061_v55 }
 0x3a1   : > { %v4215_v18 = vmax.f32 %v3352_v53, %v3784_v51  ;;  %1462 = vmatmul.bf16.gmra.mxu0 %v6005_v52 }
 0x3a2   : > { %2100 = vmatmul.bf16.gmra.mxu1 %v6005_v52 }
 0x3a3   : > { %v4444_v57 = vadd.f32 %v7334_v58, %v4215_v18  ;;  %2963 = vmatmul.bf16.gmra.mxu2 %v6005_v52 }
 0x3a4   : > { %3826 = vmatmul.bf16.gmra.mxu3 %v6005_v52 }
 0x3a5   : > { %v4669_v60 = vmax.f32 %v4444_v57, 0.0 }
 0x3a6   : > { %v2924_v62 = vpop.f32.mrf.mxu2  ;;  %v1425_v1 = vpop.f32.mrf.mxu0 }
 0x3a7   : > { %v3787_v63 = vpop.f32.mrf.mxu3  ;;  %v6320_v0 = vpack.c.bf16 %v4669_v60, %v4668_v59  ;;  %v2063_v2 = vpop.f32.mrf.mxu1  ;;  %v3353_v3 = vmax.f32 %v2490_v61, %v2924_v62 }
 0x3a8   : > { %v2491_v5 = vmax.f32 %v1425_v1, %v2063_v2 }
 0x3a9   : > { %6700 = vst [vmem:[%s7168_s18 + $0x160] sm:$0xff] %v6320_v0   ;;  %v4216_v4 = vmax.f32 %v3353_v3, %v3787_v63 }
 0x3ab   : > { %v4445_v12 = vadd.f32 %v7334_v58, %v4216_v4 }
 0x3ad   : > { %v4670_v15 = vmax.f32 %v4445_v12, 0.0 }
 0x3ae   : > { %v2926_v6 = vpop.f32.mrf.mxu2  ;;  %v1428_v10 = vpop.f32.mrf.mxu0 }
 0x3af   : > { %v3789_v7 = vpop.f32.mrf.mxu3  ;;  %v3354_v9 = vmax.f32 %v2491_v5, %v2926_v6  ;;  %v2066_v11 = vpop.f32.mrf.mxu1  ;;  %v6009_v5 = vld [vmem:[%s7142_s26 + $0x1c8] sm:$0xff] }
 0x3b0   : > { %v2492_v17 = vmax.f32 %v1428_v10, %v2066_v11 }
 0x3b1   : > { %v4217_v13 = vmax.f32 %v3354_v9, %v3789_v7  ;;  %1467 = vmatmul.bf16.gmra.mxu0 %v6006_v8 }
 0x3b2   : > { %2105 = vmatmul.bf16.gmra.mxu1 %v6006_v8 }
 0x3b3   : > { %v4446_v14 = vadd.f32 %v7334_v58, %v4217_v13  ;;  %2968 = vmatmul.bf16.gmra.mxu2 %v6006_v8 }
 0x3b4   : > { %3831 = vmatmul.bf16.gmra.mxu3 %v6006_v8 }
 0x3b5   : > { %v4671_v16 = vmax.f32 %v4446_v14, 0.0 }
 0x3b6   : > { %v2929_v19 = vpop.f32.mrf.mxu2  ;;  %v1430_v22 = vpop.f32.mrf.mxu0 }
 0x3b7   : > { %v3792_v20 = vpop.f32.mrf.mxu3  ;;  %v6325_v21 = vpack.c.bf16 %v4671_v16, %v4670_v15  ;;  %v2068_v23 = vpop.f32.mrf.mxu1  ;;  %v3355_v24 = vmax.f32 %v2492_v17, %v2929_v19 }
 0x3b8   : > { %v2493_v26 = vmax.f32 %v1430_v22, %v2068_v23 }
 0x3b9   : > { %6701 = vst [vmem:[%s7168_s18 + $0x168] sm:$0xff] %v6325_v21   ;;  %v4218_v25 = vmax.f32 %v3355_v24, %v3792_v20 }
 0x3bb   : > { %v4447_v32 = vadd.f32 %v7334_v58, %v4218_v25 }
 0x3bd   : > { %v4672_v35 = vmax.f32 %v4447_v32, 0.0 }
 0x3be   : > { %v2931_v27 = vpop.f32.mrf.mxu2  ;;  %v1433_v30 = vpop.f32.mrf.mxu0 }
 0x3bf   : > { %v3794_v50 = vpop.f32.mrf.mxu3  ;;  %v3356_v29 = vmax.f32 %v2493_v26, %v2931_v27  ;;  %v2071_v31 = vpop.f32.mrf.mxu1  ;;  %v6010_v26 = vld [vmem:[%s7142_s26 + $0x1d0] sm:$0xff] }
 0x3c0   : > { %v2494_v37 = vmax.f32 %v1433_v30, %v2071_v31 }
 0x3c1   : > { %v4219_v33 = vmax.f32 %v3356_v29, %v3794_v50  ;;  %1472 = vmatmul.bf16.gmra.mxu0 %v6007_v28 }
 0x3c2   : > { %2110 = vmatmul.bf16.gmra.mxu1 %v6007_v28 }
 0x3c3   : > { %v4448_v34 = vadd.f32 %v7334_v58, %v4219_v33  ;;  %2973 = vmatmul.bf16.gmra.mxu2 %v6007_v28 }
 0x3c4   : > { %3836 = vmatmul.bf16.gmra.mxu3 %v6007_v28 }
 0x3c5   : > { %v4673_v36 = vmax.f32 %v4448_v34, 0.0 }
 0x3c6   : > { %v2934_v38 = vpop.f32.mrf.mxu2  ;;  %v1435_v41 = vpop.f32.mrf.mxu0 }
 0x3c7   : > { %v3797_v39 = vpop.f32.mrf.mxu3  ;;  %v6330_v40 = vpack.c.bf16 %v4673_v36, %v4672_v35  ;;  %v2073_v42 = vpop.f32.mrf.mxu1  ;;  %v3357_v43 = vmax.f32 %v2494_v37, %v2934_v38 }
 0x3c8   : > { %v2495_v45 = vmax.f32 %v1435_v41, %v2073_v42 }
 0x3c9   : > { %6702 = vst [vmem:[%s7168_s18 + $0x170] sm:$0xff] %v6330_v40   ;;  %v4220_v44 = vmax.f32 %v3357_v43, %v3797_v39 }
 0x3cb   : > { %v4449_v53 = vadd.f32 %v7334_v58, %v4220_v44 }
 0x3cd   : > { %v4674_v56 = vmax.f32 %v4449_v53, 0.0 }
 0x3ce   : > { %v2936_v46 = vpop.f32.mrf.mxu2  ;;  %v1438_v51 = vpop.f32.mrf.mxu0 }
 0x3cf   : > { %v3799_v47 = vpop.f32.mrf.mxu3  ;;  %v3358_v49 = vmax.f32 %v2495_v45, %v2936_v46  ;;  %v2076_v52 = vpop.f32.mrf.mxu1  ;;  %v6011_v45 = vld [vmem:[%s7142_s26 + $0x1d8] sm:$0xff] }
 0x3d0   : > { %v2496_v57 = vmax.f32 %v1438_v51, %v2076_v52 }
 0x3d1   : > { %v4221_v54 = vmax.f32 %v3358_v49, %v3799_v47  ;;  %1477 = vmatmul.bf16.gmra.mxu0 %v6008_v48 }
 0x3d2   : > { %2115 = vmatmul.bf16.gmra.mxu1 %v6008_v48 }
 0x3d3   : > { %v4450_v55 = vadd.f32 %v7334_v58, %v4221_v54  ;;  %2978 = vmatmul.bf16.gmra.mxu2 %v6008_v48 }
 0x3d4   : > { %3841 = vmatmul.bf16.gmra.mxu3 %v6008_v48 }
 0x3d5   : > { %v4675_v18 = vmax.f32 %v4450_v55, 0.0 }
 0x3d6   : > { %v2939_v59 = vpop.f32.mrf.mxu2  ;;  %v1440_v62 = vpop.f32.mrf.mxu0 }
 0x3d7   : > { %v3802_v60 = vpop.f32.mrf.mxu3  ;;  %v6335_v61 = vpack.c.bf16 %v4675_v18, %v4674_v56  ;;  %v2078_v63 = vpop.f32.mrf.mxu1  ;;  %v3359_v0 = vmax.f32 %v2496_v57, %v2939_v59 }
 0x3d8   : > { %v2497_v2 = vmax.f32 %v1440_v62, %v2078_v63 }
 0x3d9   : > { %6703 = vst [vmem:[%s7168_s18 + $0x178] sm:$0xff] %v6335_v61   ;;  %v4222_v1 = vmax.f32 %v3359_v0, %v3802_v60 }
 0x3db   : > { %v4451_v9 = vadd.f32 %v7334_v58, %v4222_v1 }
 0x3dd   : > { %v4676_v12 = vmax.f32 %v4451_v9, 0.0 }
 0x3de   : > { %v2941_v3 = vpop.f32.mrf.mxu2  ;;  %v1443_v7 = vpop.f32.mrf.mxu0 }
 0x3df   : > { %v3804_v4 = vpop.f32.mrf.mxu3  ;;  %v3360_v6 = vmax.f32 %v2497_v2, %v2941_v3  ;;  %v2081_v8 = vpop.f32.mrf.mxu1  ;;  %v6012_v2 = vld [vmem:[%s7142_s26 + $0x1e0] sm:$0xff] }
 0x3e0   : > { %v2498_v14 = vmax.f32 %v1443_v7, %v2081_v8 }
 0x3e1   : > { %v4223_v10 = vmax.f32 %v3360_v6, %v3804_v4  ;;  %1482 = vmatmul.bf16.gmra.mxu0 %v6009_v5 }
 0x3e2   : > { %2120 = vmatmul.bf16.gmra.mxu1 %v6009_v5 }
 0x3e3   : > { %v4452_v11 = vadd.f32 %v7334_v58, %v4223_v10  ;;  %2983 = vmatmul.bf16.gmra.mxu2 %v6009_v5 }
 0x3e4   : > { %3846 = vmatmul.bf16.gmra.mxu3 %v6009_v5 }
 0x3e5   : > { %v4677_v13 = vmax.f32 %v4452_v11, 0.0 }
 0x3e6   : > { %v2944_v15 = vpop.f32.mrf.mxu2  ;;  %v1445_v19 = vpop.f32.mrf.mxu0 }
 0x3e7   : > { %v3807_v16 = vpop.f32.mrf.mxu3  ;;  %v6340_v17 = vpack.c.bf16 %v4677_v13, %v4676_v12  ;;  %v2083_v20 = vpop.f32.mrf.mxu1  ;;  %v3361_v21 = vmax.f32 %v2498_v14, %v2944_v15 }
 0x3e8   : > { %v2499_v23 = vmax.f32 %v1445_v19, %v2083_v20 }
 0x3e9   : > { %6704 = vst [vmem:[%s7168_s18 + $0x180] sm:$0xff] %v6340_v17   ;;  %v4224_v22 = vmax.f32 %v3361_v21, %v3807_v16 }
 0x3eb   : > { %v4453_v29 = vadd.f32 %v7334_v58, %v4224_v22 }
 0x3ed   : > { %v4678_v32 = vmax.f32 %v4453_v29, 0.0 }
 0x3ee   : > { %v2946_v24 = vpop.f32.mrf.mxu2  ;;  %v1448_v50 = vpop.f32.mrf.mxu0 }
 0x3ef   : > { %v3809_v25 = vpop.f32.mrf.mxu3  ;;  %v3362_v27 = vmax.f32 %v2499_v23, %v2946_v24  ;;  %v2086_v28 = vpop.f32.mrf.mxu1  ;;  %v6013_v23 = vld [vmem:[%s7142_s26 + $0x1e8] sm:$0xff] }
 0x3f0   : > { %v2500_v34 = vmax.f32 %v1448_v50, %v2086_v28 }
 0x3f1   : > { %v4225_v30 = vmax.f32 %v3362_v27, %v3809_v25  ;;  %1487 = vmatmul.bf16.gmra.mxu0 %v6010_v26 }
 0x3f2   : > { %2125 = vmatmul.bf16.gmra.mxu1 %v6010_v26 }
 0x3f3   : > { %v4454_v31 = vadd.f32 %v7334_v58, %v4225_v30  ;;  %2988 = vmatmul.bf16.gmra.mxu2 %v6010_v26 }
 0x3f4   : > { %3851 = vmatmul.bf16.gmra.mxu3 %v6010_v26 }
 0x3f5   : > { %v4679_v33 = vmax.f32 %v4454_v31, 0.0 }
 0x3f6   : > { %v2949_v35 = vpop.f32.mrf.mxu2  ;;  %v1450_v38 = vpop.f32.mrf.mxu0 }
 0x3f7   : > { %v3812_v36 = vpop.f32.mrf.mxu3  ;;  %v6345_v37 = vpack.c.bf16 %v4679_v33, %v4678_v32  ;;  %v2088_v39 = vpop.f32.mrf.mxu1  ;;  %v3363_v40 = vmax.f32 %v2500_v34, %v2949_v35 }
 0x3f8   : > { %v2501_v42 = vmax.f32 %v1450_v38, %v2088_v39 }
 0x3f9   : > { %6705 = vst [vmem:[%s7168_s18 + $0x188] sm:$0xff] %v6345_v37   ;;  %v4226_v41 = vmax.f32 %v3363_v40, %v3812_v36 }
 0x3fb   : > { %v4455_v49 = vadd.f32 %v7334_v58, %v4226_v41 }
 0x3fd   : > { %v4680_v53 = vmax.f32 %v4455_v49, 0.0 }
 0x3fe   : > { %v2951_v43 = vpop.f32.mrf.mxu2  ;;  %v1453_v47 = vpop.f32.mrf.mxu0 }
 0x3ff   : > { %v3814_v44 = vpop.f32.mrf.mxu3  ;;  %v3364_v46 = vmax.f32 %v2501_v42, %v2951_v43  ;;  %v2091_v48 = vpop.f32.mrf.mxu1  ;;  %v6014_v42 = vld [vmem:[%s7142_s26 + $0x1f0] sm:$0xff] }
 0x400   : > { %v2502_v55 = vmax.f32 %v1453_v47, %v2091_v48 }
 0x401   : > { %v4227_v51 = vmax.f32 %v3364_v46, %v3814_v44  ;;  %1492 = vmatmul.bf16.gmra.mxu0 %v6011_v45 }
 0x402   : > { %2130 = vmatmul.bf16.gmra.mxu1 %v6011_v45 }
 0x403   : > { %v4456_v52 = vadd.f32 %v7334_v58, %v4227_v51  ;;  %2993 = vmatmul.bf16.gmra.mxu2 %v6011_v45 }
 0x404   : > { %3856 = vmatmul.bf16.gmra.mxu3 %v6011_v45 }
 0x405   : > { %v4681_v54 = vmax.f32 %v4456_v52, 0.0 }
 0x406   : > { %v2954_v56 = vpop.f32.mrf.mxu2  ;;  %v1455_v59 = vpop.f32.mrf.mxu0 }
 0x407   : > { %v3817_v18 = vpop.f32.mrf.mxu3  ;;  %v6350_v57 = vpack.c.bf16 %v4681_v54, %v4680_v53  ;;  %v2093_v60 = vpop.f32.mrf.mxu1  ;;  %v3365_v61 = vmax.f32 %v2502_v55, %v2954_v56 }
 0x408   : > { %v2503_v63 = vmax.f32 %v1455_v59, %v2093_v60 }
 0x409   : > { %6706 = vst [vmem:[%s7168_s18 + $0x190] sm:$0xff] %v6350_v57   ;;  %v4228_v62 = vmax.f32 %v3365_v61, %v3817_v18 }
 0x40b   : > { %v4457_v6 = vadd.f32 %v7334_v58, %v4228_v62 }
 0x40d   : > { %v4682_v9 = vmax.f32 %v4457_v6, 0.0 }
 0x40e   : > { %v2956_v0 = vpop.f32.mrf.mxu2  ;;  %v1458_v4 = vpop.f32.mrf.mxu0 }
 0x40f   : > { %v3819_v1 = vpop.f32.mrf.mxu3  ;;  %v3366_v3 = vmax.f32 %v2503_v63, %v2956_v0  ;;  %v2096_v5 = vpop.f32.mrf.mxu1  ;;  %v6015_v63 = vld [vmem:[%s7142_s26 + $0x1f8] sm:$0xff] }
 0x410   : > { %v2504_v11 = vmax.f32 %v1458_v4, %v2096_v5 }
 0x411   : > { %v4229_v7 = vmax.f32 %v3366_v3, %v3819_v1  ;;  %1497 = vmatmul.bf16.gmra.mxu0 %v6012_v2 }
 0x412   : > { %2135 = vmatmul.bf16.gmra.mxu1 %v6012_v2 }
 0x413   : > { %v4458_v8 = vadd.f32 %v7334_v58, %v4229_v7  ;;  %2998 = vmatmul.bf16.gmra.mxu2 %v6012_v2 }
 0x414   : > { %3861 = vmatmul.bf16.gmra.mxu3 %v6012_v2 }
 0x415   : > { %v4683_v10 = vmax.f32 %v4458_v8, 0.0 }
 0x416   : > { %v2959_v12 = vpop.f32.mrf.mxu2  ;;  %v1460_v15 = vpop.f32.mrf.mxu0 }
 0x417   : > { %v3822_v13 = vpop.f32.mrf.mxu3  ;;  %v6355_v14 = vpack.c.bf16 %v4683_v10, %v4682_v9  ;;  %v2098_v16 = vpop.f32.mrf.mxu1  ;;  %v3367_v17 = vmax.f32 %v2504_v11, %v2959_v12 }
 0x418   : > { %v2505_v20 = vmax.f32 %v1460_v15, %v2098_v16 }
 0x419   : > { %6707 = vst [vmem:[%s7168_s18 + $0x198] sm:$0xff] %v6355_v14   ;;  %v4230_v19 = vmax.f32 %v3367_v17, %v3822_v13 }
 0x41b   : > { %v4459_v27 = vadd.f32 %v7334_v58, %v4230_v19 }
 0x41d   : > { %v4684_v29 = vmax.f32 %v4459_v27, 0.0 }
 0x41e   : > { %v2961_v21 = vpop.f32.mrf.mxu2  ;;  %v1463_v25 = vpop.f32.mrf.mxu0 }
 0x41f   : > { %v3824_v22 = vpop.f32.mrf.mxu3  ;;  %v3368_v24 = vmax.f32 %v2505_v20, %v2961_v21  ;;  %v2101_v26 = vpop.f32.mrf.mxu1  ;;  %v6016_v20 = vld [vmem:[%s7142_s26 + $0x200] sm:$0xff] }
 0x420   : > { %v2506_v31 = vmax.f32 %v1463_v25, %v2101_v26 }
 0x421   : > { %v4231_v50 = vmax.f32 %v3368_v24, %v3824_v22  ;;  %1502 = vmatmul.bf16.gmra.mxu0 %v6013_v23 }
 0x422   : > { %2140 = vmatmul.bf16.gmra.mxu1 %v6013_v23 }
 0x423   : > { %v4460_v28 = vadd.f32 %v7334_v58, %v4231_v50  ;;  %3003 = vmatmul.bf16.gmra.mxu2 %v6013_v23 }
 0x424   : > { %3866 = vmatmul.bf16.gmra.mxu3 %v6013_v23 }
 0x425   : > { %v4685_v30 = vmax.f32 %v4460_v28, 0.0 }
 0x426   : > { %v2964_v32 = vpop.f32.mrf.mxu2  ;;  %v1465_v35 = vpop.f32.mrf.mxu0 }
 0x427   : > { %v3827_v33 = vpop.f32.mrf.mxu3  ;;  %v6360_v34 = vpack.c.bf16 %v4685_v30, %v4684_v29  ;;  %v2103_v36 = vpop.f32.mrf.mxu1  ;;  %v3369_v37 = vmax.f32 %v2506_v31, %v2964_v32 }
 0x428   : > { %v2507_v39 = vmax.f32 %v1465_v35, %v2103_v36 }
 0x429   : > { %6708 = vst [vmem:[%s7168_s18 + $0x1a0] sm:$0xff] %v6360_v34   ;;  %v4232_v38 = vmax.f32 %v3369_v37, %v3827_v33 }
 0x42b   : > { %v4461_v46 = vadd.f32 %v7334_v58, %v4232_v38 }
 0x42d   : > { %v4686_v49 = vmax.f32 %v4461_v46, 0.0 }
 0x42e   : > { %v2966_v40 = vpop.f32.mrf.mxu2  ;;  %v1468_v44 = vpop.f32.mrf.mxu0 }
 0x42f   : > { %v3829_v41 = vpop.f32.mrf.mxu3  ;;  %v3370_v43 = vmax.f32 %v2507_v39, %v2966_v40  ;;  %v2106_v45 = vpop.f32.mrf.mxu1  ;;  %v6017_v39 = vld [vmem:[%s7142_s26 + $0x208] sm:$0xff] }
 0x430   : > { %v2508_v52 = vmax.f32 %v1468_v44, %v2106_v45 }
 0x431   : > { %v4233_v47 = vmax.f32 %v3370_v43, %v3829_v41  ;;  %1507 = vmatmul.bf16.gmra.mxu0 %v6014_v42 }
 0x432   : > { %2145 = vmatmul.bf16.gmra.mxu1 %v6014_v42 }
 0x433   : > { %v4462_v48 = vadd.f32 %v7334_v58, %v4233_v47  ;;  %3008 = vmatmul.bf16.gmra.mxu2 %v6014_v42 }
 0x434   : > { %3871 = vmatmul.bf16.gmra.mxu3 %v6014_v42 }
 0x435   : > { %v4687_v51 = vmax.f32 %v4462_v48, 0.0 }
 0x436   : > { %v2969_v53 = vpop.f32.mrf.mxu2  ;;  %v1470_v56 = vpop.f32.mrf.mxu0 }
 0x437   : > { %v3832_v54 = vpop.f32.mrf.mxu3  ;;  %v6365_v55 = vpack.c.bf16 %v4687_v51, %v4686_v49  ;;  %v2108_v18 = vpop.f32.mrf.mxu1  ;;  %v3371_v57 = vmax.f32 %v2508_v52, %v2969_v53 }
 0x438   : > { %v2509_v60 = vmax.f32 %v1470_v56, %v2108_v18 }
 0x439   : > { %6709 = vst [vmem:[%s7168_s18 + $0x1a8] sm:$0xff] %v6365_v55   ;;  %v4234_v59 = vmax.f32 %v3371_v57, %v3832_v54 }
 0x43b   : > { %v4463_v3 = vadd.f32 %v7334_v58, %v4234_v59 }
 0x43d   : > { %v4688_v6 = vmax.f32 %v4463_v3, 0.0 }
 0x43e   : > { %v2971_v61 = vpop.f32.mrf.mxu2  ;;  %v1473_v1 = vpop.f32.mrf.mxu0 }
 0x43f   : > { %v3834_v62 = vpop.f32.mrf.mxu3  ;;  %v3372_v0 = vmax.f32 %v2509_v60, %v2971_v61  ;;  %v2111_v2 = vpop.f32.mrf.mxu1  ;;  %v6018_v60 = vld [vmem:[%s7142_s26 + $0x210] sm:$0xff] }
 0x440   : > { %v2510_v8 = vmax.f32 %v1473_v1, %v2111_v2 }
 0x441   : > { %v4235_v4 = vmax.f32 %v3372_v0, %v3834_v62  ;;  %1512 = vmatmul.bf16.gmra.mxu0 %v6015_v63 }
 0x442   : > { %2150 = vmatmul.bf16.gmra.mxu1 %v6015_v63 }
 0x443   : > { %v4464_v5 = vadd.f32 %v7334_v58, %v4235_v4  ;;  %3013 = vmatmul.bf16.gmra.mxu2 %v6015_v63 }
 0x444   : > { %3876 = vmatmul.bf16.gmra.mxu3 %v6015_v63 }
 0x445   : > { %v4689_v7 = vmax.f32 %v4464_v5, 0.0 }
 0x446   : > { %v2974_v9 = vpop.f32.mrf.mxu2  ;;  %v1475_v12 = vpop.f32.mrf.mxu0 }
 0x447   : > { %v3837_v10 = vpop.f32.mrf.mxu3  ;;  %v6370_v11 = vpack.c.bf16 %v4689_v7, %v4688_v6  ;;  %v2113_v13 = vpop.f32.mrf.mxu1  ;;  %v3373_v14 = vmax.f32 %v2510_v8, %v2974_v9 }
 0x448   : > { %v2511_v16 = vmax.f32 %v1475_v12, %v2113_v13 }
 0x449   : > { %6710 = vst [vmem:[%s7168_s18 + $0x1b0] sm:$0xff] %v6370_v11   ;;  %v4236_v15 = vmax.f32 %v3373_v14, %v3837_v10 }
 0x44b   : > { %v4465_v24 = vadd.f32 %v7334_v58, %v4236_v15 }
 0x44d   : > { %v4690_v27 = vmax.f32 %v4465_v24, 0.0 }
 0x44e   : > { %v2976_v17 = vpop.f32.mrf.mxu2  ;;  %v1478_v22 = vpop.f32.mrf.mxu0 }
 0x44f   : > { %v3839_v19 = vpop.f32.mrf.mxu3  ;;  %v3374_v21 = vmax.f32 %v2511_v16, %v2976_v17  ;;  %v2116_v23 = vpop.f32.mrf.mxu1  ;;  %v6019_v16 = vld [vmem:[%s7142_s26 + $0x218] sm:$0xff] }
 0x450   : > { %v2512_v28 = vmax.f32 %v1478_v22, %v2116_v23 }
 0x451   : > { %v4237_v25 = vmax.f32 %v3374_v21, %v3839_v19  ;;  %1517 = vmatmul.bf16.gmra.mxu0 %v6016_v20 }
 0x452   : > { %2155 = vmatmul.bf16.gmra.mxu1 %v6016_v20 }
 0x453   : > { %v4466_v26 = vadd.f32 %v7334_v58, %v4237_v25  ;;  %3018 = vmatmul.bf16.gmra.mxu2 %v6016_v20 }
 0x454   : > { %3881 = vmatmul.bf16.gmra.mxu3 %v6016_v20 }
 0x455   : > { %v4691_v50 = vmax.f32 %v4466_v26, 0.0 }
 0x456   : > { %v2979_v29 = vpop.f32.mrf.mxu2  ;;  %v1480_v32 = vpop.f32.mrf.mxu0 }
 0x457   : > { %v3842_v30 = vpop.f32.mrf.mxu3  ;;  %v6375_v31 = vpack.c.bf16 %v4691_v50, %v4690_v27  ;;  %v2118_v33 = vpop.f32.mrf.mxu1  ;;  %v3375_v34 = vmax.f32 %v2512_v28, %v2979_v29 }
 0x458   : > { %v2513_v36 = vmax.f32 %v1480_v32, %v2118_v33 }
 0x459   : > { %6711 = vst [vmem:[%s7168_s18 + $0x1b8] sm:$0xff] %v6375_v31   ;;  %v4238_v35 = vmax.f32 %v3375_v34, %v3842_v30 }
 0x45b   : > { %v4467_v43 = vadd.f32 %v7334_v58, %v4238_v35 }
 0x45d   : > { %v4692_v46 = vmax.f32 %v4467_v43, 0.0 }
 0x45e   : > { %v2981_v37 = vpop.f32.mrf.mxu2  ;;  %v1483_v41 = vpop.f32.mrf.mxu0 }
 0x45f   : > { %v3844_v38 = vpop.f32.mrf.mxu3  ;;  %v3376_v40 = vmax.f32 %v2513_v36, %v2981_v37  ;;  %v2121_v42 = vpop.f32.mrf.mxu1  ;;  %v6020_v36 = vld [vmem:[%s7142_s26 + $0x220] sm:$0xff] }
 0x460   : > { %v2514_v48 = vmax.f32 %v1483_v41, %v2121_v42 }
 0x461   : > { %v4239_v44 = vmax.f32 %v3376_v40, %v3844_v38  ;;  %1522 = vmatmul.bf16.gmra.mxu0 %v6017_v39 }
 0x462   : > { %2160 = vmatmul.bf16.gmra.mxu1 %v6017_v39 }
 0x463   : > { %v4468_v45 = vadd.f32 %v7334_v58, %v4239_v44  ;;  %3023 = vmatmul.bf16.gmra.mxu2 %v6017_v39 }
 0x464   : > { %3886 = vmatmul.bf16.gmra.mxu3 %v6017_v39 }
 0x465   : > { %v4693_v47 = vmax.f32 %v4468_v45, 0.0 }
 0x466   : > { %v2984_v49 = vpop.f32.mrf.mxu2  ;;  %v1485_v53 = vpop.f32.mrf.mxu0 }
 0x467   : > { %v3847_v51 = vpop.f32.mrf.mxu3  ;;  %v6380_v52 = vpack.c.bf16 %v4693_v47, %v4692_v46  ;;  %v2123_v54 = vpop.f32.mrf.mxu1  ;;  %v3377_v55 = vmax.f32 %v2514_v48, %v2984_v49 }
 0x468   : > { %v2515_v18 = vmax.f32 %v1485_v53, %v2123_v54 }
 0x469   : > { %6712 = vst [vmem:[%s7168_s18 + $0x1c0] sm:$0xff] %v6380_v52   ;;  %v4240_v56 = vmax.f32 %v3377_v55, %v3847_v51 }
 0x46b   : > { %v4469_v0 = vadd.f32 %v7334_v58, %v4240_v56 }
 0x46d   : > { %v4694_v3 = vmax.f32 %v4469_v0, 0.0 }
 0x46e   : > { %v2986_v57 = vpop.f32.mrf.mxu2  ;;  %v1488_v62 = vpop.f32.mrf.mxu0 }
 0x46f   : > { %v3849_v59 = vpop.f32.mrf.mxu3  ;;  %v3378_v61 = vmax.f32 %v2515_v18, %v2986_v57  ;;  %v2126_v63 = vpop.f32.mrf.mxu1  ;;  %v6021_v18 = vld [vmem:[%s7142_s26 + $0x228] sm:$0xff] }
 0x470   : > { %v2516_v5 = vmax.f32 %v1488_v62, %v2126_v63 }
 0x471   : > { %v4241_v1 = vmax.f32 %v3378_v61, %v3849_v59  ;;  %1527 = vmatmul.bf16.gmra.mxu0 %v6018_v60 }
 0x472   : > { %2165 = vmatmul.bf16.gmra.mxu1 %v6018_v60 }
 0x473   : > { %v4470_v2 = vadd.f32 %v7334_v58, %v4241_v1  ;;  %3028 = vmatmul.bf16.gmra.mxu2 %v6018_v60 }
 0x474   : > { %3891 = vmatmul.bf16.gmra.mxu3 %v6018_v60 }
 0x475   : > { %v4695_v4 = vmax.f32 %v4470_v2, 0.0 }
 0x476   : > { %v2989_v6 = vpop.f32.mrf.mxu2  ;;  %v1490_v9 = vpop.f32.mrf.mxu0 }
 0x477   : > { %v3852_v7 = vpop.f32.mrf.mxu3  ;;  %v6385_v8 = vpack.c.bf16 %v4695_v4, %v4694_v3  ;;  %v2128_v10 = vpop.f32.mrf.mxu1  ;;  %v3379_v11 = vmax.f32 %v2516_v5, %v2989_v6 }
 0x478   : > { %v2517_v13 = vmax.f32 %v1490_v9, %v2128_v10 }
 0x479   : > { %6713 = vst [vmem:[%s7168_s18 + $0x1c8] sm:$0xff] %v6385_v8   ;;  %v4242_v12 = vmax.f32 %v3379_v11, %v3852_v7 }
 0x47b   : > { %v4471_v21 = vadd.f32 %v7334_v58, %v4242_v12 }
 0x47d   : > { %v4696_v24 = vmax.f32 %v4471_v21, 0.0 }
 0x47e   : > { %v2991_v14 = vpop.f32.mrf.mxu2  ;;  %v1493_v19 = vpop.f32.mrf.mxu0 }
 0x47f   : > { %v3854_v15 = vpop.f32.mrf.mxu3  ;;  %v3380_v17 = vmax.f32 %v2517_v13, %v2991_v14  ;;  %v2131_v20 = vpop.f32.mrf.mxu1  ;;  %v6022_v13 = vld [vmem:[%s7142_s26 + $0x230] sm:$0xff] }
 0x480   : > { %v2518_v26 = vmax.f32 %v1493_v19, %v2131_v20 }
 0x481   : > { %v4243_v22 = vmax.f32 %v3380_v17, %v3854_v15  ;;  %1532 = vmatmul.bf16.gmra.mxu0 %v6019_v16 }
 0x482   : > { %2170 = vmatmul.bf16.gmra.mxu1 %v6019_v16 }
 0x483   : > { %v4472_v23 = vadd.f32 %v7334_v58, %v4243_v22  ;;  %3033 = vmatmul.bf16.gmra.mxu2 %v6019_v16 }
 0x484   : > { %3896 = vmatmul.bf16.gmra.mxu3 %v6019_v16 }
 0x485   : > { %v4697_v25 = vmax.f32 %v4472_v23, 0.0 }
 0x486   : > { %v2994_v27 = vpop.f32.mrf.mxu2  ;;  %v1495_v29 = vpop.f32.mrf.mxu0 }
 0x487   : > { %v3857_v50 = vpop.f32.mrf.mxu3  ;;  %v6390_v28 = vpack.c.bf16 %v4697_v25, %v4696_v24  ;;  %v2133_v30 = vpop.f32.mrf.mxu1  ;;  %v3381_v31 = vmax.f32 %v2518_v26, %v2994_v27 }
 0x488   : > { %v2519_v33 = vmax.f32 %v1495_v29, %v2133_v30 }
 0x489   : > { %6714 = vst [vmem:[%s7168_s18 + $0x1d0] sm:$0xff] %v6390_v28   ;;  %v4244_v32 = vmax.f32 %v3381_v31, %v3857_v50 }
 0x48b   : > { %v4473_v40 = vadd.f32 %v7334_v58, %v4244_v32 }
 0x48d   : > { %v4698_v43 = vmax.f32 %v4473_v40, 0.0 }
 0x48e   : > { %v2996_v34 = vpop.f32.mrf.mxu2  ;;  %v1498_v38 = vpop.f32.mrf.mxu0 }
 0x48f   : > { %v3859_v35 = vpop.f32.mrf.mxu3  ;;  %v3382_v37 = vmax.f32 %v2519_v33, %v2996_v34  ;;  %v2136_v39 = vpop.f32.mrf.mxu1  ;;  %v6023_v33 = vld [vmem:[%s7142_s26 + $0x238] sm:$0xff] }
 0x490   : > { %v2520_v45 = vmax.f32 %v1498_v38, %v2136_v39 }
 0x491   : > { %v4245_v41 = vmax.f32 %v3382_v37, %v3859_v35  ;;  %1537 = vmatmul.bf16.gmra.mxu0 %v6020_v36 }
 0x492   : > { %2175 = vmatmul.bf16.gmra.mxu1 %v6020_v36 }
 0x493   : > { %v4474_v42 = vadd.f32 %v7334_v58, %v4245_v41  ;;  %3038 = vmatmul.bf16.gmra.mxu2 %v6020_v36 }
 0x494   : > { %3901 = vmatmul.bf16.gmra.mxu3 %v6020_v36  ;;  %v7420_v36 = vld [vmem:[#allocation7] ss:$0 sm:$0xff] }
 0x495   : > { %v4699_v44 = vmax.f32 %v4474_v42, 0.0 }
 0x496   : > { %v2999_v46 = vpop.f32.mrf.mxu2  ;;  %v1500_v49 = vpop.f32.mrf.mxu0 }
 0x497   : > { %v3862_v47 = vpop.f32.mrf.mxu3  ;;  %v6395_v48 = vpack.c.bf16 %v4699_v44, %v4698_v43  ;;  %v2138_v51 = vpop.f32.mrf.mxu1  ;;  %v3383_v52 = vmax.f32 %v2520_v45, %v2999_v46 }
 0x498   : > { %v2521_v54 = vmax.f32 %v1500_v49, %v2138_v51 }
 0x499   : > { %6715 = vst [vmem:[%s7168_s18 + $0x1d8] sm:$0xff] %v6395_v48   ;;  %v4246_v53 = vmax.f32 %v3383_v52, %v3862_v47 }
 0x49b   : > { %v4475_v61 = vadd.f32 %v7334_v58, %v4246_v53 }
 0x49d   : > { %v4700_v0 = vmax.f32 %v4475_v61, 0.0 }
 0x49e   : > { %v3001_v55 = vpop.f32.mrf.mxu2  ;;  %v1503_v59 = vpop.f32.mrf.mxu0 }
 0x49f   : > { %v3864_v56 = vpop.f32.mrf.mxu3  ;;  %v3384_v57 = vmax.f32 %v2521_v54, %v3001_v55  ;;  %v2141_v60 = vpop.f32.mrf.mxu1  ;;  %v6024_v54 = vld [vmem:[%s7142_s26 + $0x240] sm:$0xff] }
 0x4a0   : > { %v2522_v2 = vmax.f32 %v1503_v59, %v2141_v60 }
 0x4a1   : > { %v4247_v62 = vmax.f32 %v3384_v57, %v3864_v56  ;;  %1542 = vmatmul.bf16.gmra.mxu0 %v6021_v18 }
 0x4a2   : > { %2180 = vmatmul.bf16.gmra.mxu1 %v6021_v18 }
 0x4a3   : > { %v4476_v63 = vadd.f32 %v7334_v58, %v4247_v62  ;;  %3043 = vmatmul.bf16.gmra.mxu2 %v6021_v18 }
 0x4a4   : > { %3906 = vmatmul.bf16.gmra.mxu3 %v6021_v18 }
 0x4a5   : > { %v4701_v1 = vmax.f32 %v4476_v63, 0.0 }
 0x4a6   : > { %v3004_v3 = vpop.f32.mrf.mxu2  ;;  %v1505_v6 = vpop.f32.mrf.mxu0 }
 0x4a7   : > { %v3867_v4 = vpop.f32.mrf.mxu3  ;;  %v6400_v5 = vpack.c.bf16 %v4701_v1, %v4700_v0  ;;  %v2143_v7 = vpop.f32.mrf.mxu1  ;;  %v3385_v8 = vmax.f32 %v2522_v2, %v3004_v3 }
 0x4a8   : > { %v2523_v10 = vmax.f32 %v1505_v6, %v2143_v7 }
 0x4a9   : > { %6716 = vst [vmem:[%s7168_s18 + $0x1e0] sm:$0xff] %v6400_v5   ;;  %v4248_v9 = vmax.f32 %v3385_v8, %v3867_v4 }
 0x4ab   : > { %v4477_v17 = vadd.f32 %v7334_v58, %v4248_v9 }
 0x4ad   : > { %v4702_v21 = vmax.f32 %v4477_v17, 0.0 }
 0x4ae   : > { %v3006_v11 = vpop.f32.mrf.mxu2  ;;  %v1508_v15 = vpop.f32.mrf.mxu0 }
 0x4af   : > { %v3869_v12 = vpop.f32.mrf.mxu3  ;;  %v3386_v14 = vmax.f32 %v2523_v10, %v3006_v11  ;;  %v2146_v16 = vpop.f32.mrf.mxu1  ;;  %v6025_v10 = vld [vmem:[%s7142_s26 + $0x248] sm:$0xff] }
 0x4b0   : > { %v2524_v23 = vmax.f32 %v1508_v15, %v2146_v16 }
 0x4b1   : > { %v4249_v19 = vmax.f32 %v3386_v14, %v3869_v12  ;;  %1547 = vmatmul.bf16.gmra.mxu0 %v6022_v13 }
 0x4b2   : > { %2185 = vmatmul.bf16.gmra.mxu1 %v6022_v13 }
 0x4b3   : > { %v4478_v20 = vadd.f32 %v7334_v58, %v4249_v19  ;;  %3048 = vmatmul.bf16.gmra.mxu2 %v6022_v13 }
 0x4b4   : > { %3911 = vmatmul.bf16.gmra.mxu3 %v6022_v13 }
 0x4b5   : > { %v4703_v22 = vmax.f32 %v4478_v20, 0.0 }
 0x4b6   : > { %v3009_v24 = vpop.f32.mrf.mxu2  ;;  %v1510_v27 = vpop.f32.mrf.mxu0 }
 0x4b7   : > { %v3872_v25 = vpop.f32.mrf.mxu3  ;;  %v6405_v26 = vpack.c.bf16 %v4703_v22, %v4702_v21  ;;  %v2148_v50 = vpop.f32.mrf.mxu1  ;;  %v3387_v28 = vmax.f32 %v2524_v23, %v3009_v24 }
 0x4b8   : > { %v2525_v30 = vmax.f32 %v1510_v27, %v2148_v50 }
 0x4b9   : > { %6717 = vst [vmem:[%s7168_s18 + $0x1e8] sm:$0xff] %v6405_v26   ;;  %v4250_v29 = vmax.f32 %v3387_v28, %v3872_v25 }
 0x4bb   : > { %v4479_v37 = vadd.f32 %v7420_v36, %v4250_v29 }
 0x4bd   : > { %v4704_v40 = vmax.f32 %v4479_v37, 0.0 }
 0x4be   : > { %v3011_v31 = vpop.f32.mrf.mxu2  ;;  %v1513_v58 = vpop.f32.mrf.mxu0 }
 0x4bf   : > { %v3874_v32 = vpop.f32.mrf.mxu3  ;;  %v3388_v34 = vmax.f32 %v2525_v30, %v3011_v31  ;;  %v2151_v35 = vpop.f32.mrf.mxu1  ;;  %v6026_v30 = vld [vmem:[%s7142_s26 + $0x250] sm:$0xff] }
 0x4c0   : > { %v2526_v42 = vmax.f32 %v1513_v58, %v2151_v35 }
 0x4c1   : > { %v4251_v38 = vmax.f32 %v3388_v34, %v3874_v32  ;;  %1552 = vmatmul.bf16.gmra.mxu0 %v6023_v33 }
 0x4c2   : > { %2190 = vmatmul.bf16.gmra.mxu1 %v6023_v33 }
 0x4c3   : > { %v4480_v39 = vadd.f32 %v7420_v36, %v4251_v38  ;;  %3053 = vmatmul.bf16.gmra.mxu2 %v6023_v33 }
 0x4c4   : > { %3916 = vmatmul.bf16.gmra.mxu3 %v6023_v33 }
 0x4c5   : > { %v4705_v41 = vmax.f32 %v4480_v39, 0.0 }
 0x4c6   : > { %v3014_v43 = vpop.f32.mrf.mxu2  ;;  %v1515_v46 = vpop.f32.mrf.mxu0 }
 0x4c7   : > { %v3877_v44 = vpop.f32.mrf.mxu3  ;;  %v6410_v45 = vpack.c.bf16 %v4705_v41, %v4704_v40  ;;  %v2153_v47 = vpop.f32.mrf.mxu1  ;;  %v3389_v48 = vmax.f32 %v2526_v42, %v3014_v43 }
 0x4c8   : > { %v2527_v51 = vmax.f32 %v1515_v46, %v2153_v47 }
 0x4c9   : > { %6718 = vst [vmem:[%s7168_s18 + $0x1f0] sm:$0xff] %v6410_v45   ;;  %v4252_v49 = vmax.f32 %v3389_v48, %v3877_v44 }
 0x4cb   : > { %v4481_v57 = vadd.f32 %v7420_v36, %v4252_v49 }
 0x4cd   : > { %v4706_v61 = vmax.f32 %v4481_v57, 0.0 }
 0x4ce   : > { %v3016_v52 = vpop.f32.mrf.mxu2  ;;  %v1518_v56 = vpop.f32.mrf.mxu0 }
 0x4cf   : > { %v3879_v53 = vpop.f32.mrf.mxu3  ;;  %v3390_v55 = vmax.f32 %v2527_v51, %v3016_v52  ;;  %v2156_v18 = vpop.f32.mrf.mxu1  ;;  %v6027_v51 = vld [vmem:[%s7142_s26 + $0x258] sm:$0xff] }
 0x4d0   : > { %v2528_v63 = vmax.f32 %v1518_v56, %v2156_v18 }
 0x4d1   : > { %v4253_v59 = vmax.f32 %v3390_v55, %v3879_v53  ;;  %1557 = vmatmul.bf16.gmra.mxu0 %v6024_v54 }
 0x4d2   : > { %2195 = vmatmul.bf16.gmra.mxu1 %v6024_v54 }
 0x4d3   : > { %v4482_v60 = vadd.f32 %v7420_v36, %v4253_v59  ;;  %3058 = vmatmul.bf16.gmra.mxu2 %v6024_v54 }
 0x4d4   : > { %3921 = vmatmul.bf16.gmra.mxu3 %v6024_v54 }
 0x4d5   : > { %v4707_v62 = vmax.f32 %v4482_v60, 0.0 }
 0x4d6   : > { %v3019_v0 = vpop.f32.mrf.mxu2  ;;  %v1520_v3 = vpop.f32.mrf.mxu0 }
 0x4d7   : > { %v3882_v1 = vpop.f32.mrf.mxu3  ;;  %v6415_v2 = vpack.c.bf16 %v4707_v62, %v4706_v61  ;;  %v2158_v4 = vpop.f32.mrf.mxu1  ;;  %v3391_v5 = vmax.f32 %v2528_v63, %v3019_v0 }
 0x4d8   : > { %v2529_v7 = vmax.f32 %v1520_v3, %v2158_v4 }
 0x4d9   : > { %6719 = vst [vmem:[%s7168_s18 + $0x1f8] sm:$0xff] %v6415_v2   ;;  %v4254_v6 = vmax.f32 %v3391_v5, %v3882_v1 }
 0x4db   : > { %v4483_v14 = vadd.f32 %v7420_v36, %v4254_v6 }
 0x4dd   : > { %v4708_v17 = vmax.f32 %v4483_v14, 0.0 }
 0x4de   : > { %v3021_v8 = vpop.f32.mrf.mxu2  ;;  %v1523_v12 = vpop.f32.mrf.mxu0 }
 0x4df   : > { %v3884_v9 = vpop.f32.mrf.mxu3  ;;  %v3392_v11 = vmax.f32 %v2529_v7, %v3021_v8  ;;  %v2161_v13 = vpop.f32.mrf.mxu1  ;;  %v6028_v7 = vld [vmem:[%s7142_s26 + $0x260] sm:$0xff] }
 0x4e0   : > { %v2530_v20 = vmax.f32 %v1523_v12, %v2161_v13 }
 0x4e1   : > { %v4255_v15 = vmax.f32 %v3392_v11, %v3884_v9  ;;  %1562 = vmatmul.bf16.gmra.mxu0 %v6025_v10 }
 0x4e2   : > { %2200 = vmatmul.bf16.gmra.mxu1 %v6025_v10 }
 0x4e3   : > { %v4484_v16 = vadd.f32 %v7420_v36, %v4255_v15  ;;  %3063 = vmatmul.bf16.gmra.mxu2 %v6025_v10 }
 0x4e4   : > { %3926 = vmatmul.bf16.gmra.mxu3 %v6025_v10 }
 0x4e5   : > { %v4709_v19 = vmax.f32 %v4484_v16, 0.0 }
 0x4e6   : > { %v3024_v21 = vpop.f32.mrf.mxu2  ;;  %v1525_v24 = vpop.f32.mrf.mxu0 }
 0x4e7   : > { %v3887_v22 = vpop.f32.mrf.mxu3  ;;  %v6420_v23 = vpack.c.bf16 %v4709_v19, %v4708_v17  ;;  %v2163_v25 = vpop.f32.mrf.mxu1  ;;  %v3393_v26 = vmax.f32 %v2530_v20, %v3024_v21 }
 0x4e8   : > { %v2531_v50 = vmax.f32 %v1525_v24, %v2163_v25 }
 0x4e9   : > { %6720 = vst [vmem:[%s7168_s18 + $0x200] sm:$0xff] %v6420_v23   ;;  %v4256_v27 = vmax.f32 %v3393_v26, %v3887_v22 }
 0x4eb   : > { %v4485_v34 = vadd.f32 %v7420_v36, %v4256_v27 }
 0x4ed   : > { %v4710_v37 = vmax.f32 %v4485_v34, 0.0 }
 0x4ee   : > { %v3026_v28 = vpop.f32.mrf.mxu2  ;;  %v1528_v32 = vpop.f32.mrf.mxu0 }
 0x4ef   : > { %v3889_v29 = vpop.f32.mrf.mxu3  ;;  %v3394_v31 = vmax.f32 %v2531_v50, %v3026_v28  ;;  %v2166_v33 = vpop.f32.mrf.mxu1  ;;  %v6029_v50 = vld [vmem:[%s7142_s26 + $0x268] sm:$0xff] }
 0x4f0   : > { %v2532_v39 = vmax.f32 %v1528_v32, %v2166_v33 }
 0x4f1   : > { %v4257_v58 = vmax.f32 %v3394_v31, %v3889_v29  ;;  %1567 = vmatmul.bf16.gmra.mxu0 %v6026_v30 }
 0x4f2   : > { %2205 = vmatmul.bf16.gmra.mxu1 %v6026_v30 }
 0x4f3   : > { %v4486_v35 = vadd.f32 %v7420_v36, %v4257_v58  ;;  %3068 = vmatmul.bf16.gmra.mxu2 %v6026_v30 }
 0x4f4   : > { %3931 = vmatmul.bf16.gmra.mxu3 %v6026_v30 }
 0x4f5   : > { %v4711_v38 = vmax.f32 %v4486_v35, 0.0 }
 0x4f6   : > { %v3029_v40 = vpop.f32.mrf.mxu2  ;;  %v1530_v43 = vpop.f32.mrf.mxu0 }
 0x4f7   : > { %v3892_v41 = vpop.f32.mrf.mxu3  ;;  %v6425_v42 = vpack.c.bf16 %v4711_v38, %v4710_v37  ;;  %v2168_v44 = vpop.f32.mrf.mxu1  ;;  %v3395_v45 = vmax.f32 %v2532_v39, %v3029_v40 }
 0x4f8   : > { %v2533_v47 = vmax.f32 %v1530_v43, %v2168_v44 }
 0x4f9   : > { %6721 = vst [vmem:[%s7168_s18 + $0x208] sm:$0xff] %v6425_v42   ;;  %v4258_v46 = vmax.f32 %v3395_v45, %v3892_v41 }
 0x4fb   : > { %v4487_v55 = vadd.f32 %v7420_v36, %v4258_v46 }
 0x4fd   : > { %v4712_v57 = vmax.f32 %v4487_v55, 0.0 }
 0x4fe   : > { %v3031_v48 = vpop.f32.mrf.mxu2  ;;  %v1533_v53 = vpop.f32.mrf.mxu0 }
 0x4ff   : > { %v3894_v49 = vpop.f32.mrf.mxu3  ;;  %v3396_v52 = vmax.f32 %v2533_v47, %v3031_v48  ;;  %v2171_v54 = vpop.f32.mrf.mxu1  ;;  %v6030_v47 = vld [vmem:[%s7142_s26 + $0x270] sm:$0xff] }
 0x500   : > { %v2534_v60 = vmax.f32 %v1533_v53, %v2171_v54 }
 0x501   : > { %v4259_v56 = vmax.f32 %v3396_v52, %v3894_v49  ;;  %1572 = vmatmul.bf16.gmra.mxu0 %v6027_v51 }
 0x502   : > { %2210 = vmatmul.bf16.gmra.mxu1 %v6027_v51 }
 0x503   : > { %v4488_v18 = vadd.f32 %v7420_v36, %v4259_v56  ;;  %3073 = vmatmul.bf16.gmra.mxu2 %v6027_v51 }
 0x504   : > { %3936 = vmatmul.bf16.gmra.mxu3 %v6027_v51 }
 0x505   : > { %v4713_v59 = vmax.f32 %v4488_v18, 0.0 }
 0x506   : > { %v3034_v61 = vpop.f32.mrf.mxu2  ;;  %v1535_v0 = vpop.f32.mrf.mxu0 }
 0x507   : > { %v3897_v62 = vpop.f32.mrf.mxu3  ;;  %v6430_v63 = vpack.c.bf16 %v4713_v59, %v4712_v57  ;;  %v2173_v1 = vpop.f32.mrf.mxu1  ;;  %v3397_v2 = vmax.f32 %v2534_v60, %v3034_v61 }
 0x508   : > { %v2535_v4 = vmax.f32 %v1535_v0, %v2173_v1 }
 0x509   : > { %6722 = vst [vmem:[%s7168_s18 + $0x210] sm:$0xff] %v6430_v63   ;;  %v4260_v3 = vmax.f32 %v3397_v2, %v3897_v62 }
 0x50b   : > { %v4489_v11 = vadd.f32 %v7420_v36, %v4260_v3 }
 0x50d   : > { %v4714_v14 = vmax.f32 %v4489_v11, 0.0 }
 0x50e   : > { %v3036_v5 = vpop.f32.mrf.mxu2  ;;  %v1538_v9 = vpop.f32.mrf.mxu0 }
 0x50f   : > { %v3899_v6 = vpop.f32.mrf.mxu3  ;;  %v3398_v8 = vmax.f32 %v2535_v4, %v3036_v5  ;;  %v2176_v10 = vpop.f32.mrf.mxu1  ;;  %v6031_v4 = vld [vmem:[%s7142_s26 + $0x278] sm:$0xff] }
 0x510   : > { %v2536_v16 = vmax.f32 %v1538_v9, %v2176_v10 }
 0x511   : > { %v4261_v12 = vmax.f32 %v3398_v8, %v3899_v6  ;;  %1577 = vmatmul.bf16.gmra.mxu0 %v6028_v7 }
 0x512   : > { %2215 = vmatmul.bf16.gmra.mxu1 %v6028_v7 }
 0x513   : > { %v4490_v13 = vadd.f32 %v7420_v36, %v4261_v12  ;;  %3078 = vmatmul.bf16.gmra.mxu2 %v6028_v7 }
 0x514   : > { %3941 = vmatmul.bf16.gmra.mxu3 %v6028_v7 }
 0x515   : > { %v4715_v15 = vmax.f32 %v4490_v13, 0.0 }
 0x516   : > { %v3039_v17 = vpop.f32.mrf.mxu2  ;;  %v1540_v21 = vpop.f32.mrf.mxu0 }
 0x517   : > { %v3902_v19 = vpop.f32.mrf.mxu3  ;;  %v6435_v20 = vpack.c.bf16 %v4715_v15, %v4714_v14  ;;  %v2178_v22 = vpop.f32.mrf.mxu1  ;;  %v3399_v23 = vmax.f32 %v2536_v16, %v3039_v17 }
 0x518   : > { %v2537_v25 = vmax.f32 %v1540_v21, %v2178_v22 }
 0x519   : > { %6723 = vst [vmem:[%s7168_s18 + $0x218] sm:$0xff] %v6435_v20   ;;  %v4262_v24 = vmax.f32 %v3399_v23, %v3902_v19 }
 0x51b   : > { %v4491_v31 = vadd.f32 %v7420_v36, %v4262_v24 }
 0x51d   : > { %v4716_v34 = vmax.f32 %v4491_v31, 0.0 }
 0x51e   : > { %v3041_v26 = vpop.f32.mrf.mxu2  ;;  %v1543_v29 = vpop.f32.mrf.mxu0 }
 0x51f   : > { %v3904_v27 = vpop.f32.mrf.mxu3  ;;  %v3400_v28 = vmax.f32 %v2537_v25, %v3041_v26  ;;  %v2181_v30 = vpop.f32.mrf.mxu1  ;;  %v6032_v25 = vld [vmem:[%s7142_s26 + $0x280] sm:$0xff] }
 0x520   : > { %v2538_v35 = vmax.f32 %v1543_v29, %v2181_v30 }
 0x521   : > { %v4263_v32 = vmax.f32 %v3400_v28, %v3904_v27  ;;  %1582 = vmatmul.bf16.gmra.mxu0 %v6029_v50 }
 0x522   : > { %2220 = vmatmul.bf16.gmra.mxu1 %v6029_v50 }
 0x523   : > { %v4492_v33 = vadd.f32 %v7420_v36, %v4263_v32  ;;  %3083 = vmatmul.bf16.gmra.mxu2 %v6029_v50 }
 0x524   : > { %3946 = vmatmul.bf16.gmra.mxu3 %v6029_v50 }
 0x525   : > { %v4717_v58 = vmax.f32 %v4492_v33, 0.0 }
 0x526   : > { %v3044_v37 = vpop.f32.mrf.mxu2  ;;  %v1545_v40 = vpop.f32.mrf.mxu0 }
 0x527   : > { %v3907_v38 = vpop.f32.mrf.mxu3  ;;  %v6440_v39 = vpack.c.bf16 %v4717_v58, %v4716_v34  ;;  %v2183_v41 = vpop.f32.mrf.mxu1  ;;  %v3401_v42 = vmax.f32 %v2538_v35, %v3044_v37 }
 0x528   : > { %v2539_v44 = vmax.f32 %v1545_v40, %v2183_v41 }
 0x529   : > { %6724 = vst [vmem:[%s7168_s18 + $0x220] sm:$0xff] %v6440_v39   ;;  %v4264_v43 = vmax.f32 %v3401_v42, %v3907_v38 }
 0x52b   : > { %v4493_v52 = vadd.f32 %v7420_v36, %v4264_v43 }
 0x52d   : > { %v4718_v55 = vmax.f32 %v4493_v52, 0.0 }
 0x52e   : > { %v3046_v45 = vpop.f32.mrf.mxu2  ;;  %v1548_v49 = vpop.f32.mrf.mxu0 }
 0x52f   : > { %v3909_v46 = vpop.f32.mrf.mxu3  ;;  %v3402_v48 = vmax.f32 %v2539_v44, %v3046_v45  ;;  %v2186_v51 = vpop.f32.mrf.mxu1  ;;  %v6033_v44 = vld [vmem:[%s7142_s26 + $0x288] sm:$0xff] }
 0x530   : > { %v2540_v18 = vmax.f32 %v1548_v49, %v2186_v51 }
 0x531   : > { %v4265_v53 = vmax.f32 %v3402_v48, %v3909_v46  ;;  %1587 = vmatmul.bf16.gmra.mxu0 %v6030_v47 }
 0x532   : > { %2225 = vmatmul.bf16.gmra.mxu1 %v6030_v47 }
 0x533   : > { %v4494_v54 = vadd.f32 %v7420_v36, %v4265_v53  ;;  %3088 = vmatmul.bf16.gmra.mxu2 %v6030_v47 }
 0x534   : > { %3951 = vmatmul.bf16.gmra.mxu3 %v6030_v47 }
 0x535   : > { %v4719_v56 = vmax.f32 %v4494_v54, 0.0 }
 0x536   : > { %v3049_v57 = vpop.f32.mrf.mxu2  ;;  %v1550_v61 = vpop.f32.mrf.mxu0 }
 0x537   : > { %v3912_v59 = vpop.f32.mrf.mxu3  ;;  %v6445_v60 = vpack.c.bf16 %v4719_v56, %v4718_v55  ;;  %v2188_v62 = vpop.f32.mrf.mxu1  ;;  %v3403_v63 = vmax.f32 %v2540_v18, %v3049_v57 }
 0x538   : > { %v2541_v1 = vmax.f32 %v1550_v61, %v2188_v62 }
 0x539   : > { %6725 = vst [vmem:[%s7168_s18 + $0x228] sm:$0xff] %v6445_v60   ;;  %v4266_v0 = vmax.f32 %v3403_v63, %v3912_v59 }
 0x53b   : > { %v4495_v8 = vadd.f32 %v7420_v36, %v4266_v0 }
 0x53d   : > { %v4720_v11 = vmax.f32 %v4495_v8, 0.0 }
 0x53e   : > { %v3051_v2 = vpop.f32.mrf.mxu2  ;;  %v1553_v6 = vpop.f32.mrf.mxu0 }
 0x53f   : > { %v3914_v3 = vpop.f32.mrf.mxu3  ;;  %v3404_v5 = vmax.f32 %v2541_v1, %v3051_v2  ;;  %v2191_v7 = vpop.f32.mrf.mxu1  ;;  %v6034_v1 = vld [vmem:[%s7142_s26 + $0x290] sm:$0xff] }
 0x540   : > { %v2542_v13 = vmax.f32 %v1553_v6, %v2191_v7 }
 0x541   : > { %v4267_v9 = vmax.f32 %v3404_v5, %v3914_v3  ;;  %1592 = vmatmul.bf16.gmra.mxu0 %v6031_v4 }
 0x542   : > { %2230 = vmatmul.bf16.gmra.mxu1 %v6031_v4 }
 0x543   : > { %v4496_v10 = vadd.f32 %v7420_v36, %v4267_v9  ;;  %3093 = vmatmul.bf16.gmra.mxu2 %v6031_v4 }
 0x544   : > { %3956 = vmatmul.bf16.gmra.mxu3 %v6031_v4 }
 0x545   : > { %v4721_v12 = vmax.f32 %v4496_v10, 0.0 }
 0x546   : > { %v3054_v14 = vpop.f32.mrf.mxu2  ;;  %v1555_v17 = vpop.f32.mrf.mxu0 }
 0x547   : > { %v3917_v15 = vpop.f32.mrf.mxu3  ;;  %v6450_v16 = vpack.c.bf16 %v4721_v12, %v4720_v11  ;;  %v2193_v19 = vpop.f32.mrf.mxu1  ;;  %v3405_v20 = vmax.f32 %v2542_v13, %v3054_v14 }
 0x548   : > { %v2543_v22 = vmax.f32 %v1555_v17, %v2193_v19 }
 0x549   : > { %6726 = vst [vmem:[%s7168_s18 + $0x230] sm:$0xff] %v6450_v16   ;;  %v4268_v21 = vmax.f32 %v3405_v20, %v3917_v15 }
 0x54b   : > { %v4497_v28 = vadd.f32 %v7420_v36, %v4268_v21 }
 0x54d   : > { %v4722_v31 = vmax.f32 %v4497_v28, 0.0 }
 0x54e   : > { %v3056_v23 = vpop.f32.mrf.mxu2  ;;  %v1558_v27 = vpop.f32.mrf.mxu0 }
 0x54f   : > { %v3919_v24 = vpop.f32.mrf.mxu3  ;;  %v3406_v26 = vmax.f32 %v2543_v22, %v3056_v23  ;;  %v2196_v50 = vpop.f32.mrf.mxu1  ;;  %v6035_v22 = vld [vmem:[%s7142_s26 + $0x298] sm:$0xff] }
 0x550   : > { %v2544_v33 = vmax.f32 %v1558_v27, %v2196_v50 }
 0x551   : > { %v4269_v29 = vmax.f32 %v3406_v26, %v3919_v24  ;;  %1597 = vmatmul.bf16.gmra.mxu0 %v6032_v25 }
 0x552   : > { %2235 = vmatmul.bf16.gmra.mxu1 %v6032_v25 }
 0x553   : > { %v4498_v30 = vadd.f32 %v7420_v36, %v4269_v29  ;;  %3098 = vmatmul.bf16.gmra.mxu2 %v6032_v25 }
 0x554   : > { %3961 = vmatmul.bf16.gmra.mxu3 %v6032_v25 }
 0x555   : > { %v4723_v32 = vmax.f32 %v4498_v30, 0.0 }
 0x556   : > { %v3059_v34 = vpop.f32.mrf.mxu2  ;;  %v1560_v37 = vpop.f32.mrf.mxu0 }
 0x557   : > { %v3922_v58 = vpop.f32.mrf.mxu3  ;;  %v6455_v35 = vpack.c.bf16 %v4723_v32, %v4722_v31  ;;  %v2198_v38 = vpop.f32.mrf.mxu1  ;;  %v3407_v39 = vmax.f32 %v2544_v33, %v3059_v34 }
 0x558   : > { %v2545_v41 = vmax.f32 %v1560_v37, %v2198_v38 }
 0x559   : > { %6727 = vst [vmem:[%s7168_s18 + $0x238] sm:$0xff] %v6455_v35   ;;  %v4270_v40 = vmax.f32 %v3407_v39, %v3922_v58 }
 0x55b   : > { %v4499_v48 = vadd.f32 %v7420_v36, %v4270_v40 }
 0x55d   : > { %v4724_v52 = vmax.f32 %v4499_v48, 0.0 }
 0x55e   : > { %v3061_v42 = vpop.f32.mrf.mxu2  ;;  %v1563_v46 = vpop.f32.mrf.mxu0 }
 0x55f   : > { %v3924_v43 = vpop.f32.mrf.mxu3  ;;  %v3408_v45 = vmax.f32 %v2545_v41, %v3061_v42  ;;  %v2201_v47 = vpop.f32.mrf.mxu1  ;;  %v6036_v41 = vld [vmem:[%s7142_s26 + $0x2a0] sm:$0xff] }
 0x560   : > { %v2546_v54 = vmax.f32 %v1563_v46, %v2201_v47 }
 0x561   : > { %v4271_v49 = vmax.f32 %v3408_v45, %v3924_v43  ;;  %1602 = vmatmul.bf16.gmra.mxu0 %v6033_v44 }
 0x562   : > { %2240 = vmatmul.bf16.gmra.mxu1 %v6033_v44 }
 0x563   : > { %v4500_v51 = vadd.f32 %v7420_v36, %v4271_v49  ;;  %3103 = vmatmul.bf16.gmra.mxu2 %v6033_v44 }
 0x564   : > { %3966 = vmatmul.bf16.gmra.mxu3 %v6033_v44 }
 0x565   : > { %v4725_v53 = vmax.f32 %v4500_v51, 0.0 }
 0x566   : > { %v3064_v55 = vpop.f32.mrf.mxu2  ;;  %v1565_v57 = vpop.f32.mrf.mxu0 }
 0x567   : > { %v3927_v56 = vpop.f32.mrf.mxu3  ;;  %v6460_v18 = vpack.c.bf16 %v4725_v53, %v4724_v52  ;;  %v2203_v59 = vpop.f32.mrf.mxu1  ;;  %v3409_v60 = vmax.f32 %v2546_v54, %v3064_v55 }
 0x568   : > { %v2547_v62 = vmax.f32 %v1565_v57, %v2203_v59 }
 0x569   : > { %6728 = vst [vmem:[%s7168_s18 + $0x240] sm:$0xff] %v6460_v18   ;;  %v4272_v61 = vmax.f32 %v3409_v60, %v3927_v56 }
 0x56b   : > { %v4501_v5 = vadd.f32 %v7420_v36, %v4272_v61 }
 0x56d   : > { %v4726_v8 = vmax.f32 %v4501_v5, 0.0 }
 0x56e   : > { %v3066_v63 = vpop.f32.mrf.mxu2  ;;  %v1568_v3 = vpop.f32.mrf.mxu0 }
 0x56f   : > { %v3929_v0 = vpop.f32.mrf.mxu3  ;;  %v3410_v2 = vmax.f32 %v2547_v62, %v3066_v63  ;;  %v2206_v4 = vpop.f32.mrf.mxu1  ;;  %v6037_v62 = vld [vmem:[%s7142_s26 + $0x2a8] sm:$0xff] }
 0x570   : > { %v2548_v10 = vmax.f32 %v1568_v3, %v2206_v4 }
 0x571   : > { %v4273_v6 = vmax.f32 %v3410_v2, %v3929_v0  ;;  %1607 = vmatmul.bf16.gmra.mxu0 %v6034_v1 }
 0x572   : > { %2245 = vmatmul.bf16.gmra.mxu1 %v6034_v1 }
 0x573   : > { %v4502_v7 = vadd.f32 %v7420_v36, %v4273_v6  ;;  %3108 = vmatmul.bf16.gmra.mxu2 %v6034_v1 }
 0x574   : > { %3971 = vmatmul.bf16.gmra.mxu3 %v6034_v1 }
 0x575   : > { %v4727_v9 = vmax.f32 %v4502_v7, 0.0 }
 0x576   : > { %v3069_v11 = vpop.f32.mrf.mxu2  ;;  %v1570_v14 = vpop.f32.mrf.mxu0 }
 0x577   : > { %v3932_v12 = vpop.f32.mrf.mxu3  ;;  %v6465_v13 = vpack.c.bf16 %v4727_v9, %v4726_v8  ;;  %v2208_v15 = vpop.f32.mrf.mxu1  ;;  %v3411_v16 = vmax.f32 %v2548_v10, %v3069_v11 }
 0x578   : > { %v2549_v19 = vmax.f32 %v1570_v14, %v2208_v15 }
 0x579   : > { %6729 = vst [vmem:[%s7168_s18 + $0x248] sm:$0xff] %v6465_v13   ;;  %v4274_v17 = vmax.f32 %v3411_v16, %v3932_v12 }
 0x57b   : > { %v4503_v26 = vadd.f32 %v7420_v36, %v4274_v17 }
 0x57d   : > { %v4728_v28 = vmax.f32 %v4503_v26, 0.0 }
 0x57e   : > { %v3071_v20 = vpop.f32.mrf.mxu2  ;;  %v1573_v24 = vpop.f32.mrf.mxu0 }
 0x57f   : > { %v3934_v21 = vpop.f32.mrf.mxu3  ;;  %v3412_v23 = vmax.f32 %v2549_v19, %v3071_v20  ;;  %v2211_v25 = vpop.f32.mrf.mxu1  ;;  %v6038_v19 = vld [vmem:[%s7142_s26 + $0x2b0] sm:$0xff] }
 0x580   : > { %v2550_v30 = vmax.f32 %v1573_v24, %v2211_v25 }
 0x581   : > { %v4275_v27 = vmax.f32 %v3412_v23, %v3934_v21  ;;  %1612 = vmatmul.bf16.gmra.mxu0 %v6035_v22 }
 0x582   : > { %2250 = vmatmul.bf16.gmra.mxu1 %v6035_v22 }
 0x583   : > { %v4504_v50 = vadd.f32 %v7420_v36, %v4275_v27  ;;  %3113 = vmatmul.bf16.gmra.mxu2 %v6035_v22 }
 0x584   : > { %3976 = vmatmul.bf16.gmra.mxu3 %v6035_v22 }
 0x585   : > { %v4729_v29 = vmax.f32 %v4504_v50, 0.0 }
 0x586   : > { %v3074_v31 = vpop.f32.mrf.mxu2  ;;  %v1575_v34 = vpop.f32.mrf.mxu0 }
 0x587   : > { %v3937_v32 = vpop.f32.mrf.mxu3  ;;  %v6470_v33 = vpack.c.bf16 %v4729_v29, %v4728_v28  ;;  %v2213_v58 = vpop.f32.mrf.mxu1  ;;  %v3413_v35 = vmax.f32 %v2550_v30, %v3074_v31 }
 0x588   : > { %v2551_v38 = vmax.f32 %v1575_v34, %v2213_v58 }
 0x589   : > { %6730 = vst [vmem:[%s7168_s18 + $0x250] sm:$0xff] %v6470_v33   ;;  %v4276_v37 = vmax.f32 %v3413_v35, %v3937_v32 }
 0x58b   : > { %v4505_v45 = vadd.f32 %v7420_v36, %v4276_v37 }
 0x58d   : > { %v4730_v48 = vmax.f32 %v4505_v45, 0.0 }
 0x58e   : > { %v3076_v39 = vpop.f32.mrf.mxu2  ;;  %v1578_v43 = vpop.f32.mrf.mxu0 }
 0x58f   : > { %v3939_v40 = vpop.f32.mrf.mxu3  ;;  %v3414_v42 = vmax.f32 %v2551_v38, %v3076_v39  ;;  %v2216_v44 = vpop.f32.mrf.mxu1  ;;  %v6039_v38 = vld [vmem:[%s7142_s26 + $0x2b8] sm:$0xff] }
 0x590   : > { %v2552_v51 = vmax.f32 %v1578_v43, %v2216_v44 }
 0x591   : > { %v4277_v46 = vmax.f32 %v3414_v42, %v3939_v40  ;;  %1617 = vmatmul.bf16.gmra.mxu0 %v6036_v41 }
 0x592   : > { %2255 = vmatmul.bf16.gmra.mxu1 %v6036_v41 }
 0x593   : > { %v4506_v47 = vadd.f32 %v7420_v36, %v4277_v46  ;;  %3118 = vmatmul.bf16.gmra.mxu2 %v6036_v41 }
 0x594   : > { %3981 = vmatmul.bf16.gmra.mxu3 %v6036_v41 }
 0x595   : > { %v4731_v49 = vmax.f32 %v4506_v47, 0.0 }
 0x596   : > { %v3079_v52 = vpop.f32.mrf.mxu2  ;;  %v1580_v55 = vpop.f32.mrf.mxu0 }
 0x597   : > { %v3942_v53 = vpop.f32.mrf.mxu3  ;;  %v6475_v54 = vpack.c.bf16 %v4731_v49, %v4730_v48  ;;  %v2218_v56 = vpop.f32.mrf.mxu1  ;;  %v3415_v18 = vmax.f32 %v2552_v51, %v3079_v52 }
 0x598   : > { %v2553_v59 = vmax.f32 %v1580_v55, %v2218_v56 }
 0x599   : > { %6731 = vst [vmem:[%s7168_s18 + $0x258] sm:$0xff] %v6475_v54   ;;  %v4278_v57 = vmax.f32 %v3415_v18, %v3942_v53 }
 0x59b   : > { %v4507_v2 = vadd.f32 %v7420_v36, %v4278_v57 }
 0x59d   : > { %v4732_v5 = vmax.f32 %v4507_v2, 0.0 }
 0x59e   : > { %v3081_v60 = vpop.f32.mrf.mxu2  ;;  %v1583_v0 = vpop.f32.mrf.mxu0 }
 0x59f   : > { %v3944_v61 = vpop.f32.mrf.mxu3  ;;  %v3416_v63 = vmax.f32 %v2553_v59, %v3081_v60  ;;  %v2221_v1 = vpop.f32.mrf.mxu1  ;;  %v6040_v59 = vld [vmem:[%s7142_s26 + $0x2c0] sm:$0xff] }
 0x5a0   : > { %v2554_v7 = vmax.f32 %v1583_v0, %v2221_v1 }
 0x5a1   : > { %v4279_v3 = vmax.f32 %v3416_v63, %v3944_v61  ;;  %1622 = vmatmul.bf16.gmra.mxu0 %v6037_v62 }
 0x5a2   : > { %2260 = vmatmul.bf16.gmra.mxu1 %v6037_v62 }
 0x5a3   : > { %v4508_v4 = vadd.f32 %v7420_v36, %v4279_v3  ;;  %3123 = vmatmul.bf16.gmra.mxu2 %v6037_v62 }
 0x5a4   : > { %3986 = vmatmul.bf16.gmra.mxu3 %v6037_v62 }
 0x5a5   : > { %v4733_v6 = vmax.f32 %v4508_v4, 0.0 }
 0x5a6   : > { %v3084_v8 = vpop.f32.mrf.mxu2  ;;  %v1585_v11 = vpop.f32.mrf.mxu0 }
 0x5a7   : > { %v3947_v9 = vpop.f32.mrf.mxu3  ;;  %v6480_v10 = vpack.c.bf16 %v4733_v6, %v4732_v5  ;;  %v2223_v12 = vpop.f32.mrf.mxu1  ;;  %v3417_v13 = vmax.f32 %v2554_v7, %v3084_v8 }
 0x5a8   : > { %v2555_v15 = vmax.f32 %v1585_v11, %v2223_v12 }
 0x5a9   : > { %6732 = vst [vmem:[%s7168_s18 + $0x260] sm:$0xff] %v6480_v10   ;;  %v4280_v14 = vmax.f32 %v3417_v13, %v3947_v9 }
 0x5ab   : > { %v4509_v23 = vadd.f32 %v7420_v36, %v4280_v14 }
 0x5ad   : > { %v4734_v26 = vmax.f32 %v4509_v23, 0.0 }
 0x5ae   : > { %v3086_v16 = vpop.f32.mrf.mxu2  ;;  %v1588_v21 = vpop.f32.mrf.mxu0 }
 0x5af   : > { %v3949_v17 = vpop.f32.mrf.mxu3  ;;  %v3418_v20 = vmax.f32 %v2555_v15, %v3086_v16  ;;  %v2226_v22 = vpop.f32.mrf.mxu1  ;;  %v6041_v15 = vld [vmem:[%s7142_s26 + $0x2c8] sm:$0xff] }
 0x5b0   : > { %v2556_v50 = vmax.f32 %v1588_v21, %v2226_v22 }
 0x5b1   : > { %v4281_v24 = vmax.f32 %v3418_v20, %v3949_v17  ;;  %1627 = vmatmul.bf16.gmra.mxu0 %v6038_v19 }
 0x5b2   : > { %2265 = vmatmul.bf16.gmra.mxu1 %v6038_v19 }
 0x5b3   : > { %v4510_v25 = vadd.f32 %v7420_v36, %v4281_v24  ;;  %3128 = vmatmul.bf16.gmra.mxu2 %v6038_v19 }
 0x5b4   : > { %3991 = vmatmul.bf16.gmra.mxu3 %v6038_v19 }
 0x5b5   : > { %v4735_v27 = vmax.f32 %v4510_v25, 0.0 }
 0x5b6   : > { %v3089_v28 = vpop.f32.mrf.mxu2  ;;  %v1590_v31 = vpop.f32.mrf.mxu0 }
 0x5b7   : > { %v3952_v29 = vpop.f32.mrf.mxu3  ;;  %v6485_v30 = vpack.c.bf16 %v4735_v27, %v4734_v26  ;;  %v2228_v32 = vpop.f32.mrf.mxu1  ;;  %v3419_v33 = vmax.f32 %v2556_v50, %v3089_v28 }
 0x5b8   : > { %v2557_v58 = vmax.f32 %v1590_v31, %v2228_v32 }
 0x5b9   : > { %6733 = vst [vmem:[%s7168_s18 + $0x268] sm:$0xff] %v6485_v30   ;;  %v4282_v34 = vmax.f32 %v3419_v33, %v3952_v29 }
 0x5bb   : > { %v4511_v42 = vadd.f32 %v7420_v36, %v4282_v34 }
 0x5bd   : > { %v4736_v45 = vmax.f32 %v4511_v42, 0.0 }
 0x5be   : > { %v3091_v35 = vpop.f32.mrf.mxu2  ;;  %v1593_v40 = vpop.f32.mrf.mxu0 }
 0x5bf   : > { %v3954_v37 = vpop.f32.mrf.mxu3  ;;  %v3420_v39 = vmax.f32 %v2557_v58, %v3091_v35  ;;  %v2231_v41 = vpop.f32.mrf.mxu1  ;;  %v6042_v58 = vld [vmem:[%s7142_s26 + $0x2d0] sm:$0xff] }
 0x5c0   : > { %v2558_v47 = vmax.f32 %v1593_v40, %v2231_v41 }
 0x5c1   : > { %v4283_v43 = vmax.f32 %v3420_v39, %v3954_v37  ;;  %1632 = vmatmul.bf16.gmra.mxu0 %v6039_v38 }
 0x5c2   : > { %2270 = vmatmul.bf16.gmra.mxu1 %v6039_v38 }
 0x5c3   : > { %v4512_v44 = vadd.f32 %v7420_v36, %v4283_v43  ;;  %3133 = vmatmul.bf16.gmra.mxu2 %v6039_v38 }
 0x5c4   : > { %3996 = vmatmul.bf16.gmra.mxu3 %v6039_v38 }
 0x5c5   : > { %v4737_v46 = vmax.f32 %v4512_v44, 0.0 }
 0x5c6   : > { %v3094_v48 = vpop.f32.mrf.mxu2  ;;  %v1595_v52 = vpop.f32.mrf.mxu0 }
 0x5c7   : > { %v3957_v49 = vpop.f32.mrf.mxu3  ;;  %v6490_v51 = vpack.c.bf16 %v4737_v46, %v4736_v45  ;;  %v2233_v53 = vpop.f32.mrf.mxu1  ;;  %v3421_v54 = vmax.f32 %v2558_v47, %v3094_v48 }
 0x5c8   : > { %v2559_v56 = vmax.f32 %v1595_v52, %v2233_v53 }
 0x5c9   : > { %6734 = vst [vmem:[%s7168_s18 + $0x270] sm:$0xff] %v6490_v51   ;;  %v4284_v55 = vmax.f32 %v3421_v54, %v3957_v49 }
 0x5cb   : > { %v4513_v63 = vadd.f32 %v7420_v36, %v4284_v55 }
 0x5cd   : > { %v4738_v2 = vmax.f32 %v4513_v63, 0.0 }
 0x5ce   : > { %v3096_v18 = vpop.f32.mrf.mxu2  ;;  %v1598_v61 = vpop.f32.mrf.mxu0 }
 0x5cf   : > { %v3959_v57 = vpop.f32.mrf.mxu3  ;;  %v3422_v60 = vmax.f32 %v2559_v56, %v3096_v18  ;;  %v2236_v62 = vpop.f32.mrf.mxu1  ;;  %v6043_v56 = vld [vmem:[%s7142_s26 + $0x2d8] sm:$0xff] }
 0x5d0   : > { %v2560_v4 = vmax.f32 %v1598_v61, %v2236_v62 }
 0x5d1   : > { %v4285_v0 = vmax.f32 %v3422_v60, %v3959_v57  ;;  %1637 = vmatmul.bf16.gmra.mxu0 %v6040_v59 }
 0x5d2   : > { %2275 = vmatmul.bf16.gmra.mxu1 %v6040_v59 }
 0x5d3   : > { %v4514_v1 = vadd.f32 %v7420_v36, %v4285_v0  ;;  %3138 = vmatmul.bf16.gmra.mxu2 %v6040_v59 }
 0x5d4   : > { %4001 = vmatmul.bf16.gmra.mxu3 %v6040_v59 }
 0x5d5   : > { %v4739_v3 = vmax.f32 %v4514_v1, 0.0 }
 0x5d6   : > { %v3099_v5 = vpop.f32.mrf.mxu2  ;;  %v1600_v8 = vpop.f32.mrf.mxu0 }
 0x5d7   : > { %v3962_v6 = vpop.f32.mrf.mxu3  ;;  %v6495_v7 = vpack.c.bf16 %v4739_v3, %v4738_v2  ;;  %v2238_v9 = vpop.f32.mrf.mxu1  ;;  %v3423_v10 = vmax.f32 %v2560_v4, %v3099_v5 }
 0x5d8   : > { %v2561_v12 = vmax.f32 %v1600_v8, %v2238_v9 }
 0x5d9   : > { %6735 = vst [vmem:[%s7168_s18 + $0x278] sm:$0xff] %v6495_v7   ;;  %v4286_v11 = vmax.f32 %v3423_v10, %v3962_v6 }
 0x5db   : > { %v4515_v20 = vadd.f32 %v7420_v36, %v4286_v11 }
 0x5dd   : > { %v4740_v23 = vmax.f32 %v4515_v20, 0.0 }
 0x5de   : > { %v3101_v13 = vpop.f32.mrf.mxu2  ;;  %v1603_v17 = vpop.f32.mrf.mxu0 }
 0x5df   : > { %v3964_v14 = vpop.f32.mrf.mxu3  ;;  %v3424_v16 = vmax.f32 %v2561_v12, %v3101_v13  ;;  %v2241_v19 = vpop.f32.mrf.mxu1  ;;  %v6044_v12 = vld [vmem:[%s7142_s26 + $0x2e0] sm:$0xff] }
 0x5e0   : > { %v2562_v25 = vmax.f32 %v1603_v17, %v2241_v19 }
 0x5e1   : > { %v4287_v21 = vmax.f32 %v3424_v16, %v3964_v14  ;;  %1642 = vmatmul.bf16.gmra.mxu0 %v6041_v15 }
 0x5e2   : > { %2280 = vmatmul.bf16.gmra.mxu1 %v6041_v15 }
 0x5e3   : > { %v4516_v22 = vadd.f32 %v7420_v36, %v4287_v21  ;;  %3143 = vmatmul.bf16.gmra.mxu2 %v6041_v15 }
 0x5e4   : > { %4006 = vmatmul.bf16.gmra.mxu3 %v6041_v15  ;;  %v7506_v15 = vld [vmem:[#allocation7] ss:$0 sm:$0xff] }
 0x5e5   : > { %v4741_v24 = vmax.f32 %v4516_v22, 0.0 }
 0x5e6   : > { %v3104_v26 = vpop.f32.mrf.mxu2  ;;  %v1605_v28 = vpop.f32.mrf.mxu0 }
 0x5e7   : > { %v3967_v27 = vpop.f32.mrf.mxu3  ;;  %v6500_v50 = vpack.c.bf16 %v4741_v24, %v4740_v23  ;;  %v2243_v29 = vpop.f32.mrf.mxu1  ;;  %v3425_v30 = vmax.f32 %v2562_v25, %v3104_v26 }
 0x5e8   : > { %v2563_v32 = vmax.f32 %v1605_v28, %v2243_v29 }
 0x5e9   : > { %6736 = vst [vmem:[%s7168_s18 + $0x280] sm:$0xff] %v6500_v50   ;;  %v4288_v31 = vmax.f32 %v3425_v30, %v3967_v27 }
 0x5eb   : > { %v4517_v39 = vadd.f32 %v7420_v36, %v4288_v31 }
 0x5ed   : > { %v4742_v42 = vmax.f32 %v4517_v39, 0.0 }
 0x5ee   : > { %v3106_v33 = vpop.f32.mrf.mxu2  ;;  %v1608_v37 = vpop.f32.mrf.mxu0 }
 0x5ef   : > { %v3969_v34 = vpop.f32.mrf.mxu3  ;;  %v3426_v35 = vmax.f32 %v2563_v32, %v3106_v33  ;;  %v2246_v38 = vpop.f32.mrf.mxu1  ;;  %v6045_v32 = vld [vmem:[%s7142_s26 + $0x2e8] sm:$0xff] }
 0x5f0   : > { %v2564_v44 = vmax.f32 %v1608_v37, %v2246_v38 }
 0x5f1   : > { %v4289_v40 = vmax.f32 %v3426_v35, %v3969_v34  ;;  %1647 = vmatmul.bf16.gmra.mxu0 %v6042_v58 }
 0x5f2   : > { %2285 = vmatmul.bf16.gmra.mxu1 %v6042_v58 }
 0x5f3   : > { %v4518_v41 = vadd.f32 %v7420_v36, %v4289_v40  ;;  %3148 = vmatmul.bf16.gmra.mxu2 %v6042_v58 }
 0x5f4   : > { %4011 = vmatmul.bf16.gmra.mxu3 %v6042_v58 }
 0x5f5   : > { %v4743_v43 = vmax.f32 %v4518_v41, 0.0 }
 0x5f6   : > { %v3109_v45 = vpop.f32.mrf.mxu2  ;;  %v1610_v48 = vpop.f32.mrf.mxu0 }
 0x5f7   : > { %v3972_v46 = vpop.f32.mrf.mxu3  ;;  %v6505_v47 = vpack.c.bf16 %v4743_v43, %v4742_v42  ;;  %v2248_v49 = vpop.f32.mrf.mxu1  ;;  %v3427_v51 = vmax.f32 %v2564_v44, %v3109_v45 }
 0x5f8   : > { %v2565_v53 = vmax.f32 %v1610_v48, %v2248_v49 }
 0x5f9   : > { %6737 = vst [vmem:[%s7168_s18 + $0x288] sm:$0xff] %v6505_v47   ;;  %v4290_v52 = vmax.f32 %v3427_v51, %v3972_v46 }
 0x5fb   : > { %v4519_v60 = vadd.f32 %v7420_v36, %v4290_v52 }
 0x5fd   : > { %v4744_v63 = vmax.f32 %v4519_v60, 0.0 }
 0x5fe   : > { %v3111_v54 = vpop.f32.mrf.mxu2  ;;  %v1613_v57 = vpop.f32.mrf.mxu0 }
 0x5ff   : > { %v3974_v55 = vpop.f32.mrf.mxu3  ;;  %v3428_v18 = vmax.f32 %v2565_v53, %v3111_v54  ;;  %v2251_v59 = vpop.f32.mrf.mxu1  ;;  %v6046_v53 = vld [vmem:[%s7142_s26 + $0x2f0] sm:$0xff] }
 0x600   : > { %v2566_v1 = vmax.f32 %v1613_v57, %v2251_v59 }
 0x601   : > { %v4291_v61 = vmax.f32 %v3428_v18, %v3974_v55  ;;  %1652 = vmatmul.bf16.gmra.mxu0 %v6043_v56 }
 0x602   : > { %2290 = vmatmul.bf16.gmra.mxu1 %v6043_v56 }
 0x603   : > { %v4520_v62 = vadd.f32 %v7420_v36, %v4291_v61  ;;  %3153 = vmatmul.bf16.gmra.mxu2 %v6043_v56 }
 0x604   : > { %4016 = vmatmul.bf16.gmra.mxu3 %v6043_v56 }
 0x605   : > { %v4745_v0 = vmax.f32 %v4520_v62, 0.0 }
 0x606   : > { %v3114_v2 = vpop.f32.mrf.mxu2  ;;  %v1615_v5 = vpop.f32.mrf.mxu0 }
 0x607   : > { %v3977_v3 = vpop.f32.mrf.mxu3  ;;  %v6510_v4 = vpack.c.bf16 %v4745_v0, %v4744_v63  ;;  %v2253_v6 = vpop.f32.mrf.mxu1  ;;  %v3429_v7 = vmax.f32 %v2566_v1, %v3114_v2 }
 0x608   : > { %v2567_v9 = vmax.f32 %v1615_v5, %v2253_v6 }
 0x609   : > { %6738 = vst [vmem:[%s7168_s18 + $0x290] sm:$0xff] %v6510_v4   ;;  %v4292_v8 = vmax.f32 %v3429_v7, %v3977_v3 }
 0x60b   : > { %v4521_v16 = vadd.f32 %v7506_v15, %v4292_v8 }
 0x60d   : > { %v4746_v20 = vmax.f32 %v4521_v16, 0.0 }
 0x60e   : > { %v3116_v10 = vpop.f32.mrf.mxu2  ;;  %v1618_v36 = vpop.f32.mrf.mxu0 }
 0x60f   : > { %v3979_v11 = vpop.f32.mrf.mxu3  ;;  %v3430_v13 = vmax.f32 %v2567_v9, %v3116_v10  ;;  %v2256_v14 = vpop.f32.mrf.mxu1  ;;  %v6047_v9 = vld [vmem:[%s7142_s26 + $0x2f8] sm:$0xff] }
 0x610   : > { %v2568_v22 = vmax.f32 %v1618_v36, %v2256_v14 }
 0x611   : > { %v4293_v17 = vmax.f32 %v3430_v13, %v3979_v11  ;;  %1657 = vmatmul.bf16.gmra.mxu0 %v6044_v12 }
 0x612   : > { %2295 = vmatmul.bf16.gmra.mxu1 %v6044_v12 }
 0x613   : > { %v4522_v19 = vadd.f32 %v7506_v15, %v4293_v17  ;;  %3158 = vmatmul.bf16.gmra.mxu2 %v6044_v12 }
 0x614   : > { %4021 = vmatmul.bf16.gmra.mxu3 %v6044_v12 }
 0x615   : > { %v4747_v21 = vmax.f32 %v4522_v19, 0.0 }
 0x616   : > { %v3119_v23 = vpop.f32.mrf.mxu2  ;;  %v1620_v26 = vpop.f32.mrf.mxu0 }
 0x617   : > { %v3982_v24 = vpop.f32.mrf.mxu3  ;;  %v6515_v25 = vpack.c.bf16 %v4747_v21, %v4746_v20  ;;  %v2258_v27 = vpop.f32.mrf.mxu1  ;;  %v3431_v50 = vmax.f32 %v2568_v22, %v3119_v23 }
 0x618   : > { %v2569_v29 = vmax.f32 %v1620_v26, %v2258_v27 }
 0x619   : > { %6739 = vst [vmem:[%s7168_s18 + $0x298] sm:$0xff] %v6515_v25   ;;  %v4294_v28 = vmax.f32 %v3431_v50, %v3982_v24 }
 0x61b   : > { %v4523_v35 = vadd.f32 %v7506_v15, %v4294_v28 }
 0x61d   : > { %v4748_v39 = vmax.f32 %v4523_v35, 0.0 }
 0x61e   : > { %v3121_v30 = vpop.f32.mrf.mxu2  ;;  %v1623_v34 = vpop.f32.mrf.mxu0 }
 0x61f   : > { %v3984_v31 = vpop.f32.mrf.mxu3  ;;  %v3432_v33 = vmax.f32 %v2569_v29, %v3121_v30  ;;  %v2261_v58 = vpop.f32.mrf.mxu1  ;;  %v6048_v29 = vld [vmem:[%s7142_s26 + $0x300] sm:$0xff] }
 0x620   : > { %v2570_v41 = vmax.f32 %v1623_v34, %v2261_v58 }
 0x621   : > { %v4295_v37 = vmax.f32 %v3432_v33, %v3984_v31  ;;  %1662 = vmatmul.bf16.gmra.mxu0 %v6045_v32 }
 0x622   : > { %2300 = vmatmul.bf16.gmra.mxu1 %v6045_v32 }
 0x623   : > { %v4524_v38 = vadd.f32 %v7506_v15, %v4295_v37  ;;  %3163 = vmatmul.bf16.gmra.mxu2 %v6045_v32 }
 0x624   : > { %4026 = vmatmul.bf16.gmra.mxu3 %v6045_v32 }
 0x625   : > { %v4749_v40 = vmax.f32 %v4524_v38, 0.0 }
 0x626   : > { %v3124_v42 = vpop.f32.mrf.mxu2  ;;  %v1625_v45 = vpop.f32.mrf.mxu0 }
 0x627   : > { %v3987_v43 = vpop.f32.mrf.mxu3  ;;  %v6520_v44 = vpack.c.bf16 %v4749_v40, %v4748_v39  ;;  %v2263_v46 = vpop.f32.mrf.mxu1  ;;  %v3433_v47 = vmax.f32 %v2570_v41, %v3124_v42 }
 0x628   : > { %v2571_v49 = vmax.f32 %v1625_v45, %v2263_v46 }
 0x629   : > { %6740 = vst [vmem:[%s7168_s18 + $0x2a0] sm:$0xff] %v6520_v44   ;;  %v4296_v48 = vmax.f32 %v3433_v47, %v3987_v43 }
 0x62b   : > { %v4525_v18 = vadd.f32 %v7506_v15, %v4296_v48 }
 0x62d   : > { %v4750_v60 = vmax.f32 %v4525_v18, 0.0 }
 0x62e   : > { %v3126_v51 = vpop.f32.mrf.mxu2  ;;  %v1628_v55 = vpop.f32.mrf.mxu0 }
 0x62f   : > { %v3989_v52 = vpop.f32.mrf.mxu3  ;;  %v3434_v54 = vmax.f32 %v2571_v49, %v3126_v51  ;;  %v2266_v56 = vpop.f32.mrf.mxu1  ;;  %v6049_v49 = vld [vmem:[%s7142_s26 + $0x308] sm:$0xff] }
 0x630   : > { %v2572_v62 = vmax.f32 %v1628_v55, %v2266_v56 }
 0x631   : > { %v4297_v57 = vmax.f32 %v3434_v54, %v3989_v52  ;;  %1667 = vmatmul.bf16.gmra.mxu0 %v6046_v53 }
 0x632   : > { %2305 = vmatmul.bf16.gmra.mxu1 %v6046_v53 }
 0x633   : > { %v4526_v59 = vadd.f32 %v7506_v15, %v4297_v57  ;;  %3168 = vmatmul.bf16.gmra.mxu2 %v6046_v53 }
 0x634   : > { %4031 = vmatmul.bf16.gmra.mxu3 %v6046_v53 }
 0x635   : > { %v4751_v61 = vmax.f32 %v4526_v59, 0.0 }
 0x636   : > { %v3129_v63 = vpop.f32.mrf.mxu2  ;;  %v1630_v2 = vpop.f32.mrf.mxu0 }
 0x637   : > { %v3992_v0 = vpop.f32.mrf.mxu3  ;;  %v6525_v1 = vpack.c.bf16 %v4751_v61, %v4750_v60  ;;  %v2268_v3 = vpop.f32.mrf.mxu1  ;;  %v3435_v4 = vmax.f32 %v2572_v62, %v3129_v63 }
 0x638   : > { %v2573_v6 = vmax.f32 %v1630_v2, %v2268_v3 }
 0x639   : > { %6741 = vst [vmem:[%s7168_s18 + $0x2a8] sm:$0xff] %v6525_v1   ;;  %v4298_v5 = vmax.f32 %v3435_v4, %v3992_v0 }
 0x63b   : > { %v4527_v13 = vadd.f32 %v7506_v15, %v4298_v5 }
 0x63d   : > { %v4752_v16 = vmax.f32 %v4527_v13, 0.0 }
 0x63e   : > { %v3131_v7 = vpop.f32.mrf.mxu2  ;;  %v1633_v11 = vpop.f32.mrf.mxu0 }
 0x63f   : > { %v3994_v8 = vpop.f32.mrf.mxu3  ;;  %v3436_v10 = vmax.f32 %v2573_v6, %v3131_v7  ;;  %v2271_v12 = vpop.f32.mrf.mxu1  ;;  %v6050_v6 = vld [vmem:[%s7142_s26 + $0x310] sm:$0xff] }
 0x640   : > { %v2574_v19 = vmax.f32 %v1633_v11, %v2271_v12 }
 0x641   : > { %v4299_v36 = vmax.f32 %v3436_v10, %v3994_v8  ;;  %1672 = vmatmul.bf16.gmra.mxu0 %v6047_v9 }
 0x642   : > { %2310 = vmatmul.bf16.gmra.mxu1 %v6047_v9 }
 0x643   : > { %v4528_v14 = vadd.f32 %v7506_v15, %v4299_v36  ;;  %3173 = vmatmul.bf16.gmra.mxu2 %v6047_v9 }
 0x644   : > { %4036 = vmatmul.bf16.gmra.mxu3 %v6047_v9 }
 0x645   : > { %v4753_v17 = vmax.f32 %v4528_v14, 0.0 }
 0x646   : > { %v3134_v20 = vpop.f32.mrf.mxu2  ;;  %v1635_v23 = vpop.f32.mrf.mxu0 }
 0x647   : > { %v3997_v21 = vpop.f32.mrf.mxu3  ;;  %v6530_v22 = vpack.c.bf16 %v4753_v17, %v4752_v16  ;;  %v2273_v24 = vpop.f32.mrf.mxu1  ;;  %v3437_v25 = vmax.f32 %v2574_v19, %v3134_v20 }
 0x648   : > { %v2575_v27 = vmax.f32 %v1635_v23, %v2273_v24 }
 0x649   : > { %6742 = vst [vmem:[%s7168_s18 + $0x2b0] sm:$0xff] %v6530_v22   ;;  %v4300_v26 = vmax.f32 %v3437_v25, %v3997_v21 }
 0x64b   : > { %v4529_v33 = vadd.f32 %v7506_v15, %v4300_v26 }
 0x64d   : > { %v4754_v35 = vmax.f32 %v4529_v33, 0.0 }
 0x64e   : > { %v3136_v50 = vpop.f32.mrf.mxu2  ;;  %v1638_v31 = vpop.f32.mrf.mxu0 }
 0x64f   : > { %v3999_v28 = vpop.f32.mrf.mxu3  ;;  %v3438_v30 = vmax.f32 %v2575_v27, %v3136_v50  ;;  %v2276_v32 = vpop.f32.mrf.mxu1  ;;  %v6051_v27 = vld [vmem:[%s7142_s26 + $0x318] sm:$0xff] }
 0x650   : > { %v2576_v38 = vmax.f32 %v1638_v31, %v2276_v32 }
 0x651   : > { %v4301_v34 = vmax.f32 %v3438_v30, %v3999_v28  ;;  %1677 = vmatmul.bf16.gmra.mxu0 %v6048_v29 }
 0x652   : > { %2315 = vmatmul.bf16.gmra.mxu1 %v6048_v29 }
 0x653   : > { %v4530_v58 = vadd.f32 %v7506_v15, %v4301_v34  ;;  %3178 = vmatmul.bf16.gmra.mxu2 %v6048_v29 }
 0x654   : > { %4041 = vmatmul.bf16.gmra.mxu3 %v6048_v29 }
 0x655   : > { %v4755_v37 = vmax.f32 %v4530_v58, 0.0 }
 0x656   : > { %v3139_v39 = vpop.f32.mrf.mxu2  ;;  %v1640_v42 = vpop.f32.mrf.mxu0 }
 0x657   : > { %v4002_v40 = vpop.f32.mrf.mxu3  ;;  %v6535_v41 = vpack.c.bf16 %v4755_v37, %v4754_v35  ;;  %v2278_v43 = vpop.f32.mrf.mxu1  ;;  %v3439_v44 = vmax.f32 %v2576_v38, %v3139_v39 }
 0x658   : > { %v2577_v46 = vmax.f32 %v1640_v42, %v2278_v43 }
 0x659   : > { %6743 = vst [vmem:[%s7168_s18 + $0x2b8] sm:$0xff] %v6535_v41   ;;  %v4302_v45 = vmax.f32 %v3439_v44, %v4002_v40 }
 0x65b   : > { %v4531_v54 = vadd.f32 %v7506_v15, %v4302_v45 }
 0x65d   : > { %v4756_v18 = vmax.f32 %v4531_v54, 0.0 }
 0x65e   : > { %v3141_v47 = vpop.f32.mrf.mxu2  ;;  %v1643_v52 = vpop.f32.mrf.mxu0 }
 0x65f   : > { %v4004_v48 = vpop.f32.mrf.mxu3  ;;  %v3440_v51 = vmax.f32 %v2577_v46, %v3141_v47  ;;  %v2281_v53 = vpop.f32.mrf.mxu1  ;;  %v6052_v46 = vld [vmem:[%s7142_s26 + $0x320] sm:$0xff] }
 0x660   : > { %v2578_v59 = vmax.f32 %v1643_v52, %v2281_v53 }
 0x661   : > { %v4303_v55 = vmax.f32 %v3440_v51, %v4004_v48  ;;  %1682 = vmatmul.bf16.gmra.mxu0 %v6049_v49 }
 0x662   : > { %2320 = vmatmul.bf16.gmra.mxu1 %v6049_v49 }
 0x663   : > { %v4532_v56 = vadd.f32 %v7506_v15, %v4303_v55  ;;  %3183 = vmatmul.bf16.gmra.mxu2 %v6049_v49 }
 0x664   : > { %4046 = vmatmul.bf16.gmra.mxu3 %v6049_v49 }
 0x665   : > { %v4757_v57 = vmax.f32 %v4532_v56, 0.0 }
 0x666   : > { %v3144_v60 = vpop.f32.mrf.mxu2  ;;  %v1645_v63 = vpop.f32.mrf.mxu0 }
 0x667   : > { %v4007_v61 = vpop.f32.mrf.mxu3  ;;  %v6540_v62 = vpack.c.bf16 %v4757_v57, %v4756_v18  ;;  %v2283_v0 = vpop.f32.mrf.mxu1  ;;  %v3441_v1 = vmax.f32 %v2578_v59, %v3144_v60 }
 0x668   : > { %v2579_v3 = vmax.f32 %v1645_v63, %v2283_v0 }
 0x669   : > { %6744 = vst [vmem:[%s7168_s18 + $0x2c0] sm:$0xff] %v6540_v62   ;;  %v4304_v2 = vmax.f32 %v3441_v1, %v4007_v61 }
 0x66b   : > { %v4533_v10 = vadd.f32 %v7506_v15, %v4304_v2 }
 0x66d   : > { %v4758_v13 = vmax.f32 %v4533_v10, 0.0 }
 0x66e   : > { %v3146_v4 = vpop.f32.mrf.mxu2  ;;  %v1648_v8 = vpop.f32.mrf.mxu0 }
 0x66f   : > { %v4009_v5 = vpop.f32.mrf.mxu3  ;;  %v3442_v7 = vmax.f32 %v2579_v3, %v3146_v4  ;;  %v2286_v9 = vpop.f32.mrf.mxu1  ;;  %v6053_v3 = vld [vmem:[%s7142_s26 + $0x328] sm:$0xff] }
 0x670   : > { %v2580_v14 = vmax.f32 %v1648_v8, %v2286_v9 }
 0x671   : > { %v4305_v11 = vmax.f32 %v3442_v7, %v4009_v5  ;;  %1687 = vmatmul.bf16.gmra.mxu0 %v6050_v6 }
 0x672   : > { %2325 = vmatmul.bf16.gmra.mxu1 %v6050_v6 }
 0x673   : > { %v4534_v12 = vadd.f32 %v7506_v15, %v4305_v11  ;;  %3188 = vmatmul.bf16.gmra.mxu2 %v6050_v6 }
 0x674   : > { %4051 = vmatmul.bf16.gmra.mxu3 %v6050_v6 }
 0x675   : > { %v4759_v36 = vmax.f32 %v4534_v12, 0.0 }
 0x676   : > { %v3149_v16 = vpop.f32.mrf.mxu2  ;;  %v1650_v20 = vpop.f32.mrf.mxu0 }
 0x677   : > { %v4012_v17 = vpop.f32.mrf.mxu3  ;;  %v6545_v19 = vpack.c.bf16 %v4759_v36, %v4758_v13  ;;  %v2288_v21 = vpop.f32.mrf.mxu1  ;;  %v3443_v22 = vmax.f32 %v2580_v14, %v3149_v16 }
 0x678   : > { %v2581_v24 = vmax.f32 %v1650_v20, %v2288_v21 }
 0x679   : > { %6745 = vst [vmem:[%s7168_s18 + $0x2c8] sm:$0xff] %v6545_v19   ;;  %v4306_v23 = vmax.f32 %v3443_v22, %v4012_v17 }
 0x67b   : > { %v4535_v30 = vadd.f32 %v7506_v15, %v4306_v23 }
 0x67d   : > { %v4760_v33 = vmax.f32 %v4535_v30, 0.0 }
 0x67e   : > { %v3151_v25 = vpop.f32.mrf.mxu2  ;;  %v1653_v28 = vpop.f32.mrf.mxu0 }
 0x67f   : > { %v4014_v26 = vpop.f32.mrf.mxu3  ;;  %v3444_v50 = vmax.f32 %v2581_v24, %v3151_v25  ;;  %v2291_v29 = vpop.f32.mrf.mxu1  ;;  %v6054_v24 = vld [vmem:[%s7142_s26 + $0x330] sm:$0xff] }
 0x680   : > { %v2582_v58 = vmax.f32 %v1653_v28, %v2291_v29 }
 0x681   : > { %v4307_v31 = vmax.f32 %v3444_v50, %v4014_v26  ;;  %1692 = vmatmul.bf16.gmra.mxu0 %v6051_v27 }
 0x682   : > { %2330 = vmatmul.bf16.gmra.mxu1 %v6051_v27 }
 0x683   : > { %v4536_v32 = vadd.f32 %v7506_v15, %v4307_v31  ;;  %3193 = vmatmul.bf16.gmra.mxu2 %v6051_v27 }
 0x684   : > { %4056 = vmatmul.bf16.gmra.mxu3 %v6051_v27 }
 0x685   : > { %v4761_v34 = vmax.f32 %v4536_v32, 0.0 }
 0x686   : > { %v3154_v35 = vpop.f32.mrf.mxu2  ;;  %v1655_v39 = vpop.f32.mrf.mxu0 }
 0x687   : > { %v4017_v37 = vpop.f32.mrf.mxu3  ;;  %v6550_v38 = vpack.c.bf16 %v4761_v34, %v4760_v33  ;;  %v2293_v40 = vpop.f32.mrf.mxu1  ;;  %v3445_v41 = vmax.f32 %v2582_v58, %v3154_v35 }
 0x688   : > { %v2583_v43 = vmax.f32 %v1655_v39, %v2293_v40 }
 0x689   : > { %6746 = vst [vmem:[%s7168_s18 + $0x2d0] sm:$0xff] %v6550_v38   ;;  %v4308_v42 = vmax.f32 %v3445_v41, %v4017_v37 }
 0x68b   : > { %v4537_v51 = vadd.f32 %v7506_v15, %v4308_v42 }
 0x68d   : > { %v4762_v54 = vmax.f32 %v4537_v51, 0.0 }
 0x68e   : > { %v3156_v44 = vpop.f32.mrf.mxu2  ;;  %v1658_v48 = vpop.f32.mrf.mxu0 }
 0x68f   : > { %v4019_v45 = vpop.f32.mrf.mxu3  ;;  %v3446_v47 = vmax.f32 %v2583_v43, %v3156_v44  ;;  %v2296_v49 = vpop.f32.mrf.mxu1  ;;  %v6055_v43 = vld [vmem:[%s7142_s26 + $0x338] sm:$0xff] }
 0x690   : > { %v2584_v56 = vmax.f32 %v1658_v48, %v2296_v49 }
 0x691   : > { %v4309_v52 = vmax.f32 %v3446_v47, %v4019_v45  ;;  %1697 = vmatmul.bf16.gmra.mxu0 %v6052_v46 }
 0x692   : > { %2335 = vmatmul.bf16.gmra.mxu1 %v6052_v46 }
 0x693   : > { %v4538_v53 = vadd.f32 %v7506_v15, %v4309_v52  ;;  %3198 = vmatmul.bf16.gmra.mxu2 %v6052_v46 }
 0x694   : > { %4061 = vmatmul.bf16.gmra.mxu3 %v6052_v46 }
 0x695   : > { %v4763_v55 = vmax.f32 %v4538_v53, 0.0 }
 0x696   : > { %v3159_v18 = vpop.f32.mrf.mxu2  ;;  %v1660_v60 = vpop.f32.mrf.mxu0 }
 0x697   : > { %v4022_v57 = vpop.f32.mrf.mxu3  ;;  %v6555_v59 = vpack.c.bf16 %v4763_v55, %v4762_v54  ;;  %v2298_v61 = vpop.f32.mrf.mxu1  ;;  %v3447_v62 = vmax.f32 %v2584_v56, %v3159_v18 }
 0x698   : > { %v2585_v0 = vmax.f32 %v1660_v60, %v2298_v61 }
 0x699   : > { %6747 = vst [vmem:[%s7168_s18 + $0x2d8] sm:$0xff] %v6555_v59   ;;  %v4310_v63 = vmax.f32 %v3447_v62, %v4022_v57 }
 0x69b   : > { %v4539_v7 = vadd.f32 %v7506_v15, %v4310_v63 }
 0x69d   : > { %v4764_v10 = vmax.f32 %v4539_v7, 0.0 }
 0x69e   : > { %v3161_v1 = vpop.f32.mrf.mxu2  ;;  %v1663_v5 = vpop.f32.mrf.mxu0 }
 0x69f   : > { %v4024_v2 = vpop.f32.mrf.mxu3  ;;  %v3448_v4 = vmax.f32 %v2585_v0, %v3161_v1  ;;  %v2301_v6 = vpop.f32.mrf.mxu1  ;;  %v6056_v0 = vld [vmem:[%s7142_s26 + $0x340] sm:$0xff] }
 0x6a0   : > { %v2586_v12 = vmax.f32 %v1663_v5, %v2301_v6 }
 0x6a1   : > { %v4311_v8 = vmax.f32 %v3448_v4, %v4024_v2  ;;  %1702 = vmatmul.bf16.gmra.mxu0 %v6053_v3 }
 0x6a2   : > { %2340 = vmatmul.bf16.gmra.mxu1 %v6053_v3 }
 0x6a3   : > { %v4540_v9 = vadd.f32 %v7506_v15, %v4311_v8  ;;  %3203 = vmatmul.bf16.gmra.mxu2 %v6053_v3 }
 0x6a4   : > { %4066 = vmatmul.bf16.gmra.mxu3 %v6053_v3 }
 0x6a5   : > { %v4765_v11 = vmax.f32 %v4540_v9, 0.0 }
 0x6a6   : > { %v3164_v13 = vpop.f32.mrf.mxu2  ;;  %v1665_v16 = vpop.f32.mrf.mxu0 }
 0x6a7   : > { %v4027_v36 = vpop.f32.mrf.mxu3  ;;  %v6560_v14 = vpack.c.bf16 %v4765_v11, %v4764_v10  ;;  %v2303_v17 = vpop.f32.mrf.mxu1  ;;  %v3449_v19 = vmax.f32 %v2586_v12, %v3164_v13 }
 0x6a8   : > { %v2587_v21 = vmax.f32 %v1665_v16, %v2303_v17 }
 0x6a9   : > { %6748 = vst [vmem:[%s7168_s18 + $0x2e0] sm:$0xff] %v6560_v14   ;;  %v4312_v20 = vmax.f32 %v3449_v19, %v4027_v36 }
 0x6ab   : > { %v4541_v50 = vadd.f32 %v7506_v15, %v4312_v20 }
 0x6ad   : > { %v4766_v30 = vmax.f32 %v4541_v50, 0.0 }
 0x6ae   : > { %v3166_v22 = vpop.f32.mrf.mxu2  ;;  %v1668_v26 = vpop.f32.mrf.mxu0 }
 0x6af   : > { %v4029_v23 = vpop.f32.mrf.mxu3  ;;  %v3450_v25 = vmax.f32 %v2587_v21, %v3166_v22  ;;  %v2306_v27 = vpop.f32.mrf.mxu1  ;;  %v6057_v21 = vld [vmem:[%s7142_s26 + $0x348] sm:$0xff] }
 0x6b0   : > { %v2588_v32 = vmax.f32 %v1668_v26, %v2306_v27 }
 0x6b1   : > { %v4313_v28 = vmax.f32 %v3450_v25, %v4029_v23  ;;  %1707 = vmatmul.bf16.gmra.mxu0 %v6054_v24 }
 0x6b2   : > { %2345 = vmatmul.bf16.gmra.mxu1 %v6054_v24 }
 0x6b3   : > { %v4542_v29 = vadd.f32 %v7506_v15, %v4313_v28  ;;  %3208 = vmatmul.bf16.gmra.mxu2 %v6054_v24 }
 0x6b4   : > { %4071 = vmatmul.bf16.gmra.mxu3 %v6054_v24 }
 0x6b5   : > { %v4767_v31 = vmax.f32 %v4542_v29, 0.0 }
 0x6b6   : > { %v3169_v33 = vpop.f32.mrf.mxu2  ;;  %v1670_v35 = vpop.f32.mrf.mxu0 }
 0x6b7   : > { %v4032_v34 = vpop.f32.mrf.mxu3  ;;  %v6565_v58 = vpack.c.bf16 %v4767_v31, %v4766_v30  ;;  %v2308_v37 = vpop.f32.mrf.mxu1  ;;  %v3451_v38 = vmax.f32 %v2588_v32, %v3169_v33 }
 0x6b8   : > { %v2589_v40 = vmax.f32 %v1670_v35, %v2308_v37 }
 0x6b9   : > { %6749 = vst [vmem:[%s7168_s18 + $0x2e8] sm:$0xff] %v6565_v58   ;;  %v4314_v39 = vmax.f32 %v3451_v38, %v4032_v34 }
 0x6bb   : > { %v4543_v47 = vadd.f32 %v7506_v15, %v4314_v39 }
 0x6bd   : > { %v4768_v51 = vmax.f32 %v4543_v47, 0.0 }
 0x6be   : > { %v3171_v41 = vpop.f32.mrf.mxu2  ;;  %v1673_v45 = vpop.f32.mrf.mxu0 }
 0x6bf   : > { %v4034_v42 = vpop.f32.mrf.mxu3  ;;  %v3452_v44 = vmax.f32 %v2589_v40, %v3171_v41  ;;  %v2311_v46 = vpop.f32.mrf.mxu1  ;;  %v6058_v40 = vld [vmem:[%s7142_s26 + $0x350] sm:$0xff] }
 0x6c0   : > { %v2590_v53 = vmax.f32 %v1673_v45, %v2311_v46 }
 0x6c1   : > { %v4315_v48 = vmax.f32 %v3452_v44, %v4034_v42  ;;  %1712 = vmatmul.bf16.gmra.mxu0 %v6055_v43 }
 0x6c2   : > { %2350 = vmatmul.bf16.gmra.mxu1 %v6055_v43 }
 0x6c3   : > { %v4544_v49 = vadd.f32 %v7506_v15, %v4315_v48  ;;  %3213 = vmatmul.bf16.gmra.mxu2 %v6055_v43 }
 0x6c4   : > { %4076 = vmatmul.bf16.gmra.mxu3 %v6055_v43 }
 0x6c5   : > { %v4769_v52 = vmax.f32 %v4544_v49, 0.0 }
 0x6c6   : > { %v3174_v54 = vpop.f32.mrf.mxu2  ;;  %v1675_v18 = vpop.f32.mrf.mxu0 }
 0x6c7   : > { %v4037_v55 = vpop.f32.mrf.mxu3  ;;  %v6570_v56 = vpack.c.bf16 %v4769_v52, %v4768_v51  ;;  %v2313_v57 = vpop.f32.mrf.mxu1  ;;  %v3453_v59 = vmax.f32 %v2590_v53, %v3174_v54 }
 0x6c8   : > { %v2591_v61 = vmax.f32 %v1675_v18, %v2313_v57 }
 0x6c9   : > { %6750 = vst [vmem:[%s7168_s18 + $0x2f0] sm:$0xff] %v6570_v56   ;;  %v4316_v60 = vmax.f32 %v3453_v59, %v4037_v55 }
 0x6cb   : > { %v4545_v4 = vadd.f32 %v7506_v15, %v4316_v60 }
 0x6cd   : > { %v4770_v7 = vmax.f32 %v4545_v4, 0.0 }
 0x6ce   : > { %v3176_v62 = vpop.f32.mrf.mxu2  ;;  %v1678_v2 = vpop.f32.mrf.mxu0 }
 0x6cf   : > { %v4039_v63 = vpop.f32.mrf.mxu3  ;;  %v3454_v1 = vmax.f32 %v2591_v61, %v3176_v62  ;;  %v2316_v3 = vpop.f32.mrf.mxu1  ;;  %v6059_v61 = vld [vmem:[%s7142_s26 + $0x358] sm:$0xff] }
 0x6d0   : > { %v2592_v9 = vmax.f32 %v1678_v2, %v2316_v3 }
 0x6d1   : > { %v4317_v5 = vmax.f32 %v3454_v1, %v4039_v63  ;;  %1717 = vmatmul.bf16.gmra.mxu0 %v6056_v0 }
 0x6d2   : > { %2355 = vmatmul.bf16.gmra.mxu1 %v6056_v0 }
 0x6d3   : > { %v4546_v6 = vadd.f32 %v7506_v15, %v4317_v5  ;;  %3218 = vmatmul.bf16.gmra.mxu2 %v6056_v0 }
 0x6d4   : > { %4081 = vmatmul.bf16.gmra.mxu3 %v6056_v0 }
 0x6d5   : > { %v4771_v8 = vmax.f32 %v4546_v6, 0.0 }
 0x6d6   : > { %v3179_v10 = vpop.f32.mrf.mxu2  ;;  %v1680_v13 = vpop.f32.mrf.mxu0 }
 0x6d7   : > { %v4042_v11 = vpop.f32.mrf.mxu3  ;;  %v6575_v12 = vpack.c.bf16 %v4771_v8, %v4770_v7  ;;  %v2318_v36 = vpop.f32.mrf.mxu1  ;;  %v3455_v14 = vmax.f32 %v2592_v9, %v3179_v10 }
 0x6d8   : > { %v2593_v17 = vmax.f32 %v1680_v13, %v2318_v36 }
 0x6d9   : > { %6751 = vst [vmem:[%s7168_s18 + $0x2f8] sm:$0xff] %v6575_v12   ;;  %v4318_v16 = vmax.f32 %v3455_v14, %v4042_v11 }
 0x6db   : > { %v4547_v25 = vadd.f32 %v7506_v15, %v4318_v16 }
 0x6dd   : > { %v4772_v50 = vmax.f32 %v4547_v25, 0.0 }
 0x6de   : > { %v3181_v19 = vpop.f32.mrf.mxu2  ;;  %v1683_v23 = vpop.f32.mrf.mxu0 }
 0x6df   : > { %v4044_v20 = vpop.f32.mrf.mxu3  ;;  %v3456_v22 = vmax.f32 %v2593_v17, %v3181_v19  ;;  %v2321_v24 = vpop.f32.mrf.mxu1  ;;  %v6060_v17 = vld [vmem:[%s7142_s26 + $0x360] sm:$0xff] }
 0x6e0   : > { %v2594_v29 = vmax.f32 %v1683_v23, %v2321_v24 }
 0x6e1   : > { %v4319_v26 = vmax.f32 %v3456_v22, %v4044_v20  ;;  %1722 = vmatmul.bf16.gmra.mxu0 %v6057_v21 }
 0x6e2   : > { %2360 = vmatmul.bf16.gmra.mxu1 %v6057_v21 }
 0x6e3   : > { %v4548_v27 = vadd.f32 %v7506_v15, %v4319_v26  ;;  %3223 = vmatmul.bf16.gmra.mxu2 %v6057_v21 }
 0x6e4   : > { %4086 = vmatmul.bf16.gmra.mxu3 %v6057_v21 }
 0x6e5   : > { %v4773_v28 = vmax.f32 %v4548_v27, 0.0 }
 0x6e6   : > { %v3184_v30 = vpop.f32.mrf.mxu2  ;;  %v1685_v33 = vpop.f32.mrf.mxu0 }
 0x6e7   : > { %v4047_v31 = vpop.f32.mrf.mxu3  ;;  %v6580_v32 = vpack.c.bf16 %v4773_v28, %v4772_v50  ;;  %v2323_v34 = vpop.f32.mrf.mxu1  ;;  %v3457_v58 = vmax.f32 %v2594_v29, %v3184_v30 }
 0x6e8   : > { %v2595_v37 = vmax.f32 %v1685_v33, %v2323_v34 }
 0x6e9   : > { %6752 = vst [vmem:[%s7168_s18 + $0x300] sm:$0xff] %v6580_v32   ;;  %v4320_v35 = vmax.f32 %v3457_v58, %v4047_v31 }
 0x6eb   : > { %v4549_v44 = vadd.f32 %v7506_v15, %v4320_v35 }
 0x6ed   : > { %v4774_v47 = vmax.f32 %v4549_v44, 0.0 }
 0x6ee   : > { %v3186_v38 = vpop.f32.mrf.mxu2  ;;  %v1688_v42 = vpop.f32.mrf.mxu0 }
 0x6ef   : > { %v4049_v39 = vpop.f32.mrf.mxu3  ;;  %v3458_v41 = vmax.f32 %v2595_v37, %v3186_v38  ;;  %v2326_v43 = vpop.f32.mrf.mxu1  ;;  %v6061_v37 = vld [vmem:[%s7142_s26 + $0x368] sm:$0xff] }
 0x6f0   : > { %v2596_v49 = vmax.f32 %v1688_v42, %v2326_v43 }
 0x6f1   : > { %v4321_v45 = vmax.f32 %v3458_v41, %v4049_v39  ;;  %1727 = vmatmul.bf16.gmra.mxu0 %v6058_v40 }
 0x6f2   : > { %2365 = vmatmul.bf16.gmra.mxu1 %v6058_v40 }
 0x6f3   : > { %v4550_v46 = vadd.f32 %v7506_v15, %v4321_v45  ;;  %3228 = vmatmul.bf16.gmra.mxu2 %v6058_v40 }
 0x6f4   : > { %4091 = vmatmul.bf16.gmra.mxu3 %v6058_v40 }
 0x6f5   : > { %v4775_v48 = vmax.f32 %v4550_v46, 0.0 }
 0x6f6   : > { %v3189_v51 = vpop.f32.mrf.mxu2  ;;  %v1690_v54 = vpop.f32.mrf.mxu0 }
 0x6f7   : > { %v4052_v52 = vpop.f32.mrf.mxu3  ;;  %v6585_v53 = vpack.c.bf16 %v4775_v48, %v4774_v47  ;;  %v2328_v55 = vpop.f32.mrf.mxu1  ;;  %v3459_v56 = vmax.f32 %v2596_v49, %v3189_v51 }
 0x6f8   : > { %v2597_v57 = vmax.f32 %v1690_v54, %v2328_v55 }
 0x6f9   : > { %6753 = vst [vmem:[%s7168_s18 + $0x308] sm:$0xff] %v6585_v53   ;;  %v4322_v18 = vmax.f32 %v3459_v56, %v4052_v52 }
 0x6fb   : > { %v4551_v1 = vadd.f32 %v7506_v15, %v4322_v18 }
 0x6fd   : > { %v4776_v4 = vmax.f32 %v4551_v1, 0.0 }
 0x6fe   : > { %v3191_v59 = vpop.f32.mrf.mxu2  ;;  %v1693_v63 = vpop.f32.mrf.mxu0 }
 0x6ff   : > { %v4054_v60 = vpop.f32.mrf.mxu3  ;;  %v3460_v62 = vmax.f32 %v2597_v57, %v3191_v59  ;;  %v2331_v0 = vpop.f32.mrf.mxu1  ;;  %v6062_v57 = vld [vmem:[%s7142_s26 + $0x370] sm:$0xff] }
 0x700   : > { %v2598_v6 = vmax.f32 %v1693_v63, %v2331_v0 }
 0x701   : > { %v4323_v2 = vmax.f32 %v3460_v62, %v4054_v60  ;;  %1732 = vmatmul.bf16.gmra.mxu0 %v6059_v61 }
 0x702   : > { %2370 = vmatmul.bf16.gmra.mxu1 %v6059_v61 }
 0x703   : > { %v4552_v3 = vadd.f32 %v7506_v15, %v4323_v2  ;;  %3233 = vmatmul.bf16.gmra.mxu2 %v6059_v61 }
 0x704   : > { %4096 = vmatmul.bf16.gmra.mxu3 %v6059_v61 }
 0x705   : > { %v4777_v5 = vmax.f32 %v4552_v3, 0.0 }
 0x706   : > { %v3194_v7 = vpop.f32.mrf.mxu2  ;;  %v1695_v10 = vpop.f32.mrf.mxu0 }
 0x707   : > { %v4057_v8 = vpop.f32.mrf.mxu3  ;;  %v6590_v9 = vpack.c.bf16 %v4777_v5, %v4776_v4  ;;  %v2333_v11 = vpop.f32.mrf.mxu1  ;;  %v3461_v12 = vmax.f32 %v2598_v6, %v3194_v7 }
 0x708   : > { %v2599_v36 = vmax.f32 %v1695_v10, %v2333_v11 }
 0x709   : > { %6754 = vst [vmem:[%s7168_s18 + $0x310] sm:$0xff] %v6590_v9   ;;  %v4324_v13 = vmax.f32 %v3461_v12, %v4057_v8 }
 0x70b   : > { %v4553_v22 = vadd.f32 %v7506_v15, %v4324_v13 }
 0x70d   : > { %v4778_v25 = vmax.f32 %v4553_v22, 0.0 }
 0x70e   : > { %v3196_v14 = vpop.f32.mrf.mxu2  ;;  %v1698_v20 = vpop.f32.mrf.mxu0 }
 0x70f   : > { %v4059_v16 = vpop.f32.mrf.mxu3  ;;  %v3462_v19 = vmax.f32 %v2599_v36, %v3196_v14  ;;  %v2336_v21 = vpop.f32.mrf.mxu1  ;;  %v6063_v36 = vld [vmem:[%s7142_s26 + $0x378] sm:$0xff] }
 0x710   : > { %v2600_v27 = vmax.f32 %v1698_v20, %v2336_v21 }
 0x711   : > { %v4325_v23 = vmax.f32 %v3462_v19, %v4059_v16  ;;  %1737 = vmatmul.bf16.gmra.mxu0 %v6060_v17 }
 0x712   : > { %2375 = vmatmul.bf16.gmra.mxu1 %v6060_v17 }
 0x713   : > { %v4554_v24 = vadd.f32 %v7506_v15, %v4325_v23  ;;  %3238 = vmatmul.bf16.gmra.mxu2 %v6060_v17 }
 0x714   : > { %4101 = vmatmul.bf16.gmra.mxu3 %v6060_v17 }
 0x715   : > { %v4779_v26 = vmax.f32 %v4554_v24, 0.0 }
 0x716   : > { %v3199_v50 = vpop.f32.mrf.mxu2  ;;  %v1700_v30 = vpop.f32.mrf.mxu0 }
 0x717   : > { %v4062_v28 = vpop.f32.mrf.mxu3  ;;  %v6595_v29 = vpack.c.bf16 %v4779_v26, %v4778_v25  ;;  %v2338_v31 = vpop.f32.mrf.mxu1  ;;  %v3463_v32 = vmax.f32 %v2600_v27, %v3199_v50 }
 0x718   : > { %v2601_v34 = vmax.f32 %v1700_v30, %v2338_v31 }
 0x719   : > { %6755 = vst [vmem:[%s7168_s18 + $0x318] sm:$0xff] %v6595_v29   ;;  %v4326_v33 = vmax.f32 %v3463_v32, %v4062_v28  ;;  %v448_v29 = vld [vmem:[%s7142_s26 + $0x380] sm:$0xf] }
 0x71a   : > { %v914_v31 = vunpack.c.l.b16 %v448_v29 }
 0x71b   : > { %v4555_v41 = vadd.f32 %v7506_v15, %v4326_v33 }
 0x71d   : > { %v4780_v44 = vmax.f32 %v4555_v41, 0.0 }
 0x71e   : > { %v3201_v58 = vpop.f32.mrf.mxu2  ;;  %v1703_v39 = vpop.f32.mrf.mxu0 }
 0x71f   : > { %v4064_v35 = vpop.f32.mrf.mxu3  ;;  %v3464_v38 = vmax.f32 %v2601_v34, %v3201_v58  ;;  %v2341_v40 = vpop.f32.mrf.mxu1 }
 0x720   : > { %v2602_v46 = vmax.f32 %v1703_v39, %v2341_v40 }
 0x721   : > { %v4327_v42 = vmax.f32 %v3464_v38, %v4064_v35  ;;  %1742 = vmatmul.bf16.gmra.mxu0 %v6061_v37  ;;  %v1027_v35 = vpack.c.b16 %v914_v31, %v914_v31 }
 0x722   : > { %2380 = vmatmul.bf16.gmra.mxu1 %v6061_v37 }
 0x723   : > { %v4556_v43 = vadd.f32 %v7506_v15, %v4327_v42  ;;  %3243 = vmatmul.bf16.gmra.mxu2 %v6061_v37 }
 0x724   : > { %4106 = vmatmul.bf16.gmra.mxu3 %v6061_v37 }
 0x725   : > { %v4781_v45 = vmax.f32 %v4556_v43, 0.0 }
 0x726   : > { %v3204_v47 = vpop.f32.mrf.mxu2  ;;  %v1705_v51 = vpop.f32.mrf.mxu0 }
 0x727   : > { %v4067_v48 = vpop.f32.mrf.mxu3  ;;  %v6600_v49 = vpack.c.bf16 %v4781_v45, %v4780_v44  ;;  %v2343_v52 = vpop.f32.mrf.mxu1  ;;  %v3465_v53 = vmax.f32 %v2602_v46, %v3204_v47 }
 0x728   : > { %v2603_v55 = vmax.f32 %v1705_v51, %v2343_v52 }
 0x729   : > { %6756 = vst [vmem:[%s7168_s18 + $0x320] sm:$0xff] %v6600_v49   ;;  %v4328_v54 = vmax.f32 %v3465_v53, %v4067_v48 }
 0x72b   : > { %v4557_v62 = vadd.f32 %v7506_v15, %v4328_v54 }
 0x72d   : > { %v4782_v1 = vmax.f32 %v4557_v62, 0.0 }
 0x72e   : > { %v3206_v56 = vpop.f32.mrf.mxu2  ;;  %v1708_v60 = vpop.f32.mrf.mxu0 }
 0x72f   : > { %v4069_v18 = vpop.f32.mrf.mxu3  ;;  %v3466_v59 = vmax.f32 %v2603_v55, %v3206_v56  ;;  %v2346_v61 = vpop.f32.mrf.mxu1 }
 0x730   : > { %v2604_v3 = vmax.f32 %v1708_v60, %v2346_v61 }
 0x731   : > { %v4329_v63 = vmax.f32 %v3466_v59, %v4069_v18  ;;  %1747 = vmatmul.bf16.gmra.mxu0 %v6062_v57  ;;  %v7591_v59 = vld [vmem:[#allocation7] ss:$0 sm:$0xff] }
 0x732   : > { %2385 = vmatmul.bf16.gmra.mxu1 %v6062_v57 }
 0x733   : > { %v4558_v0 = vadd.f32 %v7506_v15, %v4329_v63  ;;  %3248 = vmatmul.bf16.gmra.mxu2 %v6062_v57 }
 0x734   : > { %4111 = vmatmul.bf16.gmra.mxu3 %v6062_v57 }
 0x735   : > { %v4783_v2 = vmax.f32 %v4558_v0, 0.0 }
 0x736   : > { %v3209_v4 = vpop.f32.mrf.mxu2  ;;  %v1710_v7 = vpop.f32.mrf.mxu0 }
 0x737   : > { %v4072_v5 = vpop.f32.mrf.mxu3  ;;  %v6605_v6 = vpack.c.bf16 %v4783_v2, %v4782_v1  ;;  %v2348_v8 = vpop.f32.mrf.mxu1  ;;  %v3467_v9 = vmax.f32 %v2604_v3, %v3209_v4 }
 0x738   : > { %v2605_v11 = vmax.f32 %v1710_v7, %v2348_v8 }
 0x739   : > { %6757 = vst [vmem:[%s7168_s18 + $0x328] sm:$0xff] %v6605_v6   ;;  %v4330_v10 = vmax.f32 %v3467_v9, %v4072_v5 }
 0x73b   : > { %v4559_v19 = vadd.f32 %v7506_v15, %v4330_v10 }
 0x73d   : > { %v4784_v22 = vmax.f32 %v4559_v19, 0.0 }
 0x73e   : > { %v3211_v12 = vpop.f32.mrf.mxu2  ;;  %v1713_v16 = vpop.f32.mrf.mxu0 }
 0x73f   : > { %v4074_v13 = vpop.f32.mrf.mxu3  ;;  %v3468_v14 = vmax.f32 %v2605_v11, %v3211_v12  ;;  %v2351_v17 = vpop.f32.mrf.mxu1 }
 0x740   : > { %v2606_v24 = vmax.f32 %v1713_v16, %v2351_v17 }
 0x741   : > { %v4331_v20 = vmax.f32 %v3468_v14, %v4074_v13  ;;  %1752 = vmatmul.bf16.gmra.mxu0 %v6063_v36 }
 0x742   : > { %2390 = vmatmul.bf16.gmra.mxu1 %v6063_v36 }
 0x743   : > { %v4560_v21 = vadd.f32 %v7506_v15, %v4331_v20  ;;  %3253 = vmatmul.bf16.gmra.mxu2 %v6063_v36 }
 0x744   : > { %4116 = vmatmul.bf16.gmra.mxu3 %v6063_v36 }
 0x745   : > { %v4785_v23 = vmax.f32 %v4560_v21, 0.0 }
 0x746   : > { %v3214_v25 = vpop.f32.mrf.mxu2  ;;  %v1715_v50 = vpop.f32.mrf.mxu0 }
 0x747   : > { %v4077_v26 = vpop.f32.mrf.mxu3  ;;  %v6610_v27 = vpack.c.bf16 %v4785_v23, %v4784_v22  ;;  %v2353_v28 = vpop.f32.mrf.mxu1  ;;  %v3469_v30 = vmax.f32 %v2606_v24, %v3214_v25 }
 0x748   : > { %v2607_v33 = vmax.f32 %v1715_v50, %v2353_v28 }
 0x749   : > { %6758 = vst [vmem:[%s7168_s18 + $0x330] sm:$0xff] %v6610_v27   ;;  %v4332_v32 = vmax.f32 %v3469_v30, %v4077_v26 }
 0x74b   : > { %v4561_v40 = vadd.f32 %v7506_v15, %v4332_v32 }
 0x74d   : > { %v4786_v43 = vmax.f32 %v4561_v40, 0.0 }
 0x74e   : > { %v3216_v34 = vpop.f32.mrf.mxu2  ;;  %v1718_v38 = vpop.f32.mrf.mxu0 }
 0x74f   : > { %v4079_v58 = vpop.f32.mrf.mxu3  ;;  %v3470_v37 = vmax.f32 %v2607_v33, %v3216_v34  ;;  %v2356_v39 = vpop.f32.mrf.mxu1 }
 0x750   : > { %v2608_v45 = vmax.f32 %v1718_v38, %v2356_v39 }
 0x751   : > { %v4333_v41 = vmax.f32 %v3470_v37, %v4079_v58  ;;  %1757 = vmatmul.bf16.gmra.mxu0 %v1027_v35 }
 0x752   : > { %2395 = vmatmul.bf16.gmra.mxu1 %v1027_v35 }
 0x753   : > { %v4562_v42 = vadd.f32 %v7506_v15, %v4333_v41  ;;  %3258 = vmatmul.bf16.gmra.mxu2 %v1027_v35 }
 0x754   : > { %4121 = vmatmul.bf16.gmra.mxu3 %v1027_v35 }
 0x755   : > { %v4787_v44 = vmax.f32 %v4562_v42, 0.0 }
 0x756   : > { %v3219_v46 = vpop.f32.mrf.mxu2  ;;  %v1720_v49 = vpop.f32.mrf.mxu0 }
 0x757   : > { %v4082_v47 = vpop.f32.mrf.mxu3  ;;  %v6615_v48 = vpack.c.bf16 %v4787_v44, %v4786_v43  ;;  %v2358_v51 = vpop.f32.mrf.mxu1  ;;  %v3471_v52 = vmax.f32 %v2608_v45, %v3219_v46 }
 0x758   : > { %v2609_v54 = vmax.f32 %v1720_v49, %v2358_v51 }
 0x759   : > { %6759 = vst [vmem:[%s7168_s18 + $0x338] sm:$0xff] %v6615_v48   ;;  %v4334_v53 = vmax.f32 %v3471_v52, %v4082_v47 }
 0x75b   : > { %v4563_v60 = vadd.f32 %v7591_v59, %v4334_v53 }
 0x75d   : > { %v4788_v63 = vmax.f32 %v4563_v60, 0.0 }
 0x75e   : > { %v3221_v55 = vpop.f32.mrf.mxu2  ;;  %v1723_v57 = vpop.f32.mrf.mxu0 }
 0x75f   : > { %v4084_v56 = vpop.f32.mrf.mxu3  ;;  %v3472_v18 = vmax.f32 %v2609_v54, %v3221_v55  ;;  %v2361_v15 = vpop.f32.mrf.mxu1 }
 0x760   : > { %v2610_v1 = vmax.f32 %v1723_v57, %v2361_v15 }
 0x761   : > { %v4335_v61 = vmax.f32 %v3472_v18, %v4084_v56 }
 0x763   : > { %v4564_v62 = vadd.f32 %v7591_v59, %v4335_v61 }
 0x765   : > { %v4789_v0 = vmax.f32 %v4564_v62, 0.0 }
 0x766   : > { %v3224_v2 = vpop.f32.mrf.mxu2  ;;  %v1725_v5 = vpop.f32.mrf.mxu0 }
 0x767   : > { %v4087_v3 = vpop.f32.mrf.mxu3  ;;  %v6620_v4 = vpack.c.bf16 %v4789_v0, %v4788_v63  ;;  %v2363_v6 = vpop.f32.mrf.mxu1  ;;  %v3473_v7 = vmax.f32 %v2610_v1, %v3224_v2 }
 0x768   : > { %v2611_v9 = vmax.f32 %v1725_v5, %v2363_v6 }
 0x769   : > { %6760 = vst [vmem:[%s7168_s18 + $0x340] sm:$0xff] %v6620_v4   ;;  %v4336_v8 = vmax.f32 %v3473_v7, %v4087_v3 }
 0x76b   : > { %v4565_v14 = vadd.f32 %v7591_v59, %v4336_v8 }
 0x76d   : > { %v4790_v19 = vmax.f32 %v4565_v14, 0.0 }
 0x76e   : > { %v3226_v10 = vpop.f32.mrf.mxu2  ;;  %v1728_v13 = vpop.f32.mrf.mxu0 }
 0x76f   : > { %v4089_v11 = vpop.f32.mrf.mxu3  ;;  %v3474_v12 = vmax.f32 %v2611_v9, %v3226_v10  ;;  %v2366_v36 = vpop.f32.mrf.mxu1 }
 0x770   : > { %v2612_v21 = vmax.f32 %v1728_v13, %v2366_v36 }
 0x771   : > { %v4337_v16 = vmax.f32 %v3474_v12, %v4089_v11 }
 0x773   : > { %v4566_v17 = vadd.f32 %v7591_v59, %v4337_v16 }
 0x775   : > { %v4791_v20 = vmax.f32 %v4566_v17, 0.0 }
 0x776   : > { %v3229_v22 = vpop.f32.mrf.mxu2  ;;  %v1730_v25 = vpop.f32.mrf.mxu0 }
 0x777   : > { %v4092_v23 = vpop.f32.mrf.mxu3  ;;  %v6625_v24 = vpack.c.bf16 %v4791_v20, %v4790_v19  ;;  %v2368_v26 = vpop.f32.mrf.mxu1  ;;  %v3475_v27 = vmax.f32 %v2612_v21, %v3229_v22 }
 0x778   : > { %v2613_v28 = vmax.f32 %v1730_v25, %v2368_v26 }
 0x779   : > { %6761 = vst [vmem:[%s7168_s18 + $0x348] sm:$0xff] %v6625_v24   ;;  %v4338_v50 = vmax.f32 %v3475_v27, %v4092_v23 }
 0x77b   : > { %v4567_v34 = vadd.f32 %v7591_v59, %v4338_v50 }
 0x77d   : > { %v4792_v37 = vmax.f32 %v4567_v34, 0.0 }
 0x77e   : > { %v3231_v29 = vpop.f32.mrf.mxu2  ;;  %v1733_v32 = vpop.f32.mrf.mxu0 }
 0x77f   : > { %v4094_v30 = vpop.f32.mrf.mxu3  ;;  %v3476_v31 = vmax.f32 %v2613_v28, %v3231_v29  ;;  %v2371_v33 = vpop.f32.mrf.mxu1 }
 0x780   : > { %v2614_v39 = vmax.f32 %v1733_v32, %v2371_v33 }
 0x781   : > { %v4339_v58 = vmax.f32 %v3476_v31, %v4094_v30 }
 0x783   : > { %v4568_v35 = vadd.f32 %v7591_v59, %v4339_v58 }
 0x785   : > { %v4793_v38 = vmax.f32 %v4568_v35, 0.0 }
 0x786   : > { %v3234_v40 = vpop.f32.mrf.mxu2  ;;  %v1735_v43 = vpop.f32.mrf.mxu0 }
 0x787   : > { %v4097_v41 = vpop.f32.mrf.mxu3  ;;  %v6630_v42 = vpack.c.bf16 %v4793_v38, %v4792_v37  ;;  %v2373_v44 = vpop.f32.mrf.mxu1  ;;  %v3477_v45 = vmax.f32 %v2614_v39, %v3234_v40 }
 0x788   : > { %v2615_v47 = vmax.f32 %v1735_v43, %v2373_v44 }
 0x789   : > { %6762 = vst [vmem:[%s7168_s18 + $0x350] sm:$0xff] %v6630_v42   ;;  %v4340_v46 = vmax.f32 %v3477_v45, %v4097_v41 }
 0x78b   : > { %v4569_v54 = vadd.f32 %v7591_v59, %v4340_v46 }
 0x78d   : > { %v4794_v18 = vmax.f32 %v4569_v54, 0.0 }
 0x78e   : > { %v3236_v48 = vpop.f32.mrf.mxu2  ;;  %v1738_v52 = vpop.f32.mrf.mxu0 }
 0x78f   : > { %v4099_v49 = vpop.f32.mrf.mxu3  ;;  %v3478_v51 = vmax.f32 %v2615_v47, %v3236_v48  ;;  %v2376_v53 = vpop.f32.mrf.mxu1 }
 0x790   : > { %v2616_v15 = vmax.f32 %v1738_v52, %v2376_v53 }
 0x791   : > { %v4341_v55 = vmax.f32 %v3478_v51, %v4099_v49 }
 0x793   : > { %v4570_v56 = vadd.f32 %v7591_v59, %v4341_v55 }
 0x795   : > { %v4795_v57 = vmax.f32 %v4570_v56, 0.0 }
 0x796   : > { %v3239_v60 = vpop.f32.mrf.mxu2  ;;  %v1740_v63 = vpop.f32.mrf.mxu0 }
 0x797   : > { %v4102_v61 = vpop.f32.mrf.mxu3  ;;  %v6635_v62 = vpack.c.bf16 %v4795_v57, %v4794_v18  ;;  %v2378_v0 = vpop.f32.mrf.mxu1  ;;  %v3479_v1 = vmax.f32 %v2616_v15, %v3239_v60 }
 0x798   : > { %v2617_v3 = vmax.f32 %v1740_v63, %v2378_v0 }
 0x799   : > { %6763 = vst [vmem:[%s7168_s18 + $0x358] sm:$0xff] %v6635_v62   ;;  %v4342_v2 = vmax.f32 %v3479_v1, %v4102_v61 }
 0x79b   : > { %v4571_v9 = vadd.f32 %v7591_v59, %v4342_v2 }
 0x79d   : > { %v4796_v12 = vmax.f32 %v4571_v9, 0.0 }
 0x79e   : > { %v3241_v4 = vpop.f32.mrf.mxu2  ;;  %v1743_v7 = vpop.f32.mrf.mxu0 }
 0x79f   : > { %v4104_v5 = vpop.f32.mrf.mxu3  ;;  %v3480_v6 = vmax.f32 %v2617_v3, %v3241_v4  ;;  %v2381_v8 = vpop.f32.mrf.mxu1 }
 0x7a0   : > { %v2618_v36 = vmax.f32 %v1743_v7, %v2381_v8 }
 0x7a1   : > { %v4343_v10 = vmax.f32 %v3480_v6, %v4104_v5 }
 0x7a3   : > { %v4572_v11 = vadd.f32 %v7591_v59, %v4343_v10 }
 0x7a5   : > { %v4797_v13 = vmax.f32 %v4572_v11, 0.0 }
 0x7a6   : > { %v3244_v14 = vpop.f32.mrf.mxu2  ;;  %v1745_v19 = vpop.f32.mrf.mxu0 }
 0x7a7   : > { %v4107_v16 = vpop.f32.mrf.mxu3  ;;  %v6640_v17 = vpack.c.bf16 %v4797_v13, %v4796_v12  ;;  %v2383_v20 = vpop.f32.mrf.mxu1  ;;  %v3481_v21 = vmax.f32 %v2618_v36, %v3244_v14 }
 0x7a8   : > { %v2619_v23 = vmax.f32 %v1745_v19, %v2383_v20 }
 0x7a9   : > { %6764 = vst [vmem:[%s7168_s18 + $0x360] sm:$0xff] %v6640_v17   ;;  %v4344_v22 = vmax.f32 %v3481_v21, %v4107_v16 }
 0x7ab   : > { %v4573_v28 = vadd.f32 %v7591_v59, %v4344_v22 }
 0x7ad   : > { %v4798_v31 = vmax.f32 %v4573_v28, 0.0 }
 0x7ae   : > { %v3246_v24 = vpop.f32.mrf.mxu2  ;;  %v1748_v27 = vpop.f32.mrf.mxu0 }
 0x7af   : > { %v4109_v25 = vpop.f32.mrf.mxu3  ;;  %v3482_v26 = vmax.f32 %v2619_v23, %v3246_v24  ;;  %v2386_v50 = vpop.f32.mrf.mxu1 }
 0x7b0   : > { %v2620_v33 = vmax.f32 %v1748_v27, %v2386_v50 }
 0x7b1   : > { %v4345_v29 = vmax.f32 %v3482_v26, %v4109_v25 }
 0x7b3   : > { %v4574_v30 = vadd.f32 %v7591_v59, %v4345_v29 }
 0x7b5   : > { %v4799_v32 = vmax.f32 %v4574_v30, 0.0 }
 0x7b6   : > { %v3249_v34 = vpop.f32.mrf.mxu2  ;;  %v1750_v37 = vpop.f32.mrf.mxu0 }
 0x7b7   : > { %v4112_v58 = vpop.f32.mrf.mxu3  ;;  %v6645_v35 = vpack.c.bf16 %v4799_v32, %v4798_v31  ;;  %v2388_v38 = vpop.f32.mrf.mxu1  ;;  %v3483_v39 = vmax.f32 %v2620_v33, %v3249_v34 }
 0x7b8   : > { %v2621_v41 = vmax.f32 %v1750_v37, %v2388_v38 }
 0x7b9   : > { %6765 = vst [vmem:[%s7168_s18 + $0x368] sm:$0xff] %v6645_v35   ;;  %v4346_v40 = vmax.f32 %v3483_v39, %v4112_v58 }
 0x7bb   : > { %v4575_v47 = vadd.f32 %v7591_v59, %v4346_v40 }
 0x7bd   : > { %v4800_v51 = vmax.f32 %v4575_v47, 0.0 }
 0x7be   : > { %v3251_v42 = vpop.f32.mrf.mxu2  ;;  %v1753_v45 = vpop.f32.mrf.mxu0 }
 0x7bf   : > { %v4114_v43 = vpop.f32.mrf.mxu3  ;;  %v3484_v44 = vmax.f32 %v2621_v41, %v3251_v42  ;;  %v2391_v46 = vpop.f32.mrf.mxu1 }
 0x7c0   : > { %v2622_v53 = vmax.f32 %v1753_v45, %v2391_v46 }
 0x7c1   : > { %v4347_v48 = vmax.f32 %v3484_v44, %v4114_v43 }
 0x7c3   : > { %v4576_v49 = vadd.f32 %v7591_v59, %v4347_v48 }
 0x7c5   : > { %v4801_v52 = vmax.f32 %v4576_v49, 0.0 }
 0x7c6   : > { %v3254_v54 = vpop.f32.mrf.mxu2  ;;  %v1755_v18 = vpop.f32.mrf.mxu0 }
 0x7c7   : > { %v4117_v55 = vpop.f32.mrf.mxu3  ;;  %v6650_v56 = vpack.c.bf16 %v4801_v52, %v4800_v51  ;;  %v2393_v57 = vpop.f32.mrf.mxu1  ;;  %v3485_v15 = vmax.f32 %v2622_v53, %v3254_v54 }
 0x7c8   : > { %v2623_v61 = vmax.f32 %v1755_v18, %v2393_v57 }
 0x7c9   : > { %6766 = vst [vmem:[%s7168_s18 + $0x370] sm:$0xff] %v6650_v56   ;;  %v4348_v60 = vmax.f32 %v3485_v15, %v4117_v55 }
 0x7cb   : > { %v4577_v3 = vadd.f32 %v7591_v59, %v4348_v60 }
 0x7cd   : > { %v4802_v7 = vmax.f32 %v4577_v3, 0.0 }
 0x7ce   : > { %v3256_v62 = vpop.f32.mrf.mxu2  ;;  %v1758_v1 = vpop.f32.mrf.mxu0 }
 0x7cf   : > { %v4119_v63 = vpop.f32.mrf.mxu3  ;;  %v3486_v0 = vmax.f32 %v2623_v61, %v3256_v62  ;;  %v2396_v2 = vpop.f32.mrf.mxu1 }
 0x7d0   : > { %v2624_v6 = vmax.f32 %v1758_v1, %v2396_v2 }
 0x7d1   : > { %v4349_v4 = vmax.f32 %v3486_v0, %v4119_v63 }
 0x7d3   : > { %v4578_v5 = vadd.f32 %v7591_v59, %v4349_v4 }
 0x7d5   : > { %v4803_v8 = vmax.f32 %v4578_v5, 0.0 }
 0x7d6   : > { %v3259_v9 = vpop.f32.mrf.mxu2  ;;  %v1760_v13 = vpop.f32.mrf.mxu0 }
 0x7d7   : > { %v4122_v10 = vpop.f32.mrf.mxu3  ;;  %v6655_v11 = vpack.c.bf16 %v4803_v8, %v4802_v7  ;;  %v3487_v12 = vmax.f32 %v2624_v6, %v3259_v9  ;;  %v2398_v36 = vpop.f32.mrf.mxu1 }
 0x7d9   : > { %6767 = vst [vmem:[%s7168_s18 + $0x378] sm:$0xff] %v6655_v11   ;;  %v4350_v14 = vmax.f32 %v3487_v12, %v4122_v10 }
 0x7db   : > { %v4579_v16 = vadd.f32 %v7591_v59, %v4350_v14 }
 0x7dd   : > { %v4804_v17 = vmax.f32 %v4579_v16, 0.0 }
 0x7de   : > { %v3261_v19 = vpop.f32.mrf.mxu2 }
 0x7df   : > { %v4124_v20 = vpop.f32.mrf.mxu3  ;;  %v5029_v21 = vpack.c.bf16 %v4804_v17, %v4804_v17 }
 0x7e1   : > { %5254 = vst [vmem:[%s7168_s18 + $0x380] sm:$0xf] %v5029_v21 }
 0x7e2   : > { %6964 = shalt.err (!%p6961_p10)
}
 0x7e3   : > { %s7013_s29 = smov 64   ;;  %s7014_s17 = smov 4  }
 0x7e4   : > { %6780 = dma.vmem_to_hbm [thread:$0]  (%p7103_p0), %s5269_s16, 14400, %s5271_s28, %s5256_s4, %s7013_s29, %s7013_s29, %s7014_s17  }
 0x7e5 PF: > { %p6802_p11 = scmp.ge.s32.totalorder %s7007_s15, 2  ;;  %s5285_s25 = sand.u32 1, %s6995_s12  }
 0x7e6   : > { %s5286_s26 = scalar_lea.sflag [#allocation4], %s5285_s25 }
 0x7e7   : > { %p6794_p12 = pnand %p6802_p11, %p7070_p6 }
 0x7e9   : > { %p6795_p13 = pneg %p6794_p12 }
 0x7eb   : > { %6990 = dma.done.wait (%p6795_p13), %s5286_s26, 14400  }
 0x7ec   : > { %6992 = vsyncadd (%p6795_p13), %s5286_s26, 4294952896  ;;  %p17_p3 = scmp.ge.s32.totalorder %s7093_s6, 6   ;;  %s7663_s12 = smov %s6999_s13 }
 0x7ed   : > { %s7664_s13 = smov %s7003_s14  ;;  %s7665_s14 = smov %s7109_s10 }
 0x7ee   : > { %s7666_s15 = smov %s7093_s6  ;;  %19 = sbr.rel (!%p17_p3) target bundleno = 6 (0x6), region = 88 }
 0x7f3   :  { %5292 = vsyncpa [#allocation3], 1 }
 0x7f4   :  { %5294 = vsyncpa [#allocation3 + $0x1], 1 }
 0x7f5   :  { %5295 = vsyncpa [#allocation6], 1 }
 0x7f6   :  { %5296 = vsyncpa [#allocation4], 1 }
 0x7f7   :  { %5298 = vsyncpa [#allocation4 + $0x1], 1 }

</bundles_post_ra>
